<compile_context>
chip_gen: v7x
topology: tpu7x:2x2x1
jax: 0.10.0
libtpu: 0.0.40
codegen_flags: <defaults>
</compile_context>

<pallas_src>
import jax
import jax.numpy as jnp
from jax.experimental import pallas as pl
from jax.experimental.pallas import tpu as pltpu

_MAX_FULL_SEQ = 1024      # stream the whole sequence as one block up to this length
_TARGET_BLOCK = 6 << 20   # ~6 MiB hidden block amortizes the ~0.35us per-step overhead
_BLOCK_CAP = 12 << 20     # 2x-buffered stream stays well inside v7x's 64 MiB VMEM


def _round_up(x, m):
    return ((x + m - 1) // m) * m


def _pad_to(x, shape):
    pads = [(0, t - s) for s, t in zip(x.shape, shape)]
    if any(p[1] for p in pads):
        return jnp.pad(x, pads)
    return x


def _choose_ts(S):
    """Sequence tile: avoid streaming padded tokens whenever possible."""
    if S <= _MAX_FULL_SEQ:
        return S, S                       # whole sequence, zero padding, 1 seq step
    for ts in range(_MAX_FULL_SEQ, 127, -128):
        if S % ts == 0:                   # no-padding divisor (multiple of 128)
            return ts, S
    ts = 512
    return ts, _round_up(S, ts)


def _choose_tb(B, row_bytes):
    """Batch tile: prefer no batch padding (divisor of B / full B), ~6-12 MiB block."""
    divs = [d for d in range(8, min(B, 64) + 1, 8) if B % d == 0]
    fitting = [d for d in divs if d * row_bytes <= _BLOCK_CAP]
    if fitting:
        multi = [d for d in fitting if B // d >= 2]   # >=2 batch tiles for v7x's 2 TCs
        pool = multi if multi else fitting
        reach = [d for d in pool if d * row_bytes >= _TARGET_BLOCK]
        return (min(reach) if reach else max(pool)), B
    if B <= 64 and B * row_bytes <= _BLOCK_CAP:
        return B, B                        # tb == full batch extent: still no padding
    tb = int(max(8, min(64, ((_TARGET_BLOCK // max(row_bytes, 1)) // 8) * 8)))
    return tb, _round_up(B, tb)


def brownian_head_kernel(hid_ref, mask_ref,
                         w1_ref, b1_ref, w2_ref, b2_ref,
                         w3_ref, b3_ref, w4_ref, b4_ref,
                         out_ref, acc_ref, part_ref):
    """Masked-mean pooling (accumulated over the sequence grid axis) + MLP epilogue."""
    s = pl.program_id(1)

    @pl.when(s == 0)
    def _init():
        acc_ref[...] = jnp.zeros_like(acc_ref)
        part_ref[...] = jnp.zeros_like(part_ref)

    hid = hid_ref[...]                       # (TB, TS, D) bf16 (or f32)
    mask_f32 = mask_ref[...]                 # (TB, TS) f32
    mask = mask_f32.astype(hid.dtype)        # per-tile cast (exact for 0/1 masks)

    # Masked sum on the MXU: (TB,1,TS) x (TB,TS,D) -> (TB,1,D), f32 accumulation,
    # squeezed into a dense 2-D (TB, D) accumulator (no unit-sublane acc vregs).
    # TODO(synk): if the MXU-push slot ever saturates on v7x, restructure as one
    # block-diagonal (TB, TB*TS) x (TB*TS, D) matmul instead of the batched M=1 form.
    acc_ref[...] += jnp.einsum('bqs,bsd->bqd', mask[:, None, :], hid,
                               preferred_element_type=jnp.float32)[:, 0, :]
    part_ref[...] += jnp.sum(mask_f32, axis=1, keepdims=True)

    @pl.when(s == pl.num_programs(1) - 1)
    def _finalize():
        # Guard protects wrapper-padded (all-zero-mask) batch rows; real rows
        # always have partition >= 1 so semantics are unchanged.
        part = jnp.maximum(part_ref[...], 1e-6)           # (TB, 1)
        pooled = acc_ref[...] / part                      # (TB, D) f32

        # MLP: Linear -> (Dropout = identity at inference) -> ReLU, x3, final Linear.
        h = jnp.maximum(
            jnp.dot(pooled, w1_ref[...], preferred_element_type=jnp.float32)
            + b1_ref[...], 0.0)
        h = jnp.maximum(
            jnp.dot(h, w2_ref[...], preferred_element_type=jnp.float32)
            + b2_ref[...], 0.0)
        h = jnp.maximum(
            jnp.dot(h, w3_ref[...], preferred_element_type=jnp.float32)
            + b3_ref[...], 0.0)
        out = jnp.dot(h, w4_ref[...], preferred_element_type=jnp.float32) + b4_ref[...]
        out_ref[...] = out.astype(out_ref.dtype)


def brownian_encoder_forward(hidden_state, attention_mask, params, *, tb=None, ts=None):
    """hidden_state: [B, S, 768] (bf16 preferred), attention_mask: [B, S] -> [B, latent]."""
    B, S, D = hidden_state.shape
    H = params["w1"].shape[1]
    L = params["w4"].shape[1]
    HP = _round_up(H, 128)   # lane-dense hidden width
    LP = _round_up(L, 128)   # lane-dense latent width

    # Zero-pad MLP params to lane-dense widths (mathematically identical).
    w1 = _pad_to(params["w1"], (D, HP));  b1 = _pad_to(params["b1"], (1, HP))
    w2 = _pad_to(params["w2"], (HP, HP)); b2 = _pad_to(params["b2"], (1, HP))
    w3 = _pad_to(params["w3"], (HP, HP)); b3 = _pad_to(params["b3"], (1, HP))
    w4 = _pad_to(params["w4"], (HP, LP)); b4 = _pad_to(params["b4"], (1, LP))

    itemsize = hidden_state.dtype.itemsize
    if ts is None:
        ts, Sp = _choose_ts(S)
    else:
        Sp = _round_up(S, ts)
    if tb is None:
        tb, Bp = _choose_tb(B, ts * D * itemsize)
    else:
        Bp = _round_up(B, tb)

    # Padding only when unavoidable (padded tokens/rows carry mask == 0 so they
    # contribute nothing).  With the adaptive tile choice above this path is
    # usually a no-op, avoiding a full extra HBM copy of hidden_state.
    hid = _pad_to(hidden_state, (Bp, Sp, D))
    mask = _pad_to(attention_mask.astype(jnp.float32), (Bp, Sp))

    grid = (Bp // tb, Sp // ts)
    n_seq = grid[1]
    hid_block_bytes = tb * ts * D * itemsize

    # Hidden stream spec; triple-buffer only when many small blocks (exposed DMA).
    hid_spec_kwargs = {}
    if n_seq >= 4 and hid_block_bytes < (2 << 20):
        hid_spec_kwargs["pipeline_mode"] = pl.Buffered(3)
    hid_spec = pl.BlockSpec((tb, ts, D), lambda b, s: (b, s, 0), **hid_spec_kwargs)

    const = lambda b, s: (0, 0)   # weights/biases stay resident across the grid
    # (They may be double-buffered by default; ~0.6 MiB total — negligible headroom.)

    cost = pl.CostEstimate(
        flops=2 * Bp * Sp * D + 2 * Bp * (D * HP + 2 * HP * HP + HP * LP),
        transcendentals=0,
        bytes_accessed=(hid.size * hid.dtype.itemsize
                        + mask.size * mask.dtype.itemsize
                        + 4 * (w1.size + w2.size + w3.size + w4.size
                               + b1.size + b2.size + b3.size + b4.size)
                        + 4 * Bp * LP))

    # >= 48 MiB so big streams pipeline freely; <= 64 MiB so the setting is v7x-safe.
    vmem_limit = int(min(64 << 20, max(48 << 20, 2 * hid_block_bytes + (16 << 20))))

    out_padded = pl.pallas_call(
        brownian_head_kernel,
        out_shape=jax.ShapeDtypeStruct((Bp, LP), jnp.float32),
        grid_spec=pltpu.PrefetchScalarGridSpec(
            num_scalar_prefetch=0,
            grid=grid,
            in_specs=[
                hid_spec,                                            # hidden stream
                pl.BlockSpec((tb, ts), lambda b, s: (b, s)),         # mask stream (f32)
                pl.BlockSpec((D, HP), const), pl.BlockSpec((1, HP), const),
                pl.BlockSpec((HP, HP), const), pl.BlockSpec((1, HP), const),
                pl.BlockSpec((HP, HP), const), pl.BlockSpec((1, HP), const),
                pl.BlockSpec((HP, LP), const), pl.BlockSpec((1, LP), const),
            ],
            out_specs=pl.BlockSpec((tb, LP), lambda b, s: (b, 0)),
            scratch_shapes=[
                pltpu.VMEM((tb, D), jnp.float32),   # dense 2-D masked-sum accumulator
                pltpu.VMEM((tb, 1), jnp.float32),   # partition accumulator
            ],
        ),
        compiler_params=pltpu.CompilerParams(
            dimension_semantics=("parallel", "arbitrary"),
            vmem_limit_bytes=vmem_limit,
        ),
        cost_estimate=cost,
    )(hid, mask, w1, b1, w2, b2, w3, b3, w4, b4)

    return out_padded[:B, :L]


def init_params(key, input_dim, hidden_dim, latent_dim):
    """MLP parameter init (weights stored [in, out], i.e. transposed vs torch nn.Linear)."""
    ks = jax.random.split(key, 8)

    def lin(kw, kb, fan_in, fan_out):
        scale = 1.0 / jnp.sqrt(fan_in)
        w = jax.random.uniform(kw, (fan_in, fan_out), jnp.float32, -scale, scale)
        b = jax.random.uniform(kb, (1, fan_out), jnp.float32, -scale, scale)
        return w, b

    w1, b1 = lin(ks[0], ks[1], input_dim, hidden_dim)
    w2, b2 = lin(ks[2], ks[3], hidden_dim, hidden_dim)
    w3, b3 = lin(ks[4], ks[5], hidden_dim, hidden_dim)
    w4, b4 = lin(ks[6], ks[7], hidden_dim, latent_dim)
    return {"w1": w1, "b1": b1, "w2": w2, "b2": b2,
            "w3": w3, "b3": b3, "w4": w4, "b4": b4}


def reference_forward(hidden_state, attention_mask, params):
    """Pure-JAX reference of the same math for a sanity check."""
    hid = hidden_state.astype(jnp.float32)
    mask = attention_mask.astype(jnp.float32)
    pooled = jnp.sum(hid * mask[:, :, None], axis=1) / jnp.sum(
        mask, axis=1, keepdims=True)
    h = jnp.maximum(pooled @ params["w1"] + params["b1"], 0.0)
    h = jnp.maximum(h @ params["w2"] + params["b2"], 0.0)
    h = jnp.maximum(h @ params["w3"] + params["b3"], 0.0)
    return h @ params["w4"] + params["b4"]


if __name__ == "__main__":
    # D=768 is fixed by the module (BERT hidden size).  B/S chosen small but
    # non-tile-multiple so both the no-padding adaptive path and the padded
    # multi-step reduction path are exercised.
    B, S, D = 12, 200, 768
    HIDDEN, LATENT = 32, 16

    key = jax.random.PRNGKey(0)
    k_hid, k_len, k_par = jax.random.split(key, 3)

    # Stand-in for the pretrained encoder's output hidden_state (bf16, as encoders emit).
    hidden_state = jax.random.normal(k_hid, (B, S, D), jnp.float32).astype(jnp.bfloat16)
    lengths = jax.random.randint(k_len, (B, 1), minval=1, maxval=S + 1)
    attention_mask = (jnp.arange(S)[None, :] < lengths).astype(jnp.float32)

    params = init_params(k_par, D, HIDDEN, LATENT)
    ref = reference_forward(hidden_state, attention_mask, params)

    # 1) Adaptive tiling path: full sequence per block, no wrapper padding copies.
    out = jax.block_until_ready(
        brownian_encoder_forward(hidden_state, attention_mask, params))
    assert out.shape == (B, LATENT)
    assert jnp.allclose(out, ref, atol=1e-3, rtol=1e-3), "adaptive-tile mismatch"

    # 2) Forced small tiles: exercises the multi-step sequence reduction and the
    #    batch/sequence padding path (padded rows/tokens are masked out).
    out_tiled = jax.block_until_ready(
        brownian_encoder_forward(hidden_state, attention_mask, params, tb=8, ts=128))
    assert jnp.allclose(out_tiled, ref, atol=1e-3, rtol=1e-3), "tiled mismatch"

    print("KERNEL_OK")
</pallas_src>

<mosaic_0001>
module attributes {stable_mosaic.version = 11 : i64} {
  func.func @brownian_head_kernel(%arg0: i32, %arg1: i32, %arg2: memref<12x200x768xbf16, #tpu.memory_space<vmem>>, %arg3: memref<12x200xf32, #tpu.memory_space<vmem>>, %arg4: memref<768x128xf32, #tpu.memory_space<vmem>>, %arg5: memref<1x128xf32, #tpu.memory_space<vmem>>, %arg6: memref<128x128xf32, #tpu.memory_space<vmem>>, %arg7: memref<1x128xf32, #tpu.memory_space<vmem>>, %arg8: memref<128x128xf32, #tpu.memory_space<vmem>>, %arg9: memref<1x128xf32, #tpu.memory_space<vmem>>, %arg10: memref<128x128xf32, #tpu.memory_space<vmem>>, %arg11: memref<1x128xf32, #tpu.memory_space<vmem>>, %arg12: memref<12x128xf32, #tpu.memory_space<vmem>>, %arg13: memref<12x768xf32, #tpu.memory_space<vmem>>, %arg14: memref<12x1xf32, #tpu.memory_space<vmem>>) attributes {dimension_semantics = [#tpu.dimension_semantics<parallel>, #tpu.dimension_semantics<arbitrary>], iteration_bounds = array<i64: 1, 1>, scalar_prefetch = 0 : i64, scratch_operands = 2 : i64, tpu.core_type = #tpu.core_type<tc>, window_params = [{transform_indices = @transform_0, window_bounds = array<i64: 12, 200, 768>}, {transform_indices = @transform_1, window_bounds = array<i64: 12, 200>}, {pipeline_mode = #tpu.pipeline_mode<synchronous>, transform_indices = @transform_2, window_bounds = array<i64: 768, 128>}, {pipeline_mode = #tpu.pipeline_mode<synchronous>, transform_indices = @transform_3, window_bounds = array<i64: 1, 128>}, {pipeline_mode = #tpu.pipeline_mode<synchronous>, transform_indices = @transform_4, window_bounds = array<i64: 128, 128>}, {pipeline_mode = #tpu.pipeline_mode<synchronous>, transform_indices = @transform_5, window_bounds = array<i64: 1, 128>}, {pipeline_mode = #tpu.pipeline_mode<synchronous>, transform_indices = @transform_6, window_bounds = array<i64: 128, 128>}, {pipeline_mode = #tpu.pipeline_mode<synchronous>, transform_indices = @transform_7, window_bounds = array<i64: 1, 128>}, {pipeline_mode = #tpu.pipeline_mode<synchronous>, transform_indices = @transform_8, window_bounds = array<i64: 128, 128>}, {pipeline_mode = #tpu.pipeline_mode<synchronous>, transform_indices = @transform_9, window_bounds = array<i64: 1, 128>}, {transform_indices = @transform_10, window_bounds = array<i64: 12, 128>}]} {
    %c0_i32 = arith.constant 0 : i32
    %0 = arith.cmpi eq, %arg1, %c0_i32 : i32
    %1 = arith.extui %0 : i1 to i32
    %c0_i32_0 = arith.constant 0 : i32
    %2 = arith.cmpi ne, %1, %c0_i32_0 : i32
    scf.if %2 {
      %cst_16 = arith.constant 0.000000e+00 : f32
      %20 = vector.broadcast %cst_16 : f32 to vector<12x768xf32>
      %c0_17 = arith.constant 0 : index
      %c0_18 = arith.constant 0 : index
      %21 = vector.load %arg13[%c0_17, %c0_18] : memref<12x768xf32, #tpu.memory_space<vmem>>, vector<12x768xf32>
      tpu.vector_store %arg13[%c0_17, %c0_18], %20 {strides = array<i32>} : memref<12x768xf32, #tpu.memory_space<vmem>>, vector<12x768xf32>,
      %cst_19 = arith.constant 0.000000e+00 : f32
      %22 = vector.broadcast %cst_19 : f32 to vector<12x1xf32>
      %c0_20 = arith.constant 0 : index
      %c0_21 = arith.constant 0 : index
      %23 = vector.load %arg14[%c0_20, %c0_21] : memref<12x1xf32, #tpu.memory_space<vmem>>, vector<12x1xf32>
      tpu.vector_store %arg14[%c0_20, %c0_21], %22 {strides = array<i32>} : memref<12x1xf32, #tpu.memory_space<vmem>>, vector<12x1xf32>,
    } else {
    }
    %c0 = arith.constant 0 : index
    %c0_1 = arith.constant 0 : index
    %c0_2 = arith.constant 0 : index
    %3 = vector.load %arg2[%c0, %c0_1, %c0_2] : memref<12x200x768xbf16, #tpu.memory_space<vmem>>, vector<12x200x768xbf16>
    %c0_3 = arith.constant 0 : index
    %c0_4 = arith.constant 0 : index
    %4 = vector.load %arg3[%c0_3, %c0_4] : memref<12x200xf32, #tpu.memory_space<vmem>>, vector<12x200xf32>
    %5 = arith.truncf %4 : vector<12x200xf32> to vector<12x200xbf16>
    %c0_5 = arith.constant 0 : index
    %c0_6 = arith.constant 0 : index
    %6 = vector.load %arg13[%c0_5, %c0_6] : memref<12x768xf32, #tpu.memory_space<vmem>>, vector<12x768xf32>
    %7 = vector.shape_cast %5 : vector<12x200xbf16> to vector<12x1x200xbf16>
    "tpu.trace_start"() <{level = 10 : i32, message = "bqs,bsd->bqd"}> : () -> ()
    %cst = arith.constant dense<0.000000e+00> : vector<12x1x768xf32>
    %8 = tpu.matmul %7, %3, %cst {dimension_numbers = #tpu.dot_dimension_numbers<[2], [1], [1], [2], [0, 0, 0, 1, 1, 2], [0], [0]>} : vector<12x1x200xbf16>, vector<12x200x768xbf16>, vector<12x1x768xf32> -> vector<12x1x768xf32>
    "tpu.trace_stop"() : () -> ()
    %9 = vector.shape_cast %8 : vector<12x1x768xf32> to vector<12x768xf32>
    %10 = arith.addf %6, %9 : vector<12x768xf32>
    %c0_7 = arith.constant 0 : index
    %c0_8 = arith.constant 0 : index
    %11 = vector.load %arg13[%c0_7, %c0_8] : memref<12x768xf32, #tpu.memory_space<vmem>>, vector<12x768xf32>
    tpu.vector_store %arg13[%c0_7, %c0_8], %10 {strides = array<i32>} : memref<12x768xf32, #tpu.memory_space<vmem>>, vector<12x768xf32>,
    %c0_9 = arith.constant 0 : index
    %c0_10 = arith.constant 0 : index
    %12 = vector.load %arg14[%c0_9, %c0_10] : memref<12x1xf32, #tpu.memory_space<vmem>>, vector<12x1xf32>
    %cst_11 = arith.constant dense<0.000000e+00> : vector<12xf32>
    %13 = vector.multi_reduction <add>, %4, %cst_11 [1] : vector<12x200xf32> to vector<12xf32>
    %14 = vector.shape_cast %13 : vector<12xf32> to vector<12x1xf32>
    %15 = arith.addf %12, %14 : vector<12x1xf32>
    %c0_12 = arith.constant 0 : index
    %c0_13 = arith.constant 0 : index
    %16 = vector.load %arg14[%c0_12, %c0_13] : memref<12x1xf32, #tpu.memory_space<vmem>>, vector<12x1xf32>
    tpu.vector_store %arg14[%c0_12, %c0_13], %15 {strides = array<i32>} : memref<12x1xf32, #tpu.memory_space<vmem>>, vector<12x1xf32>,
    %c0_i32_14 = arith.constant 0 : i32
    %17 = arith.cmpi eq, %arg1, %c0_i32_14 : i32
    %18 = arith.extui %17 : i1 to i32
    %c0_i32_15 = arith.constant 0 : i32
    %19 = arith.cmpi ne, %18, %c0_i32_15 : i32
    scf.if %19 {
      %c0_16 = arith.constant 0 : index
      %c0_17 = arith.constant 0 : index
      %20 = vector.load %arg14[%c0_16, %c0_17] : memref<12x1xf32, #tpu.memory_space<vmem>>, vector<12x1xf32>
      %cst_18 = arith.constant 9.99999997E-7 : f32
      %21 = vector.broadcast %cst_18 : f32 to vector<12x1xf32>
      %22 = arith.maximumf %20, %21 : vector<12x1xf32>
      %c0_19 = arith.constant 0 : index
      %c0_20 = arith.constant 0 : index
      %23 = vector.load %arg13[%c0_19, %c0_20] : memref<12x768xf32, #tpu.memory_space<vmem>>, vector<12x768xf32>
      %24 = vector.broadcast %22 : vector<12x1xf32> to vector<12x768xf32>
      %25 = arith.divf %23, %24 : vector<12x768xf32>
      %c0_21 = arith.constant 0 : index
      %c0_22 = arith.constant 0 : index
      %26 = vector.load %arg4[%c0_21, %c0_22] : memref<768x128xf32, #tpu.memory_space<vmem>>, vector<768x128xf32>
      %cst_23 = arith.constant dense<0.000000e+00> : vector<12x128xf32>
      %27 = tpu.matmul %25, %26, %cst_23 {dimension_numbers = #tpu.dot_dimension_numbers<[1], [0], [0], [1], [0, 0, 1, 1], [], []>} : vector<12x768xf32>, vector<768x128xf32>, vector<12x128xf32> -> vector<12x128xf32>
      %c0_24 = arith.constant 0 : index
      %c0_25 = arith.constant 0 : index
      %28 = vector.load %arg5[%c0_24, %c0_25] : memref<1x128xf32, #tpu.memory_space<vmem>>, vector<1x128xf32>
      %29 = vector.broadcast %28 : vector<1x128xf32> to vector<12x128xf32>
      %30 = arith.addf %27, %29 : vector<12x128xf32>
      %cst_26 = arith.constant 0.000000e+00 : f32
      %31 = vector.broadcast %cst_26 : f32 to vector<12x128xf32>
      %32 = arith.maximumf %30, %31 : vector<12x128xf32>
      %c0_27 = arith.constant 0 : index
      %c0_28 = arith.constant 0 : index
      %33 = vector.load %arg6[%c0_27, %c0_28] : memref<128x128xf32, #tpu.memory_space<vmem>>, vector<128x128xf32>
      %cst_29 = arith.constant dense<0.000000e+00> : vector<12x128xf32>
      %34 = tpu.matmul %32, %33, %cst_29 {dimension_numbers = #tpu.dot_dimension_numbers<[1], [0], [0], [1], [0, 0, 1, 1], [], []>} : vector<12x128xf32>, vector<128x128xf32>, vector<12x128xf32> -> vector<12x128xf32>
      %c0_30 = arith.constant 0 : index
      %c0_31 = arith.constant 0 : index
      %35 = vector.load %arg7[%c0_30, %c0_31] : memref<1x128xf32, #tpu.memory_space<vmem>>, vector<1x128xf32>
      %36 = vector.broadcast %35 : vector<1x128xf32> to vector<12x128xf32>
      %37 = arith.addf %34, %36 : vector<12x128xf32>
      %cst_32 = arith.constant 0.000000e+00 : f32
      %38 = vector.broadcast %cst_32 : f32 to vector<12x128xf32>
      %39 = arith.maximumf %37, %38 : vector<12x128xf32>
      %c0_33 = arith.constant 0 : index
      %c0_34 = arith.constant 0 : index
      %40 = vector.load %arg8[%c0_33, %c0_34] : memref<128x128xf32, #tpu.memory_space<vmem>>, vector<128x128xf32>
      %cst_35 = arith.constant dense<0.000000e+00> : vector<12x128xf32>
      %41 = tpu.matmul %39, %40, %cst_35 {dimension_numbers = #tpu.dot_dimension_numbers<[1], [0], [0], [1], [0, 0, 1, 1], [], []>} : vector<12x128xf32>, vector<128x128xf32>, vector<12x128xf32> -> vector<12x128xf32>
      %c0_36 = arith.constant 0 : index
      %c0_37 = arith.constant 0 : index
      %42 = vector.load %arg9[%c0_36, %c0_37] : memref<1x128xf32, #tpu.memory_space<vmem>>, vector<1x128xf32>
      %43 = vector.broadcast %42 : vector<1x128xf32> to vector<12x128xf32>
      %44 = arith.addf %41, %43 : vector<12x128xf32>
      %cst_38 = arith.constant 0.000000e+00 : f32
      %45 = vector.broadcast %cst_38 : f32 to vector<12x128xf32>
      %46 = arith.maximumf %44, %45 : vector<12x128xf32>
      %c0_39 = arith.constant 0 : index
      %c0_40 = arith.constant 0 : index
      %47 = vector.load %arg10[%c0_39, %c0_40] : memref<128x128xf32, #tpu.memory_space<vmem>>, vector<128x128xf32>
      %cst_41 = arith.constant dense<0.000000e+00> : vector<12x128xf32>
      %48 = tpu.matmul %46, %47, %cst_41 {dimension_numbers = #tpu.dot_dimension_numbers<[1], [0], [0], [1], [0, 0, 1, 1], [], []>} : vector<12x128xf32>, vector<128x128xf32>, vector<12x128xf32> -> vector<12x128xf32>
      %c0_42 = arith.constant 0 : index
      %c0_43 = arith.constant 0 : index
      %49 = vector.load %arg11[%c0_42, %c0_43] : memref<1x128xf32, #tpu.memory_space<vmem>>, vector<1x128xf32>
      %50 = vector.broadcast %49 : vector<1x128xf32> to vector<12x128xf32>
      %51 = arith.addf %48, %50 : vector<12x128xf32>
      %c0_44 = arith.constant 0 : index
      %c0_45 = arith.constant 0 : index
      %52 = vector.load %arg12[%c0_44, %c0_45] : memref<12x128xf32, #tpu.memory_space<vmem>>, vector<12x128xf32>
      tpu.vector_store %arg12[%c0_44, %c0_45], %51 {strides = array<i32>} : memref<12x128xf32, #tpu.memory_space<vmem>>, vector<12x128xf32>,
    } else {
    }
    return
  }
  func.func @transform_0(%arg0: i32, %arg1: i32) -> (i32, i32, i32) {
    %c0_i32 = arith.constant 0 : i32
    %c0_i32_0 = arith.constant 0 : i32
    return %arg0, %arg1, %c0_i32 : i32, i32, i32
  }
  func.func @transform_1(%arg0: i32, %arg1: i32) -> (i32, i32) {
    %c0_i32 = arith.constant 0 : i32
    return %arg0, %arg1 : i32, i32
  }
  func.func @transform_2(%arg0: i32, %arg1: i32) -> (i32, i32) {
    %c0_i32 = arith.constant 0 : i32
    %c0_i32_0 = arith.constant 0 : i32
    %c0_i32_1 = arith.constant 0 : i32
    return %c0_i32, %c0_i32_0 : i32, i32
  }
  func.func @transform_3(%arg0: i32, %arg1: i32) -> (i32, i32) {
    %c0_i32 = arith.constant 0 : i32
    %c0_i32_0 = arith.constant 0 : i32
    %c0_i32_1 = arith.constant 0 : i32
    return %c0_i32, %c0_i32_0 : i32, i32
  }
  func.func @transform_4(%arg0: i32, %arg1: i32) -> (i32, i32) {
    %c0_i32 = arith.constant 0 : i32
    %c0_i32_0 = arith.constant 0 : i32
    %c0_i32_1 = arith.constant 0 : i32
    return %c0_i32, %c0_i32_0 : i32, i32
  }
  func.func @transform_5(%arg0: i32, %arg1: i32) -> (i32, i32) {
    %c0_i32 = arith.constant 0 : i32
    %c0_i32_0 = arith.constant 0 : i32
    %c0_i32_1 = arith.constant 0 : i32
    return %c0_i32, %c0_i32_0 : i32, i32
  }
  func.func @transform_6(%arg0: i32, %arg1: i32) -> (i32, i32) {
    %c0_i32 = arith.constant 0 : i32
    %c0_i32_0 = arith.constant 0 : i32
    %c0_i32_1 = arith.constant 0 : i32
    return %c0_i32, %c0_i32_0 : i32, i32
  }
  func.func @transform_7(%arg0: i32, %arg1: i32) -> (i32, i32) {
    %c0_i32 = arith.constant 0 : i32
    %c0_i32_0 = arith.constant 0 : i32
    %c0_i32_1 = arith.constant 0 : i32
    return %c0_i32, %c0_i32_0 : i32, i32
  }
  func.func @transform_8(%arg0: i32, %arg1: i32) -> (i32, i32) {
    %c0_i32 = arith.constant 0 : i32
    %c0_i32_0 = arith.constant 0 : i32
    %c0_i32_1 = arith.constant 0 : i32
    return %c0_i32, %c0_i32_0 : i32, i32
  }
  func.func @transform_9(%arg0: i32, %arg1: i32) -> (i32, i32) {
    %c0_i32 = arith.constant 0 : i32
    %c0_i32_0 = arith.constant 0 : i32
    %c0_i32_1 = arith.constant 0 : i32
    return %c0_i32, %c0_i32_0 : i32, i32
  }
  func.func @transform_10(%arg0: i32, %arg1: i32) -> (i32, i32) {
    %c0_i32 = arith.constant 0 : i32
    %c0_i32_0 = arith.constant 0 : i32
    return %arg0, %c0_i32 : i32, i32
  }
}

</mosaic_0001>

<bundles_post_ra>
// kernel: tpu_custom_call.1
= control target key start
LH: loop header
LB: loop body
LE: loop exit
PB: predicated region body
PF: predicated region fallthrough
CT: control target
= control target key end

     0   :  { %15 = vsyncpa [#allocation5], 0  ;;  %s12429_s0 = inlined_call_operand.hbm [shape: bf16[12,200,768], index: 0, kind: input, shape index: {}]   ;;  %s12430_s1 = inlined_call_operand.hbm [shape: f32[12,200], index: 1, kind: input, shape index: {}]   ;;  %s12431_s2 = inlined_call_operand.hbm [shape: f32[768,128], index: 2, kind: input, shape index: {}]   ;;  %s12432_s3 = inlined_call_operand.hbm [shape: f32[1,128], index: 3, kind: input, shape index: {}]   ;;  %s12433_s4 = inlined_call_operand.hbm [shape: f32[128,128], index: 4, kind: input, shape index: {}]   ;;  %s12434_s5 = inlined_call_operand.hbm [shape: f32[1,128], index: 5, kind: input, shape index: {}]   ;;  %s12435_s6 = inlined_call_operand.hbm [shape: f32[128,128], index: 6, kind: input, shape index: {}]   ;;  %s12436_s7 = inlined_call_operand.hbm [shape: f32[1,128], index: 7, kind: input, shape index: {}]   ;;  %s12437_s8 = inlined_call_operand.hbm [shape: f32[128,128], index: 8, kind: input, shape index: {}]   ;;  %s12438_s9 = inlined_call_operand.hbm [shape: f32[1,128], index: 9, kind: input, shape index: {}]   ;;  %s12439_s10 = inlined_call_operand.hbm [shape: f32[12,128], index: 10, kind: output, shape index: {}]  }
   0x1   :  { %16 = vsyncpa [#allocation8], 0 }
   0x2   :  { %17 = vsyncpa [#allocation11], 0 }
   0x3   :  { %18 = vsyncpa [#allocation14], 0 }
   0x4   :  { %19 = vsyncpa [#allocation17], 0 }
   0x5   :  { %20 = vsyncpa [#allocation20], 0 }
   0x6   :  { %21 = vsyncpa [#allocation6], 0  ;;  %s11600_s13 = smov [#allocation7]   ;;  %s11344_s17 = scalar_lea.hbm %s12430_s1, 512 }
   0x7   :  { %s39_s14 = sshll.u32 %s11600_s13, 4  ;;  %p11345_p0 = scmp.ne.s32.totalorder %s12430_s1, %s11344_s17  ;;  %s40_s14 = int_to_ptr.vmem [resolvable:$true] %s39_s14 }
   0x8   :  { %p11348_p1 = scmp.lt.u32.totalorder %s11344_s17, %s12430_s1 }
   0xa   :  { %p11350_p2 = pnand %p11348_p1, %p11345_p0 }
   0xc   :  { %11353 = shalt.err (!%p11350_p2)
}
   0xd   :  { %s11354_s22 = scalar_lea.vmem %s40_s14, 512  ;;  %p11359_p4 = scmp.lt.s32.totalorder %s40_s14, %s40_s14 }
   0xe   :  { %p11355_p3 = scmp.ne.s32.totalorder %s40_s14, %s11354_s22  ;;  %p11360_p5 = scmp.lt.s32.totalorder %s11354_s22, %s11354_s22 }
  0x10   :  { %p11361_p6 = por %p11360_p5, %p11359_p4 }
  0x12   :  { %p11362_p7 = pnand %p11361_p6, %p11355_p3 }
  0x14   :  { %11365 = shalt.err (!%p11362_p7)
}
  0x15   :  { %s11601_s23 = smov 256   ;;  %s11602_s24 = smov 16  }
  0x16   :  { %45 = dma.hbm_to_vmem [thread:$0]  %s12430_s1, 512, %s40_s14, [#allocation8], %s11601_s23, %s11601_s23, %s11602_s24  }
  0x17   :  { %s11603_s27 = smov [#allocation10]   ;;  %s11604_s29 = smov [#allocation13]  }
  0x18   :  { %s64_s28 = sshll.u32 %s11603_s27, 4  ;;  %s86_s30 = sshll.u32 %s11604_s29, 4  ;;  %s65_s28 = int_to_ptr.vmem [resolvable:$true] %s64_s28  ;;  %s87_s30 = int_to_ptr.vmem [resolvable:$true] %s86_s30 }
  0x19   :  { %s11366_s13 = scalar_lea.hbm %s12432_s3, 16 }
  0x1a   :  { %p11367_p8 = scmp.ne.s32.totalorder %s12432_s3, %s11366_s13  ;;  %p11370_p9 = scmp.lt.u32.totalorder %s11366_s13, %s12432_s3 }
  0x1c   :  { %p11372_p10 = pnand %p11370_p9, %p11367_p8 }
  0x1e   :  { %11375 = shalt.err (!%p11372_p10)
}
  0x1f   :  { %s11376_s1 = scalar_lea.vmem %s65_s28, 16  ;;  %s11380_s14 = scalar_lea.vmem %s65_s28, 32 }
  0x20   :  { %p11377_p11 = scmp.ne.s32.totalorder %s65_s28, %s11376_s1  ;;  %p11381_p12 = scmp.lt.s32.totalorder %s65_s28, %s65_s28 }
  0x21   :  { %p11382_p13 = scmp.lt.s32.totalorder %s11380_s14, %s11376_s1 }
  0x23   :  { %p11383_p0 = por %p11382_p13, %p11381_p12 }
  0x25   :  { %p11384_p1 = pnand %p11383_p0, %p11377_p11 }
  0x27   :  { %11387 = shalt.err (!%p11384_p1)
}
  0x28   :  { %67 = dma.hbm_to_vmem [thread:$0]  %s12432_s3, 16, %s65_s28, [#allocation11]  }
  0x29   :  { %s11388_s23 = scalar_lea.hbm %s12434_s5, 16 }
  0x2a   :  { %p11389_p2 = scmp.ne.s32.totalorder %s12434_s5, %s11388_s23  ;;  %p11392_p3 = scmp.lt.u32.totalorder %s11388_s23, %s12434_s5 }
  0x2c   :  { %p11394_p4 = pnand %p11392_p3, %p11389_p2 }
  0x2e   :  { %11397 = shalt.err (!%p11394_p4)
}
  0x2f   :  { %s11398_s29 = scalar_lea.vmem %s87_s30, 16  ;;  %s11402_s11 = scalar_lea.vmem %s87_s30, 32 }
  0x30   :  { %p11399_p5 = scmp.ne.s32.totalorder %s87_s30, %s11398_s29  ;;  %p11403_p6 = scmp.lt.s32.totalorder %s87_s30, %s87_s30 }
  0x31   :  { %p11404_p7 = scmp.lt.s32.totalorder %s11402_s11, %s11398_s29 }
  0x33   :  { %p11405_p8 = por %p11404_p7, %p11403_p6 }
  0x35   :  { %p11406_p9 = pnand %p11405_p8, %p11399_p5 }
  0x37   :  { %11409 = shalt.err (!%p11406_p9)
}
  0x38   :  { %89 = dma.hbm_to_vmem [thread:$0]  %s12434_s5, 16, %s87_s30, [#allocation14]  }
  0x39   :  { %s11605_s12 = smov [#allocation16]   ;;  %s11606_s15 = smov [#allocation4]  }
  0x3a   :  { %s108_s13 = sshll.u32 %s11605_s12, 4  ;;  %s27_s16 = sshll.u32 %s11606_s15, 4  ;;  %s109_s13 = int_to_ptr.vmem [resolvable:$true] %s108_s13  ;;  %s28_s16 = int_to_ptr.vmem [resolvable:$true] %s27_s16 }
  0x3b   :  { %s11410_s1 = scalar_lea.hbm %s12436_s7, 16 }
  0x3c   :  { %p11411_p10 = scmp.ne.s32.totalorder %s12436_s7, %s11410_s1  ;;  %p11414_p11 = scmp.lt.u32.totalorder %s11410_s1, %s12436_s7 }
  0x3e   :  { %p11416_p12 = pnand %p11414_p11, %p11411_p10 }
  0x40   :  { %11419 = shalt.err (!%p11416_p12)
}
  0x41   :  { %s11420_s5 = scalar_lea.vmem %s109_s13, 16  ;;  %s11424_s30 = scalar_lea.vmem %s109_s13, 32 }
  0x42   :  { %p11421_p13 = scmp.ne.s32.totalorder %s109_s13, %s11420_s5  ;;  %p11425_p0 = scmp.lt.s32.totalorder %s109_s13, %s109_s13 }
  0x43   :  { %p11426_p1 = scmp.lt.s32.totalorder %s11424_s30, %s11420_s5 }
  0x45   :  { %p11427_p2 = por %p11426_p1, %p11425_p0 }
  0x47   :  { %p11428_p3 = pnand %p11427_p2, %p11421_p13 }
  0x49   :  { %11431 = shalt.err (!%p11428_p3)
}
  0x4a   :  { %111 = dma.hbm_to_vmem [thread:$0]  %s12436_s7, 16, %s109_s13, [#allocation17]  }
  0x4b   :  { %s11432_s26 = scalar_lea.hbm %s12429_s0, 115200 }
  0x4c   :  { %p11433_p4 = scmp.ne.s32.totalorder %s12429_s0, %s11432_s26  ;;  %p11436_p5 = scmp.lt.u32.totalorder %s11432_s26, %s12429_s0 }
  0x4e   :  { %p11438_p6 = pnand %p11436_p5, %p11433_p4 }
  0x50   :  { %11441 = shalt.err (!%p11438_p6)
}
  0x51   :  { %s11442_s28 = scalar_lea.vmem %s28_s16, 115200  ;;  %p11447_p8 = scmp.lt.s32.totalorder %s28_s16, %s28_s16 }
  0x52   :  { %p11443_p7 = scmp.ne.s32.totalorder %s28_s16, %s11442_s28  ;;  %p11448_p9 = scmp.lt.s32.totalorder %s11442_s28, %s11442_s28 }
  0x54   :  { %p11449_p10 = por %p11448_p9, %p11447_p8 }
  0x56   :  { %p11450_p11 = pnand %p11449_p10, %p11443_p7 }
  0x58   :  { %11453 = shalt.err (!%p11450_p11)
}
  0x59   :  { %s11607_s7 = smov 384   ;;  %s11608_s12 = smov 24  }
  0x5a   :  { %33 = dma.hbm_to_vmem [thread:$0]  %s12429_s0, 115200, %s28_s16, [#allocation5], %s11607_s7, %s11607_s7, %s11608_s12  }
  0x5b   :  { %s11609_s17 = smov [#allocation9]   ;;  %s11454_s19 = scalar_lea.hbm %s12431_s2, 12288 }
  0x5c   :  { %s51_s18 = sshll.u32 %s11609_s17, 4  ;;  %p11455_p12 = scmp.ne.s32.totalorder %s12431_s2, %s11454_s19  ;;  %s52_s18 = int_to_ptr.vmem [resolvable:$true] %s51_s18 }
  0x5d   :  { %p11458_p13 = scmp.lt.u32.totalorder %s11454_s19, %s12431_s2 }
  0x5f   :  { %p11460_p0 = pnand %p11458_p13, %p11455_p12 }
  0x61   :  { %11463 = shalt.err (!%p11460_p0)
}
  0x62   :  { %s11464_s22 = scalar_lea.vmem %s52_s18, 12288  ;;  %p11469_p2 = scmp.lt.s32.totalorder %s52_s18, %s52_s18 }
  0x63   :  { %p11465_p1 = scmp.ne.s32.totalorder %s52_s18, %s11464_s22  ;;  %p11470_p3 = scmp.lt.s32.totalorder %s11464_s22, %s11464_s22 }
  0x65   :  { %p11471_p4 = por %p11470_p3, %p11469_p2 }
  0x67   :  { %p11472_p5 = pnand %p11471_p4, %p11465_p1 }
  0x69   :  { %11475 = shalt.err (!%p11472_p5)
}
  0x6a   :  { %s11610_s0 = smov 128   ;;  %s11611_s16 = smov 8  }
  0x6b   :  { %57 = dma.hbm_to_vmem [thread:$0]  %s12431_s2, 12288, %s52_s18, [#allocation8], %s11610_s0, %s11610_s0, %s11611_s16  }
  0x6c   :  { %s11612_s25 = smov [#allocation12]   ;;  %s11613_s27 = smov [#allocation15]  }
  0x6d   :  { %s73_s26 = sshll.u32 %s11612_s25, 4  ;;  %s95_s29 = sshll.u32 %s11613_s27, 4  ;;  %s74_s26 = int_to_ptr.vmem [resolvable:$true] %s73_s26  ;;  %s11750_s29 = int_to_ptr.vmem [resolvable:$true] %s95_s29 }
  0x6e   :  { %s11476_s28 = scalar_lea.hbm %s12433_s4, 2048 }
  0x6f   :  { %p11477_p6 = scmp.ne.s32.totalorder %s12433_s4, %s11476_s28  ;;  %p11480_p7 = scmp.lt.u32.totalorder %s11476_s28, %s12433_s4 }
  0x71   :  { %p11482_p8 = pnand %p11480_p7, %p11477_p6 }
  0x73   :  { %11485 = shalt.err (!%p11482_p8)
}
  0x74   :  { %s11486_s2 = scalar_lea.vmem %s74_s26, 2048  ;;  %p11491_p10 = scmp.lt.s32.totalorder %s74_s26, %s74_s26 }
  0x75   :  { %p11487_p9 = scmp.ne.s32.totalorder %s74_s26, %s11486_s2  ;;  %p11492_p11 = scmp.lt.s32.totalorder %s11486_s2, %s11486_s2 }
  0x77   :  { %p11493_p12 = por %p11492_p11, %p11491_p10 }
  0x79   :  { %p11494_p13 = pnand %p11493_p12, %p11487_p9 }
  0x7b   :  { %11497 = shalt.err (!%p11494_p13)
}
  0x7c   :  { %79 = dma.hbm_to_vmem [thread:$0]  %s12433_s4, 2048, %s74_s26, [#allocation11], %s11610_s0, %s11610_s0, %s11611_s16  }
  0x7d   :  { %s11498_s19 = scalar_lea.hbm %s12435_s6, 2048 }
  0x7e   :  { %p11499_p0 = scmp.ne.s32.totalorder %s12435_s6, %s11498_s19  ;;  %p11502_p1 = scmp.lt.u32.totalorder %s11498_s19, %s12435_s6 }
  0x80   :  { %p11504_p2 = pnand %p11502_p1, %p11499_p0 }
  0x82   :  { %11507 = shalt.err (!%p11504_p2)
}
  0x83   :  { %s11508_s22 = scalar_lea.vmem %s11750_s29, 2048  ;;  %p11513_p4 = scmp.lt.s32.totalorder %s11750_s29, %s11750_s29 }
  0x84   :  { %p11509_p3 = scmp.ne.s32.totalorder %s11750_s29, %s11508_s22  ;;  %p11514_p5 = scmp.lt.s32.totalorder %s11508_s22, %s11508_s22 }
  0x86   :  { %p11515_p6 = por %p11514_p5, %p11513_p4 }
  0x88   :  { %p11516_p7 = pnand %p11515_p6, %p11509_p3 }
  0x8a   :  { %11519 = shalt.err (!%p11516_p7)
}
  0x8b   :  { %101 = dma.hbm_to_vmem [thread:$0]  %s12435_s6, 2048, %s11750_s29, [#allocation14], %s11610_s0, %s11610_s0, %s11611_s16  }
  0x8c   :  { %s11614_s24 = smov [#allocation18]   ;;  %s11615_s26 = smov [#allocation19]  }
  0x8d   :  { %s117_s25 = sshll.u32 %s11614_s24, 4  ;;  %s130_s27 = sshll.u32 %s11615_s26, 4  ;;  %s118_s25 = int_to_ptr.vmem [resolvable:$true] %s117_s25  ;;  %s131_s27 = int_to_ptr.vmem [resolvable:$true] %s130_s27 }
  0x8e   :  { %s11520_s28 = scalar_lea.hbm %s12437_s8, 2048 }
  0x8f   :  { %p11521_p8 = scmp.ne.s32.totalorder %s12437_s8, %s11520_s28  ;;  %p11524_p9 = scmp.lt.u32.totalorder %s11520_s28, %s12437_s8 }
  0x91   :  { %p11526_p10 = pnand %p11524_p9, %p11521_p8 }
  0x93   :  { %11529 = shalt.err (!%p11526_p10)
}
  0x94   :  { %s11530_s6 = scalar_lea.vmem %s118_s25, 2048  ;;  %p11535_p12 = scmp.lt.s32.totalorder %s118_s25, %s118_s25 }
  0x95   :  { %p11531_p11 = scmp.ne.s32.totalorder %s118_s25, %s11530_s6  ;;  %p11536_p13 = scmp.lt.s32.totalorder %s11530_s6, %s11530_s6 }
  0x97   :  { %p11537_p0 = por %p11536_p13, %p11535_p12 }
  0x99   :  { %p11538_p1 = pnand %p11537_p0, %p11531_p11 }
  0x9b   :  { %11541 = shalt.err (!%p11538_p1)
}
  0x9c   :  { %123 = dma.hbm_to_vmem [thread:$0]  %s12437_s8, 2048, %s118_s25, [#allocation17], %s11610_s0, %s11610_s0, %s11611_s16  }
  0x9d   :  { %s11542_s1 = scalar_lea.hbm %s12438_s9, 16 }
  0x9e   :  { %p11543_p2 = scmp.ne.s32.totalorder %s12438_s9, %s11542_s1  ;;  %p11546_p3 = scmp.lt.u32.totalorder %s11542_s1, %s12438_s9 }
  0xa0   :  { %p11548_p4 = pnand %p11546_p3, %p11543_p2 }
  0xa2   :  { %11551 = shalt.err (!%p11548_p4)
}
  0xa3   :  { %s11552_s5 = scalar_lea.vmem %s131_s27, 16  ;;  %s11556_s30 = scalar_lea.vmem %s131_s27, 32 }
  0xa4   :  { %p11553_p5 = scmp.ne.s32.totalorder %s131_s27, %s11552_s5  ;;  %p11557_p6 = scmp.lt.s32.totalorder %s131_s27, %s131_s27 }
  0xa5   :  { %p11558_p7 = scmp.lt.s32.totalorder %s11556_s30, %s11552_s5 }
  0xa7   :  { %p11559_p8 = por %p11558_p7, %p11557_p6 }
  0xa9   :  { %p11560_p9 = pnand %p11559_p8, %p11553_p5 }
  0xab   :  { %11563 = shalt.err (!%p11560_p9)
}
  0xac   :  { %133 = dma.hbm_to_vmem [thread:$0]  %s12438_s9, 16, %s131_s27, [#allocation20]  }
  0xad   :  { %11586 = dma.done.wait [#allocation5], 115200  }
  0xae   :  { %11587 = vsyncadd [#allocation5], 4294852096 }
  0xaf   :  { %11588 = dma.done.wait [#allocation8], 12800  }
  0xb0   :  { %11589 = vsyncadd [#allocation8], 4294954496 }
  0xb1   :  { %11590 = dma.done.wait [#allocation11], 2064  }
  0xb2   :  { %11591 = vsyncadd [#allocation11], 4294965232 }
  0xb3   :  { %11592 = dma.done.wait [#allocation14], 2064  }
  0xb4   :  { %11593 = vsyncadd [#allocation14], 4294965232 }
  0xb5   :  { %11594 = dma.done.wait [#allocation17], 2064  }
  0xb6   :  { %11595 = vsyncadd [#allocation17], 4294965232 }
  0xb7   :  { %11596 = dma.done.wait [#allocation20], 16  }
  0xb8   :  { %11597 = vsyncadd [#allocation20], 4294967280  ;;  %v9970_v0 = vld [vmem:[#allocation4 + $0x4] ss:$24 sps:$4 sm:$0xff]   ;;  %v9974_v2 = vld [vmem:[#allocation4] ss:$24 sps:$4 sm:$0xff]   ;;  %v1110_v31 = vlaneseq }
  0xb9   :  { %v9972_v1 = vld [vmem:[#allocation4 + $0xc] ss:$24 sps:$4 sm:$0xff]   ;;  %1573 = vmatprep.subr.bf16.mxu0 %v9970_v0  ;;  %v9975_v3 = vld [vmem:[#allocation4 + $0x8] ss:$24 sps:$4 sm:$0xff]   ;;  %v9978_v5 = vld [vmem:[#allocation4 + $0x3c] ss:$24 sps:$4 sm:$0xff]  }
  0xba   :  { %1614 = vmatprep.subr.bf16.mxu1 %v9972_v1  ;;  %v9976_v4 = vld [vmem:[#allocation4 + $0x34] ss:$24 sps:$4 sm:$0xff]   ;;  %1574 = vmatpush1.bf16.msra.mxu0 %v9974_v2  ;;  %v9980_v6 = vld [vmem:[#allocation4 + $0x30] ss:$24 sps:$4 sm:$0xff]   ;;  %v9982_v8 = vld [vmem:[#allocation4 + $0x64] ss:$24 sps:$4 sm:$0xff]  }
  0xbb   :  { %1615 = vmatpush1.bf16.msra.mxu1 %v9975_v3  ;;  %1575 = vmatprep.subr.bf16.mxu0 %v9976_v4  ;;  %v9981_v7 = vld [vmem:[#allocation4 + $0x38] ss:$24 sps:$4 sm:$0xff]   ;;  %v9984_v9 = vld [vmem:[#allocation4 + $0x6c] ss:$24 sps:$4 sm:$0xff]   ;;  %v9987_v11 = vld [vmem:[#allocation4 + $0x68] ss:$24 sps:$4 sm:$0xff]  }
  0xbc   :  { %1616 = vmatprep.subr.bf16.mxu1 %v9978_v5  ;;  %v9986_v10 = vld [vmem:[#allocation4 + $0x60] ss:$24 sps:$4 sm:$0xff]   ;;  %v9988_v12 = vld [vmem:[#allocation4 + $0x94] ss:$24 sps:$4 sm:$0xff]   ;;  %v9992_v14 = vld [vmem:[#allocation4 + $0x90] ss:$24 sps:$4 sm:$0xff]  }
  0xbd   :  { %v9990_v13 = vld [vmem:[#allocation4 + $0x9c] ss:$24 sps:$4 sm:$0xff]   ;;  %v9993_v15 = vld [vmem:[#allocation4 + $0x98] ss:$24 sps:$4 sm:$0xff]   ;;  %v9996_v17 = vld [vmem:[#allocation4 + $0xcc] ss:$24 sps:$4 sm:$0xff]  }
  0xbe   :  { %1576 = vmatpush1.bf16.msra.mxu0 %v9980_v6  ;;  %v9994_v16 = vld [vmem:[#allocation4 + $0xc4] ss:$24 sps:$4 sm:$0xff]   ;;  %v9998_v18 = vld [vmem:[#allocation4 + $0xc0] ss:$24 sps:$4 sm:$0xff]   ;;  %v10000_v20 = vld [vmem:[#allocation4 + $0xf4] ss:$24 sps:$4 sm:$0xff]  }
  0xbf   :  { %1617 = vmatpush1.bf16.msra.mxu1 %v9981_v7  ;;  %1577 = vmatprep.subr.bf16.mxu0 %v9982_v8  ;;  %v9999_v19 = vld [vmem:[#allocation4 + $0xc8] ss:$24 sps:$4 sm:$0xff]   ;;  %v10002_v21 = vld [vmem:[#allocation4 + $0xfc] ss:$24 sps:$4 sm:$0xff]   ;;  %v10005_v23 = vld [vmem:[#allocation4 + $0xf8] ss:$24 sps:$4 sm:$0xff]  }
  0xc0   :  { %1618 = vmatprep.subr.bf16.mxu1 %v9984_v9  ;;  %v10004_v22 = vld [vmem:[#allocation4 + $0xf0] ss:$24 sps:$4 sm:$0xff]   ;;  %v10006_v24 = vld [vmem:[#allocation4 + $0x124] ss:$24 sps:$4 sm:$0xff]   ;;  %v10010_v26 = vld [vmem:[#allocation4 + $0x120] ss:$24 sps:$4 sm:$0xff]  }
  0xc1   :  { %v10008_v25 = vld [vmem:[#allocation4 + $0x12c] ss:$24 sps:$4 sm:$0xff]   ;;  %v10011_v27 = vld [vmem:[#allocation4 + $0x128] ss:$24 sps:$4 sm:$0xff]   ;;  %v11616_v29 = vmov 1966171168  }
  0xc2   :  { %1578 = vmatpush1.bf16.msra.mxu0 %v9986_v10  ;;  %v10012_v28 = vld [vmem:[#allocation4 + $0x154] ss:$24 sps:$4 sm:$0xff]   ;;  %v1108_v30 = vunpack.c.l.s4 %v11616_v29  ;;  %v10016_v33 = vld [vmem:[#allocation4 + $0x150] ss:$24 sps:$4 sm:$0xff]   ;;  %v10018_v35 = vld [vmem:[#allocation4 + $0x184] ss:$24 sps:$4 sm:$0xff]  }
  0xc3   :  { %1619 = vmatpush1.bf16.msra.mxu1 %v9987_v11  ;;  %1579 = vmatprep.subr.bf16.mxu0 %v9988_v12  ;;  %v10014_v32 = vld [vmem:[#allocation4 + $0x15c] ss:$24 sps:$4 sm:$0xff]   ;;  %v10017_v34 = vld [vmem:[#allocation4 + $0x158] ss:$24 sps:$4 sm:$0xff]   ;;  %v1111_v37 = vshrl.u32 %v1110_v31, 7  ;;  %v1085_v43 = vld [vmem:[#allocation7] sm:$0xff] }
  0xc4   :  { %1620 = vmatprep.subr.bf16.mxu1 %v9990_v13  ;;  %v1109_v36 = vunpack.c.0.s8 %v1108_v30  ;;  %v10020_v38 = vld [vmem:[#allocation4 + $0x18c] ss:$24 sps:$4 sm:$0xff]   ;;  %v10022_v39 = vld [vmem:[#allocation4 + $0x180] ss:$24 sps:$4 sm:$0xff]   ;;  %v10026_v42 = vld [vmem:[#allocation4 + $0x1bc] ss:$24 sps:$4 sm:$0xff]  }
  0xc5   :  { %v10023_v40 = vld [vmem:[#allocation4 + $0x188] ss:$24 sps:$4 sm:$0xff]   ;;  %v10024_v41 = vld [vmem:[#allocation4 + $0x1b4] ss:$24 sps:$4 sm:$0xff]   ;;  %v10029_v48 = vld [vmem:[#allocation4 + $0x1b8] ss:$24 sps:$4 sm:$0xff]  }
  0xc6   :  { %1580 = vmatpush1.bf16.msra.mxu0 %v9992_v14  ;;  %v11814_v44 = vsub.s32 %v1109_v36, %v1111_v37  ;;  %v1086_v45 = vld [vmem:[#allocation7 + $0x8] sm:$0xff]  ;;  %v10030_v49 = vld [vmem:[#allocation4 + $0x1e4] ss:$24 sps:$4 sm:$0xff]   ;;  %v10034_v52 = vld [vmem:[#allocation4 + $0x1e0] ss:$24 sps:$4 sm:$0xff]   ;;  %v11823_v54 = vsub.s32 1, %v1111_v37 }
  0xc7   :  { %1621 = vmatpush1.bf16.msra.mxu1 %v9993_v15  ;;  %1581 = vmatprep.subr.bf16.mxu0 %v9994_v16  ;;  %v8463_v46 = vpack.c.bf16 %v1086_v45, %v1085_v43  ;;  %v10028_v47 = vld [vmem:[#allocation4 + $0x1b0] ss:$24 sps:$4 sm:$0xff]   ;;  %v10032_v51 = vld [vmem:[#allocation4 + $0x1ec] ss:$24 sps:$4 sm:$0xff]   ;;  %v10038_v57 = vld [vmem:[#allocation4 + $0x21c] ss:$24 sps:$4 sm:$0xff]  }
  0xc8   :  { %1622 = vmatprep.subr.bf16.mxu1 %v9996_v17  ;;  %v10035_v55 = vld [vmem:[#allocation4 + $0x1e8] ss:$24 sps:$4 sm:$0xff]   ;;  %v10036_v56 = vld [vmem:[#allocation4 + $0x214] ss:$24 sps:$4 sm:$0xff]   ;;  %vm1550_vm0 = vcmask 588800   ;;  %vm1554_vm1 = vcmask 1043456  }
  0xc9   :  { %v11817_v50 = vrot.slane %v8463_v46, %v11814_v44  ;;  %v257_v59 = vld [vmem:[#allocation4 + $0x240] sm:$0xff]  ;;  %v258_v60 = vld [vmem:[#allocation4 + $0x248] sm:$0xff]  ;;  %v10041_v63 = vld [vmem:[#allocation4 + $0x218] ss:$24 sps:$4 sm:$0xff]   ;;  %v11831_v5 = vsub.s32 0, %v1111_v37  ;;  %vm7588_vm2 = vcmask 1041409  }
  0xca   :  { %1582 = vmatpush1.bf16.msra.mxu0 %v9998_v18  ;;  %v10040_v62 = vld [vmem:[#allocation4 + $0x210] ss:$24 sps:$4 sm:$0xff]   ;;  %v8539_v0 = vcombine.high %v257_v59, %v257_v59  ;;  %v8541_v1 = vcombine.high %v258_v60, %v258_v60  ;;  %v8538_v2 = vcombine.low %v257_v59, %v257_v59  ;;  %v8540_v3 = vcombine.low %v258_v60, %v258_v60  ;;  %v10048_v6 = vld [vmem:[#allocation4 + $0x14] ss:$24 sps:$4 sm:$0xff]   ;;  %v10054_v14 = vld [vmem:[#allocation4 + $0x44] ss:$24 sps:$4 sm:$0xff]  }
  0xcb   :  { %1623 = vmatpush1.bf16.msra.mxu1 %v9999_v19  ;;  %1583 = vmatprep.subr.bf16.mxu0 %v10000_v20  ;;  %v11821_v53 = vrot.slane %v11817_v50, %v11814_v44  ;;  %v10051_v9 = vld [vmem:[#allocation4 + $0x25c] ss:$24 sps:$4 sm:$0xff]   ;;  %v10046_v12 = vld [vmem:[#allocation4 + $0x10] ss:$24 sps:$4 sm:$0xff]   ;;  %v10057_v15 = vld [vmem:[#allocation4 + $0x28c] ss:$24 sps:$4 sm:$0xff]  }
  0xcc   :  { %1624 = vmatprep.subr.bf16.mxu1 %v10002_v21  ;;  %v1556_v7 = vsel %vm1554_vm1, %v8538_v2, 0  ;;  %v1562_v8 = vsel %vm1554_vm1, %v8540_v3, 0  ;;  %v10049_v13 = vld [vmem:[#allocation4 + $0x258] ss:$24 sps:$4 sm:$0xff]   ;;  %v10055_v18 = vld [vmem:[#allocation4 + $0x288] ss:$24 sps:$4 sm:$0xff]  }
  0xcd   :  { %v8465_v58 = vpack.i.b16 %v11821_v53, %v11821_v53  ;;  %v1154_v4 = vunpack.i.h.s16 %v11821_v53  ;;  %v10052_v17 = vld [vmem:[#allocation4 + $0x40] ss:$24 sps:$4 sm:$0xff]   ;;  %v10060_v19 = vld [vmem:[#allocation4 + $0x74] ss:$24 sps:$4 sm:$0xff]   ;;  %v10058_v21 = vld [vmem:[#allocation4 + $0x70] ss:$24 sps:$4 sm:$0xff]  }
  0xce   :  { %1584 = vmatpush1.bf16.msra.mxu0 %v10004_v22  ;;  %v10063_v20 = vld [vmem:[#allocation4 + $0x2bc] ss:$24 sps:$4 sm:$0xff]   ;;  %v10061_v22 = vld [vmem:[#allocation4 + $0x2b8] ss:$24 sps:$4 sm:$0xff]   ;;  %v10117_v60 = vld [vmem:[#allocation4 + $0x46c] ss:$24 sps:$4 sm:$0xff]  }
  0xcf   :  { %1625 = vmatpush1.bf16.msra.mxu1 %v10005_v23  ;;  %1585 = vmatprep.subr.bf16.mxu0 %v10006_v24  ;;  %v1173_v61 = vrot.slane %v8465_v58, %v11823_v54  ;;  %v11837_v10 = vpack.i.b16 %v1154_v4, %v1154_v4  ;;  %v11840_v11 = vrot.slane %v8465_v58, %v11831_v5  ;;  %v10066_v23 = vld [vmem:[#allocation4 + $0xa4] ss:$24 sps:$4 sm:$0xff]   ;;  %v10070_v29 = vld [vmem:[#allocation4 + $0xd0] ss:$24 sps:$4 sm:$0xff]   ;;  %v10096_v43 = vld [vmem:[#allocation4 + $0x194] ss:$24 sps:$4 sm:$0xff]  }
  0xd0   :  { %1626 = vmatprep.subr.bf16.mxu1 %v10008_v25  ;;  %v10069_v24 = vld [vmem:[#allocation4 + $0x2ec] ss:$24 sps:$4 sm:$0xff]   ;;  %v10064_v25 = vld [vmem:[#allocation4 + $0xa0] ss:$24 sps:$4 sm:$0xff]   ;;  %v10087_v36 = vld [vmem:[#allocation4 + $0x37c] ss:$24 sps:$4 sm:$0xff]  }
  0xd1   :  { %8545 = vmatprep.mubr.msk.bf16.mxu0 %vm1550_vm0, %v1173_v61  ;;  %8547 = vmatprep.mubr.msk.bf16.mxu1 %vm1550_vm0, %v1173_v61  ;;  %v11844_v16 = vrot.slane %v11837_v10, %v11823_v54  ;;  %v10073_v30 = vld [vmem:[#allocation4 + $0x318] ss:$24 sps:$4 sm:$0xff]   ;;  %v10078_v31 = vld [vmem:[#allocation4 + $0x104] ss:$24 sps:$4 sm:$0xff]   ;;  %vm7591_vm3 = vcmask 1042434   ;;  %vm7594_vm4 = vcmask 1043459  }
  0xd2   :  { %1586 = vmatpush1.bf16.msra.mxu0 %v10010_v26  ;;  %v10067_v26 = vld [vmem:[#allocation4 + $0x2e8] ss:$24 sps:$4 sm:$0xff]   ;;  %v10099_v45 = vld [vmem:[#allocation4 + $0x3dc] ss:$24 sps:$4 sm:$0xff]   ;;  %v10109_v58 = vld [vmem:[#allocation4 + $0x438] ss:$24 sps:$4 sm:$0xff]  }
  0xd3   :  { %1627 = vmatpush1.bf16.msra.mxu1 %v10011_v27  ;;  %1587 = vmatprep.subr.bf16.mxu0 %v10012_v28  ;;  %v10072_v27 = vld [vmem:[#allocation4 + $0xd4] ss:$24 sps:$4 sm:$0xff]   ;;  %v10082_v37 = vld [vmem:[#allocation4 + $0x130] ss:$24 sps:$4 sm:$0xff]   ;;  %v10114_v59 = vld [vmem:[#allocation4 + $0x224] ss:$24 sps:$4 sm:$0xff]  }
  0xd4   :  { %1628 = vmatprep.subr.bf16.mxu1 %v10014_v32  ;;  %v10075_v28 = vld [vmem:[#allocation4 + $0x31c] ss:$24 sps:$4 sm:$0xff]   ;;  %v10081_v32 = vld [vmem:[#allocation4 + $0x34c] ss:$24 sps:$4 sm:$0xff]   ;;  %v10094_v46 = vld [vmem:[#allocation4 + $0x190] ss:$24 sps:$4 sm:$0xff]  }
  0xd5   :  { %vm181_vm5 = vcmask 7168   ;;  %vm7597_vm6 = vcmask 1044484   ;;  %vm7600_vm7 = vcmask 1045509   ;;  %vm7757_vm8 = vcmask 584704   ;;  %s11619_s9 = smov [#allocation21]  }
  0xd6   :  { %1588 = vmatpush1.bf16.msra.mxu0 %v10016_v33  ;;  %v10076_v33 = vld [vmem:[#allocation4 + $0x100] ss:$24 sps:$4 sm:$0xff]   ;;  %vm7603_vm9 = vcmask 1046534   ;;  %vm7606_vm10 = vcmask 1047559   ;;  %vm183_vm11 = vcmask 3072   ;;  %s8446_s4 = sshll.u32 %s11619_s9, 4  ;;  %s8447_s4 = int_to_ptr.vmem [resolvable:$true] %s8446_s4 }
  0xd7   :  { %1629 = vmatpush1.bf16.msra.mxu1 %v10017_v34  ;;  %1589 = vmatprep.subr.bf16.mxu0 %v10018_v35  ;;  %v10079_v34 = vld [vmem:[#allocation4 + $0x348] ss:$24 sps:$4 sm:$0xff]   ;;  %v10084_v35 = vld [vmem:[#allocation4 + $0x134] ss:$24 sps:$4 sm:$0xff]   ;;  %s11564_s23 = scalar_lea.vmem %s8447_s4, 256  ;;  %p11569_p11 = scmp.lt.s32.totalorder %s8447_s4, %s8447_s4 }
  0xd8   :  { %1630 = vmatprep.subr.bf16.mxu1 %v10020_v38  ;;  %v10085_v38 = vld [vmem:[#allocation4 + $0x378] ss:$24 sps:$4 sm:$0xff]   ;;  %p11565_p10 = scmp.ne.s32.totalorder %s8447_s4, %s11564_s23  ;;  %p11570_p12 = scmp.lt.s32.totalorder %s11564_s23, %s11564_s23 }
  0xda   :  { %1590 = vmatpush1.bf16.msra.mxu0 %v10022_v39  ;;  %v10090_v39 = vld [vmem:[#allocation4 + $0x164] ss:$24 sps:$4 sm:$0xff]   ;;  %p11571_p13 = por %p11570_p12, %p11569_p11 }
  0xdb   :  { %1631 = vmatpush1.bf16.msra.mxu1 %v10023_v40  ;;  %1591 = vmatprep.subr.bf16.mxu0 %v10024_v41  ;;  %v10093_v40 = vld [vmem:[#allocation4 + $0x3ac] ss:$24 sps:$4 sm:$0xff]   ;;  %v10088_v41 = vld [vmem:[#allocation4 + $0x160] ss:$24 sps:$4 sm:$0xff]  }
  0xdc   :  { %1632 = vmatprep.subr.bf16.mxu1 %v10026_v42  ;;  %v10091_v42 = vld [vmem:[#allocation4 + $0x3a8] ss:$24 sps:$4 sm:$0xff]   ;;  %p11572_p0 = pnand %p11571_p13, %p11565_p10 }
  0xde   :  { %1592 = vmatpush1.bf16.msra.mxu0 %v10028_v47  ;;  %v10097_v47 = vld [vmem:[#allocation4 + $0x3d8] ss:$24 sps:$4 sm:$0xff]  }
  0xdf   :  { %1633 = vmatpush1.bf16.msra.mxu1 %v10029_v48  ;;  %1593 = vmatprep.subr.bf16.mxu0 %v10030_v49  ;;  %v10102_v48 = vld [vmem:[#allocation4 + $0x1c4] ss:$24 sps:$4 sm:$0xff]  }
  0xe0   :  { %1634 = vmatprep.subr.bf16.mxu1 %v10032_v51  ;;  %v10105_v49 = vld [vmem:[#allocation4 + $0x40c] ss:$24 sps:$4 sm:$0xff]   ;;  %v10100_v51 = vld [vmem:[#allocation4 + $0x1c0] ss:$24 sps:$4 sm:$0xff]  }
  0xe2   :  { %1594 = vmatpush1.bf16.msra.mxu0 %v10034_v52  ;;  %v10103_v52 = vld [vmem:[#allocation4 + $0x408] ss:$24 sps:$4 sm:$0xff]  }
  0xe3   :  { %1635 = vmatpush1.bf16.msra.mxu1 %v10035_v55  ;;  %1595 = vmatprep.subr.bf16.mxu0 %v10036_v56  ;;  %v10108_v55 = vld [vmem:[#allocation4 + $0x1f4] ss:$24 sps:$4 sm:$0xff]  }
  0xe4   :  { %1636 = vmatprep.subr.bf16.mxu1 %v10038_v57  ;;  %v10111_v56 = vld [vmem:[#allocation4 + $0x43c] ss:$24 sps:$4 sm:$0xff]   ;;  %v10106_v57 = vld [vmem:[#allocation4 + $0x1f0] ss:$24 sps:$4 sm:$0xff]  }
  0xe6   :  { %1596 = vmatpush1.bf16.msra.mxu0 %v10040_v62  ;;  %v332_v62 = vld [vmem:[#allocation4 + $0x498] sm:$0xff] }
  0xe7   :  { %1637 = vmatpush1.bf16.msra.mxu1 %v10041_v63  ;;  %8544 = vmatprep.subr.msk.bf16.mxu0 %vm1554_vm1, %v8539_v0  ;;  %v10112_v63 = vld [vmem:[#allocation4 + $0x220] ss:$24 sps:$4 sm:$0xff]   ;;  %v8623_v2 = vcombine.high %v332_v62, %v332_v62  ;;  %v8622_v4 = vcombine.low %v332_v62, %v332_v62  ;;  %v10188_v62 = vld [vmem:[#allocation4 + $0x470] ss:$24 sps:$4 sm:$0xff]  }
  0xe8   :  { %8546 = vmatprep.subr.msk.bf16.mxu1 %vm1554_vm1, %v8541_v1  ;;  %v10115_v0 = vld [vmem:[#allocation4 + $0x468] ss:$24 sps:$4 sm:$0xff]  }
  0xea   :  { %1598 = vmatpush1.bf16.msra.mxu0 %v1556_v7  ;;  %v2085_v7 = vsel %vm1554_vm1, %v8622_v4, 0 }
  0xeb   :  { %1639 = vmatpush1.bf16.msra.mxu1 %v1562_v8  ;;  %1655 = vmatprep.subr.bf16.mxu0 %v10048_v6  ;;  %v10124_v8 = vld [vmem:[#allocation4 + $0x264] ss:$24 sps:$4 sm:$0xff]  }
  0xec   :  { %2102 = vmatprep.subr.bf16.mxu1 %v10051_v9  ;;  %v10127_v9 = vld [vmem:[#allocation4 + $0x26c] ss:$24 sps:$4 sm:$0xff]  }
  0xed   :  { %1606 = vmatmul.mubr.bf16.vlgmr.msra.gmra.mrb[0].mxu0 %v11840_v11 }
  0xee   :  { %1647 = vmatmul.mubr.bf16.vlgmr.msra.gmra.mrb[0].mxu1 %v11840_v11  ;;  %1656 = vmatpush1.bf16.msra.mxu0 %v10046_v12  ;;  %v11857_v12 = vrot.slane %v11837_v10, %v11831_v5  ;;  %v10136_v10 = vld [vmem:[#allocation4 + $0x2c4] ss:$24 sps:$4 sm:$0xff]  }
  0xef   :  { %2103 = vmatpush1.bf16.msra.mxu1 %v10049_v13  ;;  %1657 = vmatprep.subr.bf16.mxu0 %v10054_v14  ;;  %v10122_v13 = vld [vmem:[#allocation4 + $0x260] ss:$24 sps:$4 sm:$0xff]  }
  0xf0   :  { %2104 = vmatprep.subr.bf16.mxu1 %v10057_v15  ;;  %8549 = vmatprep.mubr.msk.bf16.mxu0 %vm1550_vm0, %v1173_v61  ;;  %v259_v61 = vld [vmem:[#allocation4 + $0x250] sm:$0xff]  ;;  %v10125_v14 = vld [vmem:[#allocation4 + $0x268] ss:$24 sps:$4 sm:$0xff]  }
  0xf1   :  { %8629 = vmatprep.mubr.msk.bf16.mxu1 %vm1550_vm0, %v11844_v16  ;;  %v8543_v1 = vcombine.high %v259_v61, %v259_v61  ;;  %v8542_v3 = vcombine.low %v259_v61, %v259_v61  ;;  %v10130_v15 = vld [vmem:[#allocation4 + $0x294] ss:$24 sps:$4 sm:$0xff]  }
  0xf2   :  { %1658 = vmatpush1.bf16.msra.mxu0 %v10052_v17  ;;  %v10133_v17 = vld [vmem:[#allocation4 + $0x29c] ss:$24 sps:$4 sm:$0xff]   ;;  %v334_v61 = vld [vmem:[#allocation4 + $0x4a8] sm:$0xff] }
  0xf3   :  { %2105 = vmatpush1.bf16.msra.mxu1 %v10055_v18  ;;  %1659 = vmatprep.subr.bf16.mxu0 %v10060_v19  ;;  %v1568_v6 = vsel %vm1554_vm1, %v8542_v3, 0  ;;  %v10128_v18 = vld [vmem:[#allocation4 + $0x290] ss:$24 sps:$4 sm:$0xff]   ;;  %v8626_v3 = vcombine.low %v334_v61, %v334_v61 }
  0xf4   :  { %2106 = vmatprep.subr.bf16.mxu1 %v10063_v20  ;;  %v10131_v19 = vld [vmem:[#allocation4 + $0x298] ss:$24 sps:$4 sm:$0xff]   ;;  %v10139_v20 = vld [vmem:[#allocation4 + $0x2cc] ss:$24 sps:$4 sm:$0xff]  }
  0xf6   :  { %1660 = vmatpush1.bf16.msra.mxu0 %v10058_v21  ;;  %v10134_v21 = vld [vmem:[#allocation4 + $0x2c0] ss:$24 sps:$4 sm:$0xff]  }
  0xf7   :  { %2107 = vmatpush1.bf16.msra.mxu1 %v10061_v22  ;;  %1661 = vmatprep.subr.bf16.mxu0 %v10066_v23  ;;  %v10142_v22 = vld [vmem:[#allocation4 + $0x2f4] ss:$24 sps:$4 sm:$0xff]  }
  0xf8   :  { %2108 = vmatprep.subr.bf16.mxu1 %v10069_v24  ;;  %v10145_v23 = vld [vmem:[#allocation4 + $0x2fc] ss:$24 sps:$4 sm:$0xff]   ;;  %v10140_v24 = vld [vmem:[#allocation4 + $0x2f0] ss:$24 sps:$4 sm:$0xff]  }
  0xfa   :  { %1662 = vmatpush1.bf16.msra.mxu0 %v10064_v25  ;;  %v10143_v25 = vld [vmem:[#allocation4 + $0x2f8] ss:$24 sps:$4 sm:$0xff]  }
  0xfb   :  { %2109 = vmatpush1.bf16.msra.mxu1 %v10067_v26  ;;  %1663 = vmatprep.subr.bf16.mxu0 %v10072_v27  ;;  %v10148_v26 = vld [vmem:[#allocation4 + $0x324] ss:$24 sps:$4 sm:$0xff]  }
  0xfc   :  { %2110 = vmatprep.subr.bf16.mxu1 %v10075_v28  ;;  %v10151_v27 = vld [vmem:[#allocation4 + $0x32c] ss:$24 sps:$4 sm:$0xff]   ;;  %v10146_v28 = vld [vmem:[#allocation4 + $0x320] ss:$24 sps:$4 sm:$0xff]  }
  0xfe   :  { %1664 = vmatpush1.bf16.msra.mxu0 %v10070_v29  ;;  %v10154_v29 = vld [vmem:[#allocation4 + $0x354] ss:$24 sps:$4 sm:$0xff]  }
  0xff   :  { %2111 = vmatpush1.bf16.msra.mxu1 %v10073_v30  ;;  %1665 = vmatprep.subr.bf16.mxu0 %v10078_v31  ;;  %v10157_v30 = vld [vmem:[#allocation4 + $0x35c] ss:$24 sps:$4 sm:$0xff]   ;;  %v10152_v31 = vld [vmem:[#allocation4 + $0x350] ss:$24 sps:$4 sm:$0xff]  }
 0x100   :  { %2112 = vmatprep.subr.bf16.mxu1 %v10081_v32  ;;  %v10155_v32 = vld [vmem:[#allocation4 + $0x358] ss:$24 sps:$4 sm:$0xff]  }
 0x102   :  { %1666 = vmatpush1.bf16.msra.mxu0 %v10076_v33  ;;  %v10160_v33 = vld [vmem:[#allocation4 + $0x384] ss:$24 sps:$4 sm:$0xff]  }
 0x103   :  { %2113 = vmatpush1.bf16.msra.mxu1 %v10079_v34  ;;  %1667 = vmatprep.subr.bf16.mxu0 %v10084_v35  ;;  %v10163_v34 = vld [vmem:[#allocation4 + $0x38c] ss:$24 sps:$4 sm:$0xff]   ;;  %v10158_v35 = vld [vmem:[#allocation4 + $0x380] ss:$24 sps:$4 sm:$0xff]  }
 0x104   :  { %2114 = vmatprep.subr.bf16.mxu1 %v10087_v36  ;;  %v10161_v36 = vld [vmem:[#allocation4 + $0x388] ss:$24 sps:$4 sm:$0xff]  }
 0x106   :  { %1668 = vmatpush1.bf16.msra.mxu0 %v10082_v37  ;;  %v10166_v37 = vld [vmem:[#allocation4 + $0x3b4] ss:$24 sps:$4 sm:$0xff]  }
 0x107   :  { %2115 = vmatpush1.bf16.msra.mxu1 %v10085_v38  ;;  %1669 = vmatprep.subr.bf16.mxu0 %v10090_v39  ;;  %v10169_v38 = vld [vmem:[#allocation4 + $0x3bc] ss:$24 sps:$4 sm:$0xff]   ;;  %v10164_v39 = vld [vmem:[#allocation4 + $0x3b0] ss:$24 sps:$4 sm:$0xff]  }
 0x108   :  { %2116 = vmatprep.subr.bf16.mxu1 %v10093_v40  ;;  %v10167_v40 = vld [vmem:[#allocation4 + $0x3b8] ss:$24 sps:$4 sm:$0xff]  }
 0x10a   :  { %1670 = vmatpush1.bf16.msra.mxu0 %v10088_v41  ;;  %v10172_v41 = vld [vmem:[#allocation4 + $0x3e4] ss:$24 sps:$4 sm:$0xff]  }
 0x10b   :  { %2117 = vmatpush1.bf16.msra.mxu1 %v10091_v42  ;;  %1671 = vmatprep.subr.bf16.mxu0 %v10096_v43  ;;  %v10175_v42 = vld [vmem:[#allocation4 + $0x3ec] ss:$24 sps:$4 sm:$0xff]   ;;  %v10170_v43 = vld [vmem:[#allocation4 + $0x3e0] ss:$24 sps:$4 sm:$0xff]  }
 0x10c   :  { %2118 = vmatprep.subr.bf16.mxu1 %v10099_v45  ;;  %v10173_v45 = vld [vmem:[#allocation4 + $0x3e8] ss:$24 sps:$4 sm:$0xff]  }
 0x10e   :  { %1672 = vmatpush1.bf16.msra.mxu0 %v10094_v46  ;;  %v10178_v46 = vld [vmem:[#allocation4 + $0x414] ss:$24 sps:$4 sm:$0xff]  }
 0x10f   :  { %2119 = vmatpush1.bf16.msra.mxu1 %v10097_v47  ;;  %1673 = vmatprep.subr.bf16.mxu0 %v10102_v48  ;;  %v10181_v47 = vld [vmem:[#allocation4 + $0x41c] ss:$24 sps:$4 sm:$0xff]   ;;  %v10176_v48 = vld [vmem:[#allocation4 + $0x410] ss:$24 sps:$4 sm:$0xff]  }
 0x110   :  { %2120 = vmatprep.subr.bf16.mxu1 %v10105_v49  ;;  %v10179_v49 = vld [vmem:[#allocation4 + $0x418] ss:$24 sps:$4 sm:$0xff]  }
 0x112   :  { %1674 = vmatpush1.bf16.msra.mxu0 %v10100_v51  ;;  %v10184_v51 = vld [vmem:[#allocation4 + $0x444] ss:$24 sps:$4 sm:$0xff]  }
 0x113   :  { %2121 = vmatpush1.bf16.msra.mxu1 %v10103_v52  ;;  %1675 = vmatprep.subr.bf16.mxu0 %v10108_v55  ;;  %v10187_v52 = vld [vmem:[#allocation4 + $0x44c] ss:$24 sps:$4 sm:$0xff]   ;;  %v10182_v55 = vld [vmem:[#allocation4 + $0x440] ss:$24 sps:$4 sm:$0xff]  }
 0x114   :  { %2122 = vmatprep.subr.bf16.mxu1 %v10111_v56  ;;  %v10185_v56 = vld [vmem:[#allocation4 + $0x448] ss:$24 sps:$4 sm:$0xff]  }
 0x116   :  { %1676 = vmatpush1.bf16.msra.mxu0 %v10106_v57  ;;  %v10190_v57 = vld [vmem:[#allocation4 + $0x474] ss:$24 sps:$4 sm:$0xff]  }
 0x117   :  { %2123 = vmatpush1.bf16.msra.mxu1 %v10109_v58  ;;  %1677 = vmatprep.subr.bf16.mxu0 %v10114_v59  ;;  %v10193_v58 = vld [vmem:[#allocation4 + $0x47c] ss:$24 sps:$4 sm:$0xff]   ;;  %v333_v59 = vld [vmem:[#allocation4 + $0x4a0] sm:$0xff] }
 0x118   :  { %2124 = vmatprep.subr.bf16.mxu1 %v10117_v60  ;;  %v1121_v60 = vcombine.high %v11817_v50, %v11817_v50 }
 0x11a   :  { %1678 = vmatpush1.bf16.msra.mxu0 %v10112_v63  ;;  %v10191_v63 = vld [vmem:[#allocation4 + $0x478] ss:$24 sps:$4 sm:$0xff]   ;;  %v11868_v4 = vrot.slane %v1121_v60, %v11814_v44 }
 0x11b   :  { %2125 = vmatpush1.bf16.msra.mxu1 %v10115_v0  ;;  %8548 = vmatprep.subr.msk.bf16.mxu0 %vm1554_vm1, %v8543_v1  ;;  %v8625_v0 = vcombine.high %v333_v59, %v333_v59  ;;  %v8627_v1 = vcombine.high %v334_v61, %v334_v61  ;;  %v408_v60 = vld [vmem:[#allocation4 + $0x6f8] sm:$0xff] }
 0x11c   :  { %8628 = vmatprep.subr.msk.bf16.mxu1 %vm1554_vm1, %v8623_v2  ;;  %v8624_v2 = vcombine.low %v333_v59, %v333_v59  ;;  %v407_v59 = vld [vmem:[#allocation4 + $0x6f0] sm:$0xff]  ;;  %v10264_v61 = vld [vmem:[#allocation4 + $0x6c0] ss:$24 sps:$4 sm:$0xff]  }
 0x11e   :  { %1680 = vmatpush1.bf16.msra.mxu0 %v1568_v6  ;;  %v10200_v6 = vld [vmem:[#allocation4 + $0x4b4] ss:$24 sps:$4 sm:$0xff]   ;;  %v2091_v50 = vsel %vm1554_vm1, %v8624_v2, 0  ;;  %v8709_v2 = vcombine.low %v408_v60, %v408_v60 }
 0x11f   :  { %2127 = vmatpush1.bf16.msra.mxu1 %v2085_v7  ;;  %2143 = vmatprep.subr.bf16.mxu0 %v10124_v8  ;;  %v2097_v7 = vsel %vm1554_vm1, %v8626_v3, 0  ;;  %v10203_v8 = vld [vmem:[#allocation4 + $0x4bc] ss:$24 sps:$4 sm:$0xff]   ;;  %v1156_v3 = vunpack.i.h.s16 %v11868_v4 }
 0x120   :  { %2184 = vmatprep.subr.bf16.mxu1 %v10127_v9  ;;  %v11876_v9 = vpack.i.b16 %v11868_v4, %v11868_v4 }
 0x121   :  { %1688 = vmatmul.mubr.bf16.vlgmr.msra.gmra.mrb[4].mxu0 %v11840_v11  ;;  %v10137_v11 = vld [vmem:[#allocation4 + $0x2c8] ss:$24 sps:$4 sm:$0xff]  }
 0x122   :  { %2135 = vmatmul.mubr.bf16.vlgmr.msra.gmra.mrb[4].mxu1 %v11857_v12  ;;  %2144 = vmatpush1.bf16.msra.mxu0 %v10122_v13  ;;  %v10198_v13 = vld [vmem:[#allocation4 + $0x4b0] ss:$24 sps:$4 sm:$0xff]  }
 0x123   :  { %2185 = vmatpush1.bf16.msra.mxu1 %v10125_v14  ;;  %2145 = vmatprep.subr.bf16.mxu0 %v10130_v15  ;;  %v10201_v14 = vld [vmem:[#allocation4 + $0x4b8] ss:$24 sps:$4 sm:$0xff]   ;;  %v10206_v15 = vld [vmem:[#allocation4 + $0x4e4] ss:$24 sps:$4 sm:$0xff]  }
 0x124   :  { %2186 = vmatprep.subr.bf16.mxu1 %v10133_v17  ;;  %8631 = vmatprep.mubr.msk.bf16.mxu0 %vm1550_vm0, %v11844_v16  ;;  %v10209_v17 = vld [vmem:[#allocation4 + $0x4ec] ss:$24 sps:$4 sm:$0xff]  }
 0x125   :  { %8633 = vmatprep.mubr.msk.bf16.mxu1 %vm1550_vm0, %v11844_v16  ;;  %v10149_v16 = vld [vmem:[#allocation4 + $0x328] ss:$24 sps:$4 sm:$0xff]  }
 0x126   :  { %2146 = vmatpush1.bf16.msra.mxu0 %v10128_v18  ;;  %v11880_v18 = vrot.slane %v11876_v9, %v11823_v54 }
 0x127   :  { %2187 = vmatpush1.bf16.msra.mxu1 %v10131_v19  ;;  %2147 = vmatprep.subr.bf16.mxu0 %v10136_v10  ;;  %v10204_v19 = vld [vmem:[#allocation4 + $0x4e0] ss:$24 sps:$4 sm:$0xff]  }
 0x128   :  { %2188 = vmatprep.subr.bf16.mxu1 %v10139_v20  ;;  %v10207_v10 = vld [vmem:[#allocation4 + $0x4e8] ss:$24 sps:$4 sm:$0xff]   ;;  %v10212_v20 = vld [vmem:[#allocation4 + $0x514] ss:$24 sps:$4 sm:$0xff]  }
 0x12a   :  { %2148 = vmatpush1.bf16.msra.mxu0 %v10134_v21  ;;  %v10215_v21 = vld [vmem:[#allocation4 + $0x51c] ss:$24 sps:$4 sm:$0xff]  }
 0x12b   :  { %2189 = vmatpush1.bf16.msra.mxu1 %v10137_v11  ;;  %2149 = vmatprep.subr.bf16.mxu0 %v10142_v22  ;;  %v10210_v11 = vld [vmem:[#allocation4 + $0x510] ss:$24 sps:$4 sm:$0xff]  }
 0x12c   :  { %2190 = vmatprep.subr.bf16.mxu1 %v10145_v23  ;;  %v10213_v22 = vld [vmem:[#allocation4 + $0x518] ss:$24 sps:$4 sm:$0xff]   ;;  %v10221_v23 = vld [vmem:[#allocation4 + $0x54c] ss:$24 sps:$4 sm:$0xff]  }
 0x12e   :  { %2150 = vmatpush1.bf16.msra.mxu0 %v10140_v24  ;;  %v10216_v24 = vld [vmem:[#allocation4 + $0x540] ss:$24 sps:$4 sm:$0xff]  }
 0x12f   :  { %2191 = vmatpush1.bf16.msra.mxu1 %v10143_v25  ;;  %2151 = vmatprep.subr.bf16.mxu0 %v10148_v26  ;;  %v10219_v25 = vld [vmem:[#allocation4 + $0x548] ss:$24 sps:$4 sm:$0xff]   ;;  %v10224_v26 = vld [vmem:[#allocation4 + $0x574] ss:$24 sps:$4 sm:$0xff]  }
 0x130   :  { %2192 = vmatprep.subr.bf16.mxu1 %v10151_v27  ;;  %v10227_v27 = vld [vmem:[#allocation4 + $0x57c] ss:$24 sps:$4 sm:$0xff]  }
 0x132   :  { %2152 = vmatpush1.bf16.msra.mxu0 %v10146_v28  ;;  %v10222_v28 = vld [vmem:[#allocation4 + $0x570] ss:$24 sps:$4 sm:$0xff]  }
 0x133   :  { %2193 = vmatpush1.bf16.msra.mxu1 %v10149_v16  ;;  %2153 = vmatprep.subr.bf16.mxu0 %v10154_v29  ;;  %v10225_v16 = vld [vmem:[#allocation4 + $0x578] ss:$24 sps:$4 sm:$0xff]   ;;  %v10230_v29 = vld [vmem:[#allocation4 + $0x5a4] ss:$24 sps:$4 sm:$0xff]  }
 0x134   :  { %2194 = vmatprep.subr.bf16.mxu1 %v10157_v30  ;;  %v10233_v30 = vld [vmem:[#allocation4 + $0x5ac] ss:$24 sps:$4 sm:$0xff]  }
 0x136   :  { %2154 = vmatpush1.bf16.msra.mxu0 %v10152_v31  ;;  %v10228_v31 = vld [vmem:[#allocation4 + $0x5a0] ss:$24 sps:$4 sm:$0xff]  }
 0x137   :  { %2195 = vmatpush1.bf16.msra.mxu1 %v10155_v32  ;;  %2155 = vmatprep.subr.bf16.mxu0 %v10160_v33  ;;  %v10231_v32 = vld [vmem:[#allocation4 + $0x5a8] ss:$24 sps:$4 sm:$0xff]   ;;  %v10236_v33 = vld [vmem:[#allocation4 + $0x5d4] ss:$24 sps:$4 sm:$0xff]  }
 0x138   :  { %2196 = vmatprep.subr.bf16.mxu1 %v10163_v34  ;;  %v10239_v34 = vld [vmem:[#allocation4 + $0x5dc] ss:$24 sps:$4 sm:$0xff]  }
 0x13a   :  { %2156 = vmatpush1.bf16.msra.mxu0 %v10158_v35  ;;  %v10234_v35 = vld [vmem:[#allocation4 + $0x5d0] ss:$24 sps:$4 sm:$0xff]  }
 0x13b   :  { %2197 = vmatpush1.bf16.msra.mxu1 %v10161_v36  ;;  %2157 = vmatprep.subr.bf16.mxu0 %v10166_v37  ;;  %v10237_v36 = vld [vmem:[#allocation4 + $0x5d8] ss:$24 sps:$4 sm:$0xff]   ;;  %v10242_v37 = vld [vmem:[#allocation4 + $0x604] ss:$24 sps:$4 sm:$0xff]  }
 0x13c   :  { %2198 = vmatprep.subr.bf16.mxu1 %v10169_v38  ;;  %v10245_v38 = vld [vmem:[#allocation4 + $0x60c] ss:$24 sps:$4 sm:$0xff]  }
 0x13e   :  { %2158 = vmatpush1.bf16.msra.mxu0 %v10164_v39  ;;  %v10240_v39 = vld [vmem:[#allocation4 + $0x600] ss:$24 sps:$4 sm:$0xff]  }
 0x13f   :  { %2199 = vmatpush1.bf16.msra.mxu1 %v10167_v40  ;;  %2159 = vmatprep.subr.bf16.mxu0 %v10172_v41  ;;  %v10243_v40 = vld [vmem:[#allocation4 + $0x608] ss:$24 sps:$4 sm:$0xff]   ;;  %v10248_v41 = vld [vmem:[#allocation4 + $0x634] ss:$24 sps:$4 sm:$0xff]  }
 0x140   :  { %2200 = vmatprep.subr.bf16.mxu1 %v10175_v42  ;;  %v10251_v42 = vld [vmem:[#allocation4 + $0x63c] ss:$24 sps:$4 sm:$0xff]  }
 0x142   :  { %2160 = vmatpush1.bf16.msra.mxu0 %v10170_v43  ;;  %v10246_v43 = vld [vmem:[#allocation4 + $0x630] ss:$24 sps:$4 sm:$0xff]  }
 0x143   :  { %2201 = vmatpush1.bf16.msra.mxu1 %v10173_v45  ;;  %2161 = vmatprep.subr.bf16.mxu0 %v10178_v46  ;;  %v10249_v45 = vld [vmem:[#allocation4 + $0x638] ss:$24 sps:$4 sm:$0xff]   ;;  %v10254_v46 = vld [vmem:[#allocation4 + $0x664] ss:$24 sps:$4 sm:$0xff]  }
 0x144   :  { %2202 = vmatprep.subr.bf16.mxu1 %v10181_v47  ;;  %v10257_v47 = vld [vmem:[#allocation4 + $0x66c] ss:$24 sps:$4 sm:$0xff]  }
 0x146   :  { %2162 = vmatpush1.bf16.msra.mxu0 %v10176_v48  ;;  %v10252_v48 = vld [vmem:[#allocation4 + $0x660] ss:$24 sps:$4 sm:$0xff]  }
 0x147   :  { %2203 = vmatpush1.bf16.msra.mxu1 %v10179_v49  ;;  %2163 = vmatprep.subr.bf16.mxu0 %v10184_v51  ;;  %v10255_v49 = vld [vmem:[#allocation4 + $0x668] ss:$24 sps:$4 sm:$0xff]   ;;  %v10260_v51 = vld [vmem:[#allocation4 + $0x694] ss:$24 sps:$4 sm:$0xff]  }
 0x148   :  { %2204 = vmatprep.subr.bf16.mxu1 %v10187_v52  ;;  %v10263_v52 = vld [vmem:[#allocation4 + $0x69c] ss:$24 sps:$4 sm:$0xff]  }
 0x14a   :  { %2164 = vmatpush1.bf16.msra.mxu0 %v10182_v55  ;;  %v10258_v55 = vld [vmem:[#allocation4 + $0x690] ss:$24 sps:$4 sm:$0xff]  }
 0x14b   :  { %2205 = vmatpush1.bf16.msra.mxu1 %v10185_v56  ;;  %2165 = vmatprep.subr.bf16.mxu0 %v10190_v57  ;;  %v10261_v56 = vld [vmem:[#allocation4 + $0x698] ss:$24 sps:$4 sm:$0xff]   ;;  %v10266_v57 = vld [vmem:[#allocation4 + $0x6c4] ss:$24 sps:$4 sm:$0xff]  }
 0x14c   :  { %2206 = vmatprep.subr.bf16.mxu1 %v10193_v58  ;;  %v10269_v58 = vld [vmem:[#allocation4 + $0x6cc] ss:$24 sps:$4 sm:$0xff]  }
 0x14e   :  { %2166 = vmatpush1.bf16.msra.mxu0 %v10188_v62  ;;  %v10267_v62 = vld [vmem:[#allocation4 + $0x6c8] ss:$24 sps:$4 sm:$0xff]  }
 0x14f   :  { %2207 = vmatpush1.bf16.msra.mxu1 %v10191_v63  ;;  %8630 = vmatprep.subr.msk.bf16.mxu0 %vm1554_vm1, %v8625_v0  ;;  %v8708_v63 = vcombine.high %v407_v59, %v407_v59  ;;  %v8710_v0 = vcombine.high %v408_v60, %v408_v60  ;;  %v409_v60 = vld [vmem:[#allocation4 + $0x700] sm:$0xff] }
 0x150   :  { %8632 = vmatprep.subr.msk.bf16.mxu1 %vm1554_vm1, %v8627_v1  ;;  %v8707_v1 = vcombine.low %v407_v59, %v407_v59  ;;  %v10345_v59 = vld [vmem:[#allocation4 + $0x91c] ss:$24 sps:$4 sm:$0xff]  }
 0x152   :  { %2168 = vmatpush1.bf16.msra.mxu0 %v2091_v50  ;;  %v2614_v50 = vsel %vm1554_vm1, %v8707_v1, 0 }
 0x153   :  { %2209 = vmatpush1.bf16.msra.mxu1 %v2097_v7  ;;  %2631 = vmatprep.subr.bf16.mxu0 %v10200_v6  ;;  %v10276_v6 = vld [vmem:[#allocation4 + $0x4c4] ss:$24 sps:$4 sm:$0xff]   ;;  %v2620_v7 = vsel %vm1554_vm1, %v8709_v2, 0  ;;  %v8711_v2 = vcombine.low %v409_v60, %v409_v60 }
 0x154   :  { %2672 = vmatprep.subr.bf16.mxu1 %v10203_v8  ;;  %v10279_v8 = vld [vmem:[#allocation4 + $0x70c] ss:$24 sps:$4 sm:$0xff]  }
 0x155   :  { %2176 = vmatmul.mubr.bf16.vlgmr.msra.gmra.mrb[8].mxu0 %v11857_v12 }
 0x156   :  { %2217 = vmatmul.mubr.bf16.vlgmr.msra.gmra.mrb[8].mxu1 %v11857_v12  ;;  %2632 = vmatpush1.bf16.msra.mxu0 %v10198_v13  ;;  %v10218_v12 = vld [vmem:[#allocation4 + $0x544] ss:$24 sps:$4 sm:$0xff]   ;;  %v11893_v13 = vpack.i.b16 %v1156_v3, %v1156_v3 }
 0x157   :  { %2673 = vmatpush1.bf16.msra.mxu1 %v10201_v14  ;;  %2633 = vmatprep.subr.bf16.mxu0 %v10206_v15  ;;  %v11897_v14 = vrot.slane %v11876_v9, %v11831_v5  ;;  %v10274_v15 = vld [vmem:[#allocation4 + $0x4c0] ss:$24 sps:$4 sm:$0xff]   ;;  %v10288_v9 = vld [vmem:[#allocation4 + $0x524] ss:$24 sps:$4 sm:$0xff]  }
 0x158   :  { %2674 = vmatprep.subr.bf16.mxu1 %v10209_v17  ;;  %8714 = vmatprep.mubr.msk.bf16.mxu0 %vm1550_vm0, %v11880_v18  ;;  %v10277_v17 = vld [vmem:[#allocation4 + $0x708] ss:$24 sps:$4 sm:$0xff]  }
 0x159   :  { %8716 = vmatprep.mubr.msk.bf16.mxu1 %vm1550_vm0, %v11880_v18 }
 0x15a   :  { %2634 = vmatpush1.bf16.msra.mxu0 %v10204_v19  ;;  %v10282_v19 = vld [vmem:[#allocation4 + $0x4f4] ss:$24 sps:$4 sm:$0xff]  }
 0x15b   :  { %2675 = vmatpush1.bf16.msra.mxu1 %v10207_v10  ;;  %2635 = vmatprep.subr.bf16.mxu0 %v10212_v20  ;;  %v10285_v10 = vld [vmem:[#allocation4 + $0x73c] ss:$24 sps:$4 sm:$0xff]   ;;  %v11901_v20 = vrot.slane %v11893_v13, %v11823_v54 }
 0x15c   :  { %2676 = vmatprep.subr.bf16.mxu1 %v10215_v21  ;;  %v10280_v21 = vld [vmem:[#allocation4 + $0x4f0] ss:$24 sps:$4 sm:$0xff]  }
 0x15e   :  { %2636 = vmatpush1.bf16.msra.mxu0 %v10210_v11  ;;  %v10283_v11 = vld [vmem:[#allocation4 + $0x738] ss:$24 sps:$4 sm:$0xff]  }
 0x15f   :  { %2677 = vmatpush1.bf16.msra.mxu1 %v10213_v22  ;;  %2637 = vmatprep.subr.bf16.mxu0 %v10218_v12  ;;  %v10291_v22 = vld [vmem:[#allocation4 + $0x76c] ss:$24 sps:$4 sm:$0xff]   ;;  %v10286_v12 = vld [vmem:[#allocation4 + $0x520] ss:$24 sps:$4 sm:$0xff]  }
 0x160   :  { %2678 = vmatprep.subr.bf16.mxu1 %v10221_v23  ;;  %v10289_v23 = vld [vmem:[#allocation4 + $0x768] ss:$24 sps:$4 sm:$0xff]  }
 0x162   :  { %2638 = vmatpush1.bf16.msra.mxu0 %v10216_v24  ;;  %v10294_v24 = vld [vmem:[#allocation4 + $0x554] ss:$24 sps:$4 sm:$0xff]  }
 0x163   :  { %2679 = vmatpush1.bf16.msra.mxu1 %v10219_v25  ;;  %2639 = vmatprep.subr.bf16.mxu0 %v10224_v26  ;;  %v10297_v25 = vld [vmem:[#allocation4 + $0x79c] ss:$24 sps:$4 sm:$0xff]   ;;  %v10292_v26 = vld [vmem:[#allocation4 + $0x550] ss:$24 sps:$4 sm:$0xff]  }
 0x164   :  { %2680 = vmatprep.subr.bf16.mxu1 %v10227_v27  ;;  %v10295_v27 = vld [vmem:[#allocation4 + $0x798] ss:$24 sps:$4 sm:$0xff]  }
 0x166   :  { %2640 = vmatpush1.bf16.msra.mxu0 %v10222_v28  ;;  %v10300_v28 = vld [vmem:[#allocation4 + $0x584] ss:$24 sps:$4 sm:$0xff]  }
 0x167   :  { %2681 = vmatpush1.bf16.msra.mxu1 %v10225_v16  ;;  %2641 = vmatprep.subr.bf16.mxu0 %v10230_v29  ;;  %v10303_v16 = vld [vmem:[#allocation4 + $0x7cc] ss:$24 sps:$4 sm:$0xff]   ;;  %v10301_v29 = vld [vmem:[#allocation4 + $0x7c8] ss:$24 sps:$4 sm:$0xff]  }
 0x168   :  { %2682 = vmatprep.subr.bf16.mxu1 %v10233_v30  ;;  %v10306_v30 = vld [vmem:[#allocation4 + $0x5b4] ss:$24 sps:$4 sm:$0xff]  }
 0x16a   :  { %2642 = vmatpush1.bf16.msra.mxu0 %v10228_v31  ;;  %v10309_v31 = vld [vmem:[#allocation4 + $0x7fc] ss:$24 sps:$4 sm:$0xff]  }
 0x16b   :  { %2683 = vmatpush1.bf16.msra.mxu1 %v10231_v32  ;;  %2643 = vmatprep.subr.bf16.mxu0 %v10236_v33  ;;  %v10304_v32 = vld [vmem:[#allocation4 + $0x5b0] ss:$24 sps:$4 sm:$0xff]  }
 0x16c   :  { %2684 = vmatprep.subr.bf16.mxu1 %v10239_v34  ;;  %v10307_v33 = vld [vmem:[#allocation4 + $0x7f8] ss:$24 sps:$4 sm:$0xff]   ;;  %v10312_v34 = vld [vmem:[#allocation4 + $0x5e4] ss:$24 sps:$4 sm:$0xff]  }
 0x16e   :  { %2644 = vmatpush1.bf16.msra.mxu0 %v10234_v35  ;;  %v10315_v35 = vld [vmem:[#allocation4 + $0x82c] ss:$24 sps:$4 sm:$0xff]  }
 0x16f   :  { %2685 = vmatpush1.bf16.msra.mxu1 %v10237_v36  ;;  %2645 = vmatprep.subr.bf16.mxu0 %v10242_v37  ;;  %v10310_v36 = vld [vmem:[#allocation4 + $0x5e0] ss:$24 sps:$4 sm:$0xff]  }
 0x170   :  { %2686 = vmatprep.subr.bf16.mxu1 %v10245_v38  ;;  %v10313_v37 = vld [vmem:[#allocation4 + $0x828] ss:$24 sps:$4 sm:$0xff]   ;;  %v10318_v38 = vld [vmem:[#allocation4 + $0x614] ss:$24 sps:$4 sm:$0xff]  }
 0x172   :  { %2646 = vmatpush1.bf16.msra.mxu0 %v10240_v39  ;;  %v10321_v39 = vld [vmem:[#allocation4 + $0x85c] ss:$24 sps:$4 sm:$0xff]  }
 0x173   :  { %2687 = vmatpush1.bf16.msra.mxu1 %v10243_v40  ;;  %2647 = vmatprep.subr.bf16.mxu0 %v10248_v41  ;;  %v10316_v40 = vld [vmem:[#allocation4 + $0x610] ss:$24 sps:$4 sm:$0xff]  }
 0x174   :  { %2688 = vmatprep.subr.bf16.mxu1 %v10251_v42  ;;  %v10319_v41 = vld [vmem:[#allocation4 + $0x858] ss:$24 sps:$4 sm:$0xff]   ;;  %v10324_v42 = vld [vmem:[#allocation4 + $0x644] ss:$24 sps:$4 sm:$0xff]  }
 0x176   :  { %2648 = vmatpush1.bf16.msra.mxu0 %v10246_v43  ;;  %v10327_v43 = vld [vmem:[#allocation4 + $0x88c] ss:$24 sps:$4 sm:$0xff]  }
 0x177   :  { %2689 = vmatpush1.bf16.msra.mxu1 %v10249_v45  ;;  %2649 = vmatprep.subr.bf16.mxu0 %v10254_v46  ;;  %v10322_v45 = vld [vmem:[#allocation4 + $0x640] ss:$24 sps:$4 sm:$0xff]  }
 0x178   :  { %2690 = vmatprep.subr.bf16.mxu1 %v10257_v47  ;;  %v10325_v46 = vld [vmem:[#allocation4 + $0x888] ss:$24 sps:$4 sm:$0xff]   ;;  %v10330_v47 = vld [vmem:[#allocation4 + $0x674] ss:$24 sps:$4 sm:$0xff]  }
 0x17a   :  { %2650 = vmatpush1.bf16.msra.mxu0 %v10252_v48  ;;  %v10333_v48 = vld [vmem:[#allocation4 + $0x8bc] ss:$24 sps:$4 sm:$0xff]  }
 0x17b   :  { %2691 = vmatpush1.bf16.msra.mxu1 %v10255_v49  ;;  %2651 = vmatprep.subr.bf16.mxu0 %v10260_v51  ;;  %v10328_v49 = vld [vmem:[#allocation4 + $0x670] ss:$24 sps:$4 sm:$0xff]  }
 0x17c   :  { %2692 = vmatprep.subr.bf16.mxu1 %v10263_v52  ;;  %v10331_v51 = vld [vmem:[#allocation4 + $0x8b8] ss:$24 sps:$4 sm:$0xff]   ;;  %v10336_v52 = vld [vmem:[#allocation4 + $0x6a4] ss:$24 sps:$4 sm:$0xff]  }
 0x17e   :  { %2652 = vmatpush1.bf16.msra.mxu0 %v10258_v55  ;;  %v10339_v55 = vld [vmem:[#allocation4 + $0x8ec] ss:$24 sps:$4 sm:$0xff]  }
 0x17f   :  { %2693 = vmatpush1.bf16.msra.mxu1 %v10261_v56  ;;  %2653 = vmatprep.subr.bf16.mxu0 %v10266_v57  ;;  %v10334_v56 = vld [vmem:[#allocation4 + $0x6a0] ss:$24 sps:$4 sm:$0xff]  }
 0x180   :  { %2694 = vmatprep.subr.bf16.mxu1 %v10269_v58  ;;  %v10337_v57 = vld [vmem:[#allocation4 + $0x8e8] ss:$24 sps:$4 sm:$0xff]   ;;  %v10342_v58 = vld [vmem:[#allocation4 + $0x6d4] ss:$24 sps:$4 sm:$0xff]  }
 0x182   :  { %2654 = vmatpush1.bf16.msra.mxu0 %v10264_v61  ;;  %v482_v61 = vld [vmem:[#allocation4 + $0x948] sm:$0xff] }
 0x183   :  { %2695 = vmatpush1.bf16.msra.mxu1 %v10267_v62  ;;  %8713 = vmatprep.subr.msk.bf16.mxu0 %vm1554_vm1, %v8708_v63  ;;  %v10340_v62 = vld [vmem:[#allocation4 + $0x6d0] ss:$24 sps:$4 sm:$0xff]   ;;  %v8792_v1 = vcombine.high %v482_v61, %v482_v61  ;;  %v8791_v3 = vcombine.low %v482_v61, %v482_v61  ;;  %v10415_v61 = vld [vmem:[#allocation4 + $0x8fc] ss:$24 sps:$4 sm:$0xff]  }
 0x184   :  { %8715 = vmatprep.subr.msk.bf16.mxu1 %vm1554_vm1, %v8710_v0  ;;  %v10343_v63 = vld [vmem:[#allocation4 + $0x918] ss:$24 sps:$4 sm:$0xff]   ;;  %v8712_v0 = vcombine.high %v409_v60, %v409_v60  ;;  %v10412_v60 = vld [vmem:[#allocation4 + $0x8f4] ss:$24 sps:$4 sm:$0xff]  }
 0x186   :  { %2656 = vmatpush1.bf16.msra.mxu0 %v2614_v50  ;;  %v2626_v50 = vsel %vm1554_vm1, %v8711_v2, 0  ;;  %v483_v2 = vld [vmem:[#allocation4 + $0x950] sm:$0xff] }
 0x187   :  { %2697 = vmatpush1.bf16.msra.mxu1 %v2620_v7  ;;  %2713 = vmatprep.subr.bf16.mxu0 %v10276_v6  ;;  %v10352_v6 = vld [vmem:[#allocation4 + $0x714] ss:$24 sps:$4 sm:$0xff]   ;;  %v3143_v7 = vsel %vm1554_vm1, %v8791_v3, 0  ;;  %v484_v3 = vld [vmem:[#allocation4 + $0x958] sm:$0xff] }
 0x188   :  { %3160 = vmatprep.subr.bf16.mxu1 %v10279_v8  ;;  %v10355_v8 = vld [vmem:[#allocation4 + $0x71c] ss:$24 sps:$4 sm:$0xff]  }
 0x189   :  { %2664 = vmatmul.mubr.bf16.vlgmr.msra.gmra.mrb[12].mxu0 %v11897_v14 }
 0x18a   :  { %2705 = vmatmul.mubr.bf16.vlgmr.msra.gmra.mrb[12].mxu1 %v11897_v14  ;;  %2714 = vmatpush1.bf16.msra.mxu0 %v10274_v15  ;;  %v11915_v15 = vrot.slane %v11893_v13, %v11831_v5  ;;  %v10364_v13 = vld [vmem:[#allocation4 + $0x774] ss:$24 sps:$4 sm:$0xff]  }
 0x18b   :  { %3161 = vmatpush1.bf16.msra.mxu1 %v10277_v17  ;;  %2715 = vmatprep.subr.bf16.mxu0 %v10282_v19  ;;  %v10350_v17 = vld [vmem:[#allocation4 + $0x710] ss:$24 sps:$4 sm:$0xff]  }
 0x18c   :  { %3162 = vmatprep.subr.bf16.mxu1 %v10285_v10  ;;  %8718 = vmatprep.mubr.msk.bf16.mxu0 %vm1550_vm0, %v11880_v18  ;;  %v10298_v18 = vld [vmem:[#allocation4 + $0x580] ss:$24 sps:$4 sm:$0xff]   ;;  %v10358_v10 = vld [vmem:[#allocation4 + $0x744] ss:$24 sps:$4 sm:$0xff]  }
 0x18d   :  { %8798 = vmatprep.mubr.msk.bf16.mxu1 %vm1550_vm0, %v11901_v20  ;;  %v10353_v19 = vld [vmem:[#allocation4 + $0x718] ss:$24 sps:$4 sm:$0xff]  }
 0x18e   :  { %2716 = vmatpush1.bf16.msra.mxu0 %v10280_v21  ;;  %v10361_v21 = vld [vmem:[#allocation4 + $0x74c] ss:$24 sps:$4 sm:$0xff]  }
 0x18f   :  { %3163 = vmatpush1.bf16.msra.mxu1 %v10283_v11  ;;  %2717 = vmatprep.subr.bf16.mxu0 %v10288_v9  ;;  %v10356_v11 = vld [vmem:[#allocation4 + $0x740] ss:$24 sps:$4 sm:$0xff]  }
 0x190   :  { %3164 = vmatprep.subr.bf16.mxu1 %v10291_v22  ;;  %v10359_v9 = vld [vmem:[#allocation4 + $0x748] ss:$24 sps:$4 sm:$0xff]   ;;  %v10367_v22 = vld [vmem:[#allocation4 + $0x77c] ss:$24 sps:$4 sm:$0xff]  }
 0x192   :  { %2718 = vmatpush1.bf16.msra.mxu0 %v10286_v12 }
 0x193   :  { %3165 = vmatpush1.bf16.msra.mxu1 %v10289_v23  ;;  %2719 = vmatprep.subr.bf16.mxu0 %v10294_v24 }
 0x194   :  { %3166 = vmatprep.subr.bf16.mxu1 %v10297_v25 }
 0x196   :  { %2720 = vmatpush1.bf16.msra.mxu0 %v10292_v26 }
 0x197   :  { %3167 = vmatpush1.bf16.msra.mxu1 %v10295_v27  ;;  %2721 = vmatprep.subr.bf16.mxu0 %v10300_v28  ;;  %v10362_v27 = vld [vmem:[#allocation4 + $0x770] ss:$24 sps:$4 sm:$0xff]  }
 0x198   :  { %3168 = vmatprep.subr.bf16.mxu1 %v10303_v16  ;;  %v10365_v28 = vld [vmem:[#allocation4 + $0x778] ss:$24 sps:$4 sm:$0xff]  }
 0x19a   :  { %2722 = vmatpush1.bf16.msra.mxu0 %v10298_v18 }
 0x19b   :  { %3169 = vmatpush1.bf16.msra.mxu1 %v10301_v29  ;;  %2723 = vmatprep.subr.bf16.mxu0 %v10306_v30  ;;  %v10370_v29 = vld [vmem:[#allocation4 + $0x7a4] ss:$24 sps:$4 sm:$0xff]  }
 0x19c   :  { %3170 = vmatprep.subr.bf16.mxu1 %v10309_v31  ;;  %v10373_v30 = vld [vmem:[#allocation4 + $0x7ac] ss:$24 sps:$4 sm:$0xff]   ;;  %v10368_v31 = vld [vmem:[#allocation4 + $0x7a0] ss:$24 sps:$4 sm:$0xff]  }
 0x19e   :  { %2724 = vmatpush1.bf16.msra.mxu0 %v10304_v32  ;;  %v10376_v32 = vld [vmem:[#allocation4 + $0x7d4] ss:$24 sps:$4 sm:$0xff]  }
 0x19f   :  { %3171 = vmatpush1.bf16.msra.mxu1 %v10307_v33  ;;  %2725 = vmatprep.subr.bf16.mxu0 %v10312_v34  ;;  %v10379_v33 = vld [vmem:[#allocation4 + $0x7dc] ss:$24 sps:$4 sm:$0xff]   ;;  %v10374_v34 = vld [vmem:[#allocation4 + $0x7d0] ss:$24 sps:$4 sm:$0xff]  }
 0x1a0   :  { %3172 = vmatprep.subr.bf16.mxu1 %v10315_v35  ;;  %v10377_v35 = vld [vmem:[#allocation4 + $0x7d8] ss:$24 sps:$4 sm:$0xff]  }
 0x1a2   :  { %2726 = vmatpush1.bf16.msra.mxu0 %v10310_v36  ;;  %v10382_v36 = vld [vmem:[#allocation4 + $0x804] ss:$24 sps:$4 sm:$0xff]  }
 0x1a3   :  { %3173 = vmatpush1.bf16.msra.mxu1 %v10313_v37  ;;  %2727 = vmatprep.subr.bf16.mxu0 %v10318_v38  ;;  %v10385_v37 = vld [vmem:[#allocation4 + $0x80c] ss:$24 sps:$4 sm:$0xff]   ;;  %v10380_v38 = vld [vmem:[#allocation4 + $0x800] ss:$24 sps:$4 sm:$0xff]  }
 0x1a4   :  { %3174 = vmatprep.subr.bf16.mxu1 %v10321_v39  ;;  %v10383_v39 = vld [vmem:[#allocation4 + $0x808] ss:$24 sps:$4 sm:$0xff]  }
 0x1a6   :  { %2728 = vmatpush1.bf16.msra.mxu0 %v10316_v40  ;;  %v10388_v40 = vld [vmem:[#allocation4 + $0x834] ss:$24 sps:$4 sm:$0xff]  }
 0x1a7   :  { %3175 = vmatpush1.bf16.msra.mxu1 %v10319_v41  ;;  %2729 = vmatprep.subr.bf16.mxu0 %v10324_v42  ;;  %v10391_v41 = vld [vmem:[#allocation4 + $0x83c] ss:$24 sps:$4 sm:$0xff]   ;;  %v10386_v42 = vld [vmem:[#allocation4 + $0x830] ss:$24 sps:$4 sm:$0xff]  }
 0x1a8   :  { %3176 = vmatprep.subr.bf16.mxu1 %v10327_v43  ;;  %v10389_v43 = vld [vmem:[#allocation4 + $0x838] ss:$24 sps:$4 sm:$0xff]  }
 0x1aa   :  { %2730 = vmatpush1.bf16.msra.mxu0 %v10322_v45  ;;  %v10394_v45 = vld [vmem:[#allocation4 + $0x864] ss:$24 sps:$4 sm:$0xff]  }
 0x1ab   :  { %3177 = vmatpush1.bf16.msra.mxu1 %v10325_v46  ;;  %2731 = vmatprep.subr.bf16.mxu0 %v10330_v47  ;;  %v10397_v46 = vld [vmem:[#allocation4 + $0x86c] ss:$24 sps:$4 sm:$0xff]   ;;  %v10392_v47 = vld [vmem:[#allocation4 + $0x860] ss:$24 sps:$4 sm:$0xff]  }
 0x1ac   :  { %3178 = vmatprep.subr.bf16.mxu1 %v10333_v48  ;;  %v10395_v48 = vld [vmem:[#allocation4 + $0x868] ss:$24 sps:$4 sm:$0xff]  }
 0x1ae   :  { %2732 = vmatpush1.bf16.msra.mxu0 %v10328_v49  ;;  %v10400_v49 = vld [vmem:[#allocation4 + $0x894] ss:$24 sps:$4 sm:$0xff]  }
 0x1af   :  { %3179 = vmatpush1.bf16.msra.mxu1 %v10331_v51  ;;  %2733 = vmatprep.subr.bf16.mxu0 %v10336_v52  ;;  %v10403_v51 = vld [vmem:[#allocation4 + $0x89c] ss:$24 sps:$4 sm:$0xff]   ;;  %v10398_v52 = vld [vmem:[#allocation4 + $0x890] ss:$24 sps:$4 sm:$0xff]  }
 0x1b0   :  { %3180 = vmatprep.subr.bf16.mxu1 %v10339_v55  ;;  %v10401_v55 = vld [vmem:[#allocation4 + $0x898] ss:$24 sps:$4 sm:$0xff]  }
 0x1b2   :  { %2734 = vmatpush1.bf16.msra.mxu0 %v10334_v56  ;;  %v10406_v56 = vld [vmem:[#allocation4 + $0x8c4] ss:$24 sps:$4 sm:$0xff]  }
 0x1b3   :  { %3181 = vmatpush1.bf16.msra.mxu1 %v10337_v57  ;;  %2735 = vmatprep.subr.bf16.mxu0 %v10342_v58  ;;  %v10409_v57 = vld [vmem:[#allocation4 + $0x8cc] ss:$24 sps:$4 sm:$0xff]   ;;  %v10404_v58 = vld [vmem:[#allocation4 + $0x8c0] ss:$24 sps:$4 sm:$0xff]  }
 0x1b4   :  { %3182 = vmatprep.subr.bf16.mxu1 %v10345_v59  ;;  %v10407_v59 = vld [vmem:[#allocation4 + $0x8c8] ss:$24 sps:$4 sm:$0xff]  }
 0x1b6   :  { %2736 = vmatpush1.bf16.msra.mxu0 %v10340_v62  ;;  %v10410_v62 = vld [vmem:[#allocation4 + $0x8f0] ss:$24 sps:$4 sm:$0xff]  }
 0x1b7   :  { %3183 = vmatpush1.bf16.msra.mxu1 %v10343_v63  ;;  %8717 = vmatprep.subr.msk.bf16.mxu0 %vm1554_vm1, %v8712_v0  ;;  %v10413_v63 = vld [vmem:[#allocation4 + $0x8f8] ss:$24 sps:$4 sm:$0xff]   ;;  %v10418_v0 = vld [vmem:[#allocation4 + $0x924] ss:$24 sps:$4 sm:$0xff]  }
 0x1b8   :  { %8797 = vmatprep.subr.msk.bf16.mxu1 %vm1554_vm1, %v8792_v1  ;;  %v10421_v1 = vld [vmem:[#allocation4 + $0x92c] ss:$24 sps:$4 sm:$0xff]  }
 0x1ba   :  { %2738 = vmatpush1.bf16.msra.mxu0 %v2626_v50  ;;  %v10419_v50 = vld [vmem:[#allocation4 + $0x928] ss:$24 sps:$4 sm:$0xff]  }
 0x1bb   :  { %3185 = vmatpush1.bf16.msra.mxu1 %v3143_v7  ;;  %3201 = vmatprep.subr.bf16.mxu0 %v10352_v6  ;;  %v10416_v6 = vld [vmem:[#allocation4 + $0x920] ss:$24 sps:$4 sm:$0xff]   ;;  %v8794_v7 = vcombine.high %v483_v2, %v483_v2 }
 0x1bc   :  { %3242 = vmatprep.subr.bf16.mxu1 %v10355_v8  ;;  %v8796_v8 = vcombine.high %v484_v3, %v484_v3 }
 0x1bd   :  { %2746 = vmatmul.mubr.bf16.vlgmr.msra.gmra.mrb[16].mxu0 %v11897_v14 }
 0x1be   :  { %3193 = vmatmul.mubr.bf16.vlgmr.msra.gmra.mrb[16].mxu1 %v11915_v15  ;;  %3202 = vmatpush1.bf16.msra.mxu0 %v10350_v17  ;;  %v8793_v17 = vcombine.low %v483_v2, %v483_v2  ;;  %v10479_v2 = vld [vmem:[#allocation4 + $0xaec] ss:$24 sps:$4 sm:$0xff]  }
 0x1bf   :  { %3243 = vmatpush1.bf16.msra.mxu1 %v10353_v19  ;;  %3203 = vmatprep.subr.bf16.mxu0 %v10358_v10  ;;  %v8795_v19 = vcombine.low %v484_v3, %v484_v3  ;;  %v11933_v10 = vcombine.high %v11821_v53, %v11821_v53  ;;  %v10426_v53 = vld [vmem:[#allocation4 + $0x960] ss:$24 sps:$4 sm:$0xff]  }
 0x1c0   :  { %3244 = vmatprep.subr.bf16.mxu1 %v10361_v21  ;;  %v11919_v12 = vpop.f32.mrb[0].mxu0  ;;  %8800 = vmatprep.mubr.msk.bf16.mxu0 %vm1550_vm0, %v11901_v20  ;;  %v10428_v21 = vld [vmem:[#allocation4 + $0x964] ss:$24 sps:$4 sm:$0xff]   ;;  %v10474_v3 = vld [vmem:[#allocation4 + $0xae0] ss:$24 sps:$4 sm:$0xff]  }
 0x1c1   :  { %v11921_v23 = vpop.f32.mrb[0].mxu1  ;;  %8802 = vmatprep.mubr.msk.bf16.mxu1 %vm1550_vm0, %v11901_v20  ;;  %v11927_v14 = vpop.f32.mrb[1].mxu0  ;;  %v10371_v20 = vld [vmem:[#allocation4 + $0x7a8] ss:$24 sps:$4 sm:$0xff]  }
 0x1c2   :  { %v11929_v24 = vpop.f32.mrb[1].mxu1  ;;  %v1611_v25 = vpop.f32.mrb[2].mxu0  ;;  %3204 = vmatpush1.bf16.msra.mxu0 %v10356_v11  ;;  %v3149_v11 = vsel %vm1554_vm1, %v8793_v17, 0  ;;  %v10483_v17 = vld [vmem:[#allocation4 + $0xb18] ss:$24 sps:$4 sm:$0xff]  }
 0x1c3   :  { %v1652_v26 = vpop.f32.mrb[2].mxu1  ;;  %3245 = vmatpush1.bf16.msra.mxu1 %v10359_v9  ;;  %v1612_v16 = vpop.f32.mrb[3].mxu0  ;;  %3205 = vmatprep.subr.bf16.mxu0 %v10364_v13  ;;  %v3155_v9 = vsel %vm1554_vm1, %v8795_v19, 0  ;;  %v10431_v13 = vld [vmem:[#allocation4 + $0x96c] ss:$24 sps:$4 sm:$0xff]  }
 0x1c4   :  { %v1653_v18 = vpop.f32.mrb[3].mxu1  ;;  %3246 = vmatprep.subr.bf16.mxu1 %v10367_v22  ;;  %v11941_v22 = vpack.i.b16 %v11933_v10, %v11933_v10  ;;  %v10429_v25 = vld [vmem:[#allocation4 + $0x968] ss:$24 sps:$4 sm:$0xff]   ;;  %v10434_v26 = vld [vmem:[#allocation4 + $0x994] ss:$24 sps:$4 sm:$0xff]  }
 0x1c5   :  { %v10432_v16 = vld [vmem:[#allocation4 + $0x990] ss:$24 sps:$4 sm:$0xff]   ;;  %v10488_v19 = vld [vmem:[#allocation4 + $0xb44] ss:$24 sps:$4 sm:$0xff]  }
 0x1c6   :  { %3206 = vmatpush1.bf16.msra.mxu0 %v10362_v27  ;;  %v10437_v27 = vld [vmem:[#allocation4 + $0x99c] ss:$24 sps:$4 sm:$0xff]   ;;  %v10435_v18 = vld [vmem:[#allocation4 + $0x998] ss:$24 sps:$4 sm:$0xff]  }
 0x1c7   :  { %3247 = vmatpush1.bf16.msra.mxu1 %v10365_v28  ;;  %3207 = vmatprep.subr.bf16.mxu0 %v10370_v29  ;;  %v11945_v28 = vrot.slane %v11941_v22, %v11823_v54  ;;  %v10440_v29 = vld [vmem:[#allocation4 + $0x9c4] ss:$24 sps:$4 sm:$0xff]  }
 0x1c8   :  { %3248 = vmatprep.subr.bf16.mxu1 %v10373_v30  ;;  %v10443_v30 = vld [vmem:[#allocation4 + $0x9cc] ss:$24 sps:$4 sm:$0xff]  }
 0x1ca   :  { %3208 = vmatpush1.bf16.msra.mxu0 %v10368_v31 }
 0x1cb   :  { %3249 = vmatpush1.bf16.msra.mxu1 %v10371_v20  ;;  %3209 = vmatprep.subr.bf16.mxu0 %v10376_v32  ;;  %v10438_v32 = vld [vmem:[#allocation4 + $0x9c0] ss:$24 sps:$4 sm:$0xff]  }
 0x1cc   :  { %3250 = vmatprep.subr.bf16.mxu1 %v10379_v33 }
 0x1ce   :  { %3210 = vmatpush1.bf16.msra.mxu0 %v10374_v34 }
 0x1cf   :  { %3251 = vmatpush1.bf16.msra.mxu1 %v10377_v35  ;;  %3211 = vmatprep.subr.bf16.mxu0 %v10382_v36 }
 0x1d0   :  { %3252 = vmatprep.subr.bf16.mxu1 %v10385_v37 }
 0x1d2   :  { %3212 = vmatpush1.bf16.msra.mxu0 %v10380_v38  ;;  %v10441_v38 = vld [vmem:[#allocation4 + $0x9c8] ss:$24 sps:$4 sm:$0xff]  }
 0x1d3   :  { %3253 = vmatpush1.bf16.msra.mxu1 %v10383_v39  ;;  %3213 = vmatprep.subr.bf16.mxu0 %v10388_v40 }
 0x1d4   :  { %3254 = vmatprep.subr.bf16.mxu1 %v10391_v41 }
 0x1d6   :  { %3214 = vmatpush1.bf16.msra.mxu0 %v10386_v42  ;;  %v10446_v42 = vld [vmem:[#allocation4 + $0x9f4] ss:$24 sps:$4 sm:$0xff]  }
 0x1d7   :  { %3255 = vmatpush1.bf16.msra.mxu1 %v10389_v43  ;;  %3215 = vmatprep.subr.bf16.mxu0 %v10394_v45  ;;  %v10449_v43 = vld [vmem:[#allocation4 + $0x9fc] ss:$24 sps:$4 sm:$0xff]  }
 0x1d8   :  { %3256 = vmatprep.subr.bf16.mxu1 %v10397_v46  ;;  %v10444_v46 = vld [vmem:[#allocation4 + $0x9f0] ss:$24 sps:$4 sm:$0xff]  }
 0x1da   :  { %3216 = vmatpush1.bf16.msra.mxu0 %v10392_v47  ;;  %v10447_v47 = vld [vmem:[#allocation4 + $0x9f8] ss:$24 sps:$4 sm:$0xff]  }
 0x1db   :  { %3257 = vmatpush1.bf16.msra.mxu1 %v10395_v48  ;;  %3217 = vmatprep.subr.bf16.mxu0 %v10400_v49  ;;  %v10452_v48 = vld [vmem:[#allocation4 + $0xa24] ss:$24 sps:$4 sm:$0xff]  }
 0x1dc   :  { %3258 = vmatprep.subr.bf16.mxu1 %v10403_v51  ;;  %v10455_v49 = vld [vmem:[#allocation4 + $0xa2c] ss:$24 sps:$4 sm:$0xff]   ;;  %v10453_v51 = vld [vmem:[#allocation4 + $0xa28] ss:$24 sps:$4 sm:$0xff]  }
 0x1de   :  { %3218 = vmatpush1.bf16.msra.mxu0 %v10398_v52  ;;  %v10458_v52 = vld [vmem:[#allocation4 + $0xa54] ss:$24 sps:$4 sm:$0xff]  }
 0x1df   :  { %3259 = vmatpush1.bf16.msra.mxu1 %v10401_v55  ;;  %3219 = vmatprep.subr.bf16.mxu0 %v10406_v56  ;;  %v10461_v55 = vld [vmem:[#allocation4 + $0xa5c] ss:$24 sps:$4 sm:$0xff]   ;;  %v10459_v56 = vld [vmem:[#allocation4 + $0xa58] ss:$24 sps:$4 sm:$0xff]  }
 0x1e0   :  { %3260 = vmatprep.subr.bf16.mxu1 %v10409_v57  ;;  %v10464_v57 = vld [vmem:[#allocation4 + $0xa84] ss:$24 sps:$4 sm:$0xff]  }
 0x1e2   :  { %3220 = vmatpush1.bf16.msra.mxu0 %v10404_v58  ;;  %v10467_v58 = vld [vmem:[#allocation4 + $0xa8c] ss:$24 sps:$4 sm:$0xff]  }
 0x1e3   :  { %3261 = vmatpush1.bf16.msra.mxu1 %v10407_v59  ;;  %3221 = vmatprep.subr.bf16.mxu0 %v10412_v60  ;;  %v10462_v59 = vld [vmem:[#allocation4 + $0xa80] ss:$24 sps:$4 sm:$0xff]  }
 0x1e4   :  { %3262 = vmatprep.subr.bf16.mxu1 %v10415_v61  ;;  %v10465_v60 = vld [vmem:[#allocation4 + $0xa88] ss:$24 sps:$4 sm:$0xff]   ;;  %v10470_v61 = vld [vmem:[#allocation4 + $0xab4] ss:$24 sps:$4 sm:$0xff]  }
 0x1e6   :  { %3222 = vmatpush1.bf16.msra.mxu0 %v10410_v62  ;;  %v10473_v62 = vld [vmem:[#allocation4 + $0xabc] ss:$24 sps:$4 sm:$0xff]  }
 0x1e7   :  { %3263 = vmatpush1.bf16.msra.mxu1 %v10413_v63  ;;  %3223 = vmatprep.subr.bf16.mxu0 %v10418_v0  ;;  %v10468_v63 = vld [vmem:[#allocation4 + $0xab0] ss:$24 sps:$4 sm:$0xff]  }
 0x1e8   :  { %3264 = vmatprep.subr.bf16.mxu1 %v10421_v1  ;;  %v10471_v0 = vld [vmem:[#allocation4 + $0xab8] ss:$24 sps:$4 sm:$0xff]   ;;  %v10476_v1 = vld [vmem:[#allocation4 + $0xae4] ss:$24 sps:$4 sm:$0xff]  }
 0x1ea   :  { %3224 = vmatpush1.bf16.msra.mxu0 %v10416_v6  ;;  %v10477_v6 = vld [vmem:[#allocation4 + $0xae8] ss:$24 sps:$4 sm:$0xff]  }
 0x1eb   :  { %3265 = vmatpush1.bf16.msra.mxu1 %v10419_v50  ;;  %8799 = vmatprep.subr.msk.bf16.mxu0 %vm1554_vm1, %v8794_v7  ;;  %v10482_v50 = vld [vmem:[#allocation4 + $0xb14] ss:$24 sps:$4 sm:$0xff]  }
 0x1ec   :  { %8801 = vmatprep.subr.msk.bf16.mxu1 %vm1554_vm1, %v8796_v8  ;;  %v10485_v7 = vld [vmem:[#allocation4 + $0xb1c] ss:$24 sps:$4 sm:$0xff]   ;;  %v10480_v8 = vld [vmem:[#allocation4 + $0xb10] ss:$24 sps:$4 sm:$0xff]  }
 0x1ee   :  { %3226 = vmatpush1.bf16.msra.mxu0 %v3149_v11  ;;  %v10486_v11 = vld [vmem:[#allocation4 + $0xb40] ss:$24 sps:$4 sm:$0xff]  }
 0x1ef   :  { %3267 = vmatpush1.bf16.msra.mxu1 %v3155_v9  ;;  %3689 = vmatprep.subr.bf16.mxu0 %v10428_v21  ;;  %v10491_v21 = vld [vmem:[#allocation4 + $0xb4c] ss:$24 sps:$4 sm:$0xff]   ;;  %v10489_v9 = vld [vmem:[#allocation4 + $0xb48] ss:$24 sps:$4 sm:$0xff]  }
 0x1f0   :  { %3730 = vmatprep.subr.bf16.mxu1 %v10431_v13  ;;  %v10494_v13 = vld [vmem:[#allocation4 + $0xb74] ss:$24 sps:$4 sm:$0xff]  }
 0x1f1   :  { %3234 = vmatmul.mubr.bf16.vlgmr.msra.gmra.mrb[20].mxu0 %v11915_v15 }
 0x1f2   :  { %3275 = vmatmul.mubr.bf16.vlgmr.msra.gmra.mrb[20].mxu1 %v11915_v15  ;;  %3690 = vmatpush1.bf16.msra.mxu0 %v10426_v53  ;;  %v10497_v53 = vld [vmem:[#allocation4 + $0xb7c] ss:$24 sps:$4 sm:$0xff]  }
 0x1f3   :  { %3731 = vmatpush1.bf16.msra.mxu1 %v10429_v25  ;;  %3691 = vmatprep.subr.bf16.mxu0 %v10434_v26  ;;  %v557_v25 = vld [vmem:[#allocation4 + $0xba0] sm:$0xff]  ;;  %v558_v26 = vld [vmem:[#allocation4 + $0xba8] sm:$0xff] }
 0x1f4   :  { %3732 = vmatprep.subr.bf16.mxu1 %v10437_v27  ;;  %v11949_v31 = vpop.f32.mrb[4].mxu0  ;;  %8883 = vmatprep.mubr.msk.bf16.mxu0 %vm1550_vm0, %v11945_v28  ;;  %v10492_v27 = vld [vmem:[#allocation4 + $0xb70] ss:$24 sps:$4 sm:$0xff]  }
 0x1f5   :  { %v2136_v20 = vpop.f32.mrb[4].mxu1  ;;  %8885 = vmatprep.mubr.msk.bf16.mxu1 %vm1550_vm0, %v11945_v28  ;;  %v11955_v33 = vpop.f32.mrb[5].mxu0 }
 0x1f6   :  { %v7587_v15 = vrot.slane %v2136_v20, 7  ;;  %v2138_v34 = vpop.f32.mrb[5].mxu1  ;;  %v1693_v36 = vpop.f32.mrb[6].mxu0  ;;  %3692 = vmatpush1.bf16.msra.mxu0 %v10432_v16  ;;  %v10495_v16 = vld [vmem:[#allocation4 + $0xb78] ss:$24 sps:$4 sm:$0xff]   ;;  %v8878_v20 = vcombine.low %v558_v26, %v558_v26 }
 0x1f7   :  { %v7608_v35 = vrot.slane %v2138_v34, 7  ;;  %v2140_v37 = vpop.f32.mrb[6].mxu1  ;;  %3733 = vmatpush1.bf16.msra.mxu1 %v10435_v18  ;;  %v1694_v40 = vpop.f32.mrb[7].mxu0  ;;  %3693 = vmatprep.subr.bf16.mxu0 %v10440_v29  ;;  %v8876_v18 = vcombine.low %v557_v25, %v557_v25  ;;  %v8877_v29 = vcombine.high %v557_v25, %v557_v25  ;;  %v10507_v36 = vld [vmem:[#allocation4 + $0xbbc] ss:$24 sps:$4 sm:$0xff]  }
 0x1f8   :  { %v11959_v39 = vsel %vm7588_vm2, %v7587_v15, %v11919_v12  ;;  %v2141_v41 = vpop.f32.mrb[7].mxu1  ;;  %3734 = vmatprep.subr.bf16.mxu1 %v10443_v30  ;;  %v10450_v12 = vld [vmem:[#allocation4 + $0xa20] ss:$24 sps:$4 sm:$0xff]   ;;  %v8879_v30 = vcombine.high %v558_v26, %v558_v26  ;;  %v3678_v34 = vsel %vm1554_vm1, %v8878_v20, 0  ;;  %v10540_v25 = vld [vmem:[#allocation4 + $0xa94] ss:$24 sps:$4 sm:$0xff]  }
 0x1f9   :  { %v11963_v45 = vsel %vm7588_vm2, %v7608_v35, %v11927_v14  ;;  %v10456_v14 = vld [vmem:[#allocation4 + $0xa50] ss:$24 sps:$4 sm:$0xff]   ;;  %v3672_v15 = vsel %vm1554_vm1, %v8876_v18, 0  ;;  %v10504_v35 = vld [vmem:[#allocation4 + $0x974] ss:$24 sps:$4 sm:$0xff]  }
 0x1fa   :  { %3694 = vmatpush1.bf16.msra.mxu0 %v10438_v32  ;;  %v1158_v32 = vunpack.i.h.s16 %v11933_v10  ;;  %v10502_v10 = vld [vmem:[#allocation4 + $0x970] ss:$24 sps:$4 sm:$0xff]   ;;  %v10510_v41 = vld [vmem:[#allocation4 + $0x9a4] ss:$24 sps:$4 sm:$0xff]  }
 0x1fb   :  { %3735 = vmatpush1.bf16.msra.mxu1 %v10441_v38  ;;  %3695 = vmatprep.subr.bf16.mxu0 %v10446_v42  ;;  %v11974_v38 = vrot.slane %v11941_v22, %v11831_v5  ;;  %v10505_v40 = vld [vmem:[#allocation4 + $0xbb8] ss:$24 sps:$4 sm:$0xff]   ;;  %v10513_v42 = vld [vmem:[#allocation4 + $0xbec] ss:$24 sps:$4 sm:$0xff]   ;;  %v10543_v26 = vld [vmem:[#allocation4 + $0xcdc] ss:$24 sps:$4 sm:$0xff]  }
 0x1fc   :  { %3736 = vmatprep.subr.bf16.mxu1 %v10449_v43  ;;  %v11970_v37 = vpack.i.b16 %v1158_v32, %v1158_v32  ;;  %v10508_v22 = vld [vmem:[#allocation4 + $0x9a0] ss:$24 sps:$4 sm:$0xff]   ;;  %v10546_v18 = vld [vmem:[#allocation4 + $0xac4] ss:$24 sps:$4 sm:$0xff]   ;;  %v10552_v32 = vld [vmem:[#allocation4 + $0xaf4] ss:$24 sps:$4 sm:$0xff]  }
 0x1fd   :  { %v10547_v20 = vld [vmem:[#allocation4 + $0xd08] ss:$24 sps:$4 sm:$0xff]  }
 0x1fe   :  { %3696 = vmatpush1.bf16.msra.mxu0 %v10444_v46  ;;  %v11978_v43 = vrot.slane %v11970_v37, %v11823_v54  ;;  %v10511_v46 = vld [vmem:[#allocation4 + $0xbe8] ss:$24 sps:$4 sm:$0xff]  }
 0x1ff   :  { %3737 = vmatpush1.bf16.msra.mxu1 %v10447_v47  ;;  %3697 = vmatprep.subr.bf16.mxu0 %v10452_v48  ;;  %v10516_v47 = vld [vmem:[#allocation4 + $0x9d4] ss:$24 sps:$4 sm:$0xff]  }
 0x200   :  { %3738 = vmatprep.subr.bf16.mxu1 %v10455_v49  ;;  %v10519_v48 = vld [vmem:[#allocation4 + $0xc1c] ss:$24 sps:$4 sm:$0xff]  }
 0x202   :  { %3698 = vmatpush1.bf16.msra.mxu0 %v10450_v12 }
 0x203   :  { %3739 = vmatpush1.bf16.msra.mxu1 %v10453_v51  ;;  %3699 = vmatprep.subr.bf16.mxu0 %v10458_v52  ;;  %v10514_v51 = vld [vmem:[#allocation4 + $0x9d0] ss:$24 sps:$4 sm:$0xff]  }
 0x204   :  { %3740 = vmatprep.subr.bf16.mxu1 %v10461_v55 }
 0x206   :  { %3700 = vmatpush1.bf16.msra.mxu0 %v10456_v14 }
 0x207   :  { %3741 = vmatpush1.bf16.msra.mxu1 %v10459_v56  ;;  %3701 = vmatprep.subr.bf16.mxu0 %v10464_v57 }
 0x208   :  { %3742 = vmatprep.subr.bf16.mxu1 %v10467_v58 }
 0x20a   :  { %3702 = vmatpush1.bf16.msra.mxu0 %v10462_v59 }
 0x20b   :  { %3743 = vmatpush1.bf16.msra.mxu1 %v10465_v60  ;;  %3703 = vmatprep.subr.bf16.mxu0 %v10470_v61  ;;  %v10517_v61 = vld [vmem:[#allocation4 + $0xc18] ss:$24 sps:$4 sm:$0xff]  }
 0x20c   :  { %3744 = vmatprep.subr.bf16.mxu1 %v10473_v62 }
 0x20e   :  { %3704 = vmatpush1.bf16.msra.mxu0 %v10468_v63 }
 0x20f   :  { %3745 = vmatpush1.bf16.msra.mxu1 %v10471_v0  ;;  %3705 = vmatprep.subr.bf16.mxu0 %v10476_v1  ;;  %v10522_v1 = vld [vmem:[#allocation4 + $0xa04] ss:$24 sps:$4 sm:$0xff]  }
 0x210   :  { %3746 = vmatprep.subr.bf16.mxu1 %v10479_v2  ;;  %v10525_v2 = vld [vmem:[#allocation4 + $0xc4c] ss:$24 sps:$4 sm:$0xff]  }
 0x212   :  { %3706 = vmatpush1.bf16.msra.mxu0 %v10474_v3 }
 0x213   :  { %3747 = vmatpush1.bf16.msra.mxu1 %v10477_v6  ;;  %3707 = vmatprep.subr.bf16.mxu0 %v10482_v50  ;;  %v10523_v50 = vld [vmem:[#allocation4 + $0xc48] ss:$24 sps:$4 sm:$0xff]  }
 0x214   :  { %3748 = vmatprep.subr.bf16.mxu1 %v10485_v7 }
 0x216   :  { %3708 = vmatpush1.bf16.msra.mxu0 %v10480_v8  ;;  %v10528_v8 = vld [vmem:[#allocation4 + $0xa34] ss:$24 sps:$4 sm:$0xff]  }
 0x217   :  { %3749 = vmatpush1.bf16.msra.mxu1 %v10483_v17  ;;  %3709 = vmatprep.subr.bf16.mxu0 %v10488_v19  ;;  %v10531_v17 = vld [vmem:[#allocation4 + $0xc7c] ss:$24 sps:$4 sm:$0xff]   ;;  %v11343_v19 = vld [vmem:[#allocation7] sm:$0xff] }
 0x218   :  { %3750 = vmatprep.subr.bf16.mxu1 %v10491_v21 }
 0x21a   :  { %3710 = vmatpush1.bf16.msra.mxu0 %v10486_v11  ;;  %v10529_v11 = vld [vmem:[#allocation4 + $0xc78] ss:$24 sps:$4 sm:$0xff]  }
 0x21b   :  { %3751 = vmatpush1.bf16.msra.mxu1 %v10489_v9  ;;  %3711 = vmatprep.subr.bf16.mxu0 %v10494_v13  ;;  %v10537_v9 = vld [vmem:[#allocation4 + $0xcac] ss:$24 sps:$4 sm:$0xff]   ;;  %v10532_v13 = vld [vmem:[#allocation4 + $0xa60] ss:$24 sps:$4 sm:$0xff]  }
 0x21c   :  { %3752 = vmatprep.subr.bf16.mxu1 %v10497_v53  ;;  %v10535_v53 = vld [vmem:[#allocation4 + $0xca8] ss:$24 sps:$4 sm:$0xff]  }
 0x21e   :  { %3712 = vmatpush1.bf16.msra.mxu0 %v10492_v27  ;;  %v10538_v27 = vld [vmem:[#allocation4 + $0xa90] ss:$24 sps:$4 sm:$0xff]  }
 0x21f   :  { %3753 = vmatpush1.bf16.msra.mxu1 %v10495_v16  ;;  %8882 = vmatprep.subr.msk.bf16.mxu0 %vm1554_vm1, %v8877_v29  ;;  %v10541_v16 = vld [vmem:[#allocation4 + $0xcd8] ss:$24 sps:$4 sm:$0xff]   ;;  %v10549_v29 = vld [vmem:[#allocation4 + $0xd0c] ss:$24 sps:$4 sm:$0xff]  }
 0x220   :  { %8884 = vmatprep.subr.msk.bf16.mxu1 %vm1554_vm1, %v8879_v30  ;;  %v10544_v30 = vld [vmem:[#allocation4 + $0xac0] ss:$24 sps:$4 sm:$0xff]  }
 0x222   :  { %3714 = vmatpush1.bf16.msra.mxu0 %v3672_v15  ;;  %v10555_v15 = vld [vmem:[#allocation4 + $0xd3c] ss:$24 sps:$4 sm:$0xff]  }
 0x223   :  { %3755 = vmatpush1.bf16.msra.mxu1 %v3678_v34  ;;  %3771 = vmatprep.subr.bf16.mxu0 %v10504_v35  ;;  %v10550_v34 = vld [vmem:[#allocation4 + $0xaf0] ss:$24 sps:$4 sm:$0xff]  }
 0x224   :  { %4218 = vmatprep.subr.bf16.mxu1 %v10507_v36  ;;  %v10553_v35 = vld [vmem:[#allocation4 + $0xd38] ss:$24 sps:$4 sm:$0xff]   ;;  %v10558_v36 = vld [vmem:[#allocation4 + $0xb24] ss:$24 sps:$4 sm:$0xff]  }
 0x225   :  { %3722 = vmatmul.mubr.bf16.vlgmr.msra.gmra.mrb[24].mxu0 %v11974_v38 }
 0x226   :  { %3763 = vmatmul.mubr.bf16.vlgmr.msra.gmra.mrb[24].mxu1 %v11974_v38  ;;  %3772 = vmatpush1.bf16.msra.mxu0 %v10502_v10  ;;  %v10561_v10 = vld [vmem:[#allocation4 + $0xd6c] ss:$24 sps:$4 sm:$0xff]  }
 0x227   :  { %4219 = vmatpush1.bf16.msra.mxu1 %v10505_v40  ;;  %3773 = vmatprep.subr.bf16.mxu0 %v10510_v41  ;;  %v10556_v40 = vld [vmem:[#allocation4 + $0xb20] ss:$24 sps:$4 sm:$0xff]  }
 0x228   :  { %4220 = vmatprep.subr.bf16.mxu1 %v10513_v42  ;;  %v2177_v49 = vpop.f32.mrb[8].mxu0  ;;  %8887 = vmatprep.mubr.msk.bf16.mxu0 %vm1550_vm0, %v11945_v28  ;;  %v10559_v41 = vld [vmem:[#allocation4 + $0xd68] ss:$24 sps:$4 sm:$0xff]   ;;  %v10564_v42 = vld [vmem:[#allocation4 + $0xb54] ss:$24 sps:$4 sm:$0xff]  }
 0x229   :  { %v2218_v12 = vpop.f32.mrb[8].mxu1  ;;  %8967 = vmatprep.mubr.msk.bf16.mxu1 %vm1550_vm0, %v11978_v43  ;;  %v7622_v52 = vrot.slane %v2177_v49, 7  ;;  %v2179_v14 = vpop.f32.mrb[9].mxu0  ;;  %v10573_v49 = vld [vmem:[#allocation4 + $0xdcc] ss:$24 sps:$4 sm:$0xff]  }
 0x22a   :  { %v7650_v55 = vrot.slane %v2218_v12, 7  ;;  %v2220_v56 = vpop.f32.mrb[9].mxu1  ;;  %v7636_v57 = vrot.slane %v2179_v14, 7  ;;  %v2181_v59 = vpop.f32.mrb[10].mxu0  ;;  %3774 = vmatpush1.bf16.msra.mxu0 %v10508_v22  ;;  %v10567_v22 = vld [vmem:[#allocation4 + $0xd9c] ss:$24 sps:$4 sm:$0xff]  }
 0x22b   :  { %v7664_v58 = vrot.slane %v2220_v56, 7  ;;  %v2222_v60 = vpop.f32.mrb[10].mxu1  ;;  %4221 = vmatpush1.bf16.msra.mxu1 %v10511_v46  ;;  %v11988_v62 = vsel %vm7588_vm2, %v7622_v52, %v11921_v23  ;;  %v2182_v63 = vpop.f32.mrb[11].mxu0  ;;  %3775 = vmatprep.subr.bf16.mxu0 %v10516_v47  ;;  %v10520_v23 = vld [vmem:[#allocation4 + $0xa00] ss:$24 sps:$4 sm:$0xff]   ;;  %v559_v12 = vld [vmem:[#allocation4 + $0xbb0] sm:$0xff] }
 0x22c   :  { %v11992_v28 = vsel %vm7588_vm2, %v7650_v55, %v11949_v31  ;;  %v2223_v0 = vpop.f32.mrb[11].mxu1  ;;  %4222 = vmatprep.subr.bf16.mxu1 %v10519_v48  ;;  %v11996_v3 = vsel %vm7588_vm2, %v7636_v57, %v11929_v24  ;;  %v11342_v31 = vld [vmem:[#allocation7 + $0x8] sm:$0xff]  ;;  %v10565_v47 = vld [vmem:[#allocation4 + $0xd98] ss:$24 sps:$4 sm:$0xff]   ;;  %v10570_v48 = vld [vmem:[#allocation4 + $0xb84] ss:$24 sps:$4 sm:$0xff]   ;;  %v8880_v14 = vcombine.low %v559_v12, %v559_v12  ;;  %v8881_v56 = vcombine.high %v559_v12, %v559_v12 }
 0x22d   :  { %v12000_v6 = vsel %vm7588_vm2, %v7664_v58, %v11955_v33  ;;  %v7752_v7 = vsel %vm1550_vm0, %v11342_v31, 0.0  ;;  %v10526_v24 = vld [vmem:[#allocation4 + $0xa30] ss:$24 sps:$4 sm:$0xff]   ;;  %v10534_v33 = vld [vmem:[#allocation4 + $0xa64] ss:$24 sps:$4 sm:$0xff]   ;;  %v12009_v0 = vrot.slane %v11970_v37, %v11831_v5 }
 0x22e   :  { %3776 = vmatpush1.bf16.msra.mxu0 %v10514_v51  ;;  %v7753_v21 = vadd.f32 %v11343_v19, %v7752_v7  ;;  %v10562_v46 = vld [vmem:[#allocation4 + $0xb50] ss:$24 sps:$4 sm:$0xff]   ;;  %v632_v51 = vld [vmem:[#allocation4 + $0xdf8] sm:$0xff]  ;;  %v3684_v59 = vsel %vm1554_vm1, %v8880_v14, 0  ;;  %v10583_v63 = vld [vmem:[#allocation4 + $0xbcc] ss:$24 sps:$4 sm:$0xff]  }
 0x22f   :  { %4223 = vmatpush1.bf16.msra.mxu1 %v10517_v61  ;;  %3777 = vmatprep.subr.bf16.mxu0 %v10522_v1  ;;  %v10568_v52 = vld [vmem:[#allocation4 + $0xb80] ss:$24 sps:$4 sm:$0xff]   ;;  %v8961_v57 = vcombine.high %v632_v51, %v632_v51  ;;  %v8960_v58 = vcombine.low %v632_v51, %v632_v51  ;;  %v10580_v61 = vld [vmem:[#allocation4 + $0xbc4] ss:$24 sps:$4 sm:$0xff]   ;;  %v10584_v31 = vld [vmem:[#allocation4 + $0xbf0] ss:$24 sps:$4 sm:$0xff]  }
 0x230   :  { %4224 = vmatprep.subr.bf16.mxu1 %v10525_v2  ;;  %7754 = vadd.xlane.f32.xlu0 %v7753_v21  ;;  %v10571_v55 = vld [vmem:[#allocation4 + $0xdc8] ss:$24 sps:$4 sm:$0xff]   ;;  %v10587_v7 = vld [vmem:[#allocation4 + $0xbf8] ss:$24 sps:$4 sm:$0xff]   ;;  %v10592_v37 = vld [vmem:[#allocation4 + $0xc24] ss:$24 sps:$4 sm:$0xff]  }
 0x231   :  { %v4201_v60 = vsel %vm1554_vm1, %v8960_v58, 0  ;;  %v10578_v1 = vld [vmem:[#allocation4 + $0xbc0] ss:$24 sps:$4 sm:$0xff]   ;;  %v10628_v51 = vld [vmem:[#allocation4 + $0xd44] ss:$24 sps:$4 sm:$0xff]  }
 0x232   :  { %3778 = vmatpush1.bf16.msra.mxu0 %v10520_v23  ;;  %v10581_v2 = vld [vmem:[#allocation4 + $0xbc8] ss:$24 sps:$4 sm:$0xff]   ;;  %v10586_v23 = vld [vmem:[#allocation4 + $0xbf4] ss:$24 sps:$4 sm:$0xff]   ;;  %v10623_v12 = vld [vmem:[#allocation4 + $0xd18] ss:$24 sps:$4 sm:$0xff]  }
 0x233   :  { %4225 = vmatpush1.bf16.msra.mxu1 %v10523_v50  ;;  %3779 = vmatprep.subr.bf16.mxu0 %v10528_v8  ;;  %v10589_v50 = vld [vmem:[#allocation4 + $0xbfc] ss:$24 sps:$4 sm:$0xff]   ;;  %v10595_v8 = vld [vmem:[#allocation4 + $0xc2c] ss:$24 sps:$4 sm:$0xff]   ;;  %v10590_v21 = vld [vmem:[#allocation4 + $0xc20] ss:$24 sps:$4 sm:$0xff]  }
 0x234   :  { %4226 = vmatprep.subr.bf16.mxu1 %v10531_v17  ;;  %v10629_v14 = vld [vmem:[#allocation4 + $0xd48] ss:$24 sps:$4 sm:$0xff]  }
 0x235   :  { %v10632_v58 = vld [vmem:[#allocation4 + $0xd70] ss:$24 sps:$4 sm:$0xff]  }
 0x236   :  { %3780 = vmatpush1.bf16.msra.mxu0 %v10526_v24 }
 0x237   :  { %4227 = vmatpush1.bf16.msra.mxu1 %v10529_v11  ;;  %3781 = vmatprep.subr.bf16.mxu0 %v10534_v33 }
 0x238   :  { %4228 = vmatprep.subr.bf16.mxu1 %v10537_v9 }
 0x23a   :  { %3782 = vmatpush1.bf16.msra.mxu0 %v10532_v13 }
 0x23b   :  { %4229 = vmatpush1.bf16.msra.mxu1 %v10535_v53  ;;  %3783 = vmatprep.subr.bf16.mxu0 %v10540_v25 }
 0x23c   :  { %4230 = vmatprep.subr.bf16.mxu1 %v10543_v26  ;;  %v10593_v26 = vld [vmem:[#allocation4 + $0xc28] ss:$24 sps:$4 sm:$0xff]  }
 0x23e   :  { %3784 = vmatpush1.bf16.msra.mxu0 %v10538_v27 }
 0x23f   :  { %4231 = vmatpush1.bf16.msra.mxu1 %v10541_v16  ;;  %3785 = vmatprep.subr.bf16.mxu0 %v10546_v18 }
 0x240   :  { %4232 = vmatprep.subr.bf16.mxu1 %v10549_v29  ;;  %v10598_v29 = vld [vmem:[#allocation4 + $0xc54] ss:$24 sps:$4 sm:$0xff]  }
 0x242   :  { %3786 = vmatpush1.bf16.msra.mxu0 %v10544_v30  ;;  %v10601_v30 = vld [vmem:[#allocation4 + $0xc5c] ss:$24 sps:$4 sm:$0xff]  }
 0x243   :  { %4233 = vmatpush1.bf16.msra.mxu1 %v10547_v20  ;;  %3787 = vmatprep.subr.bf16.mxu0 %v10552_v32 }
 0x244   :  { %4234 = vmatprep.subr.bf16.mxu1 %v10555_v15  ;;  %v10599_v15 = vld [vmem:[#allocation4 + $0xc58] ss:$24 sps:$4 sm:$0xff]  }
 0x246   :  { %3788 = vmatpush1.bf16.msra.mxu0 %v10550_v34  ;;  %v10607_v34 = vld [vmem:[#allocation4 + $0xc8c] ss:$24 sps:$4 sm:$0xff]  }
 0x247   :  { %4235 = vmatpush1.bf16.msra.mxu1 %v10553_v35  ;;  %3789 = vmatprep.subr.bf16.mxu0 %v10558_v36  ;;  %v10602_v35 = vld [vmem:[#allocation4 + $0xc80] ss:$24 sps:$4 sm:$0xff]  }
 0x248   :  { %4236 = vmatprep.subr.bf16.mxu1 %v10561_v10  ;;  %v10605_v36 = vld [vmem:[#allocation4 + $0xc88] ss:$24 sps:$4 sm:$0xff]   ;;  %v10613_v10 = vld [vmem:[#allocation4 + $0xcbc] ss:$24 sps:$4 sm:$0xff]  }
 0x24a   :  { %3790 = vmatpush1.bf16.msra.mxu0 %v10556_v40  ;;  %v10611_v40 = vld [vmem:[#allocation4 + $0xcb8] ss:$24 sps:$4 sm:$0xff]  }
 0x24b   :  { %4237 = vmatpush1.bf16.msra.mxu1 %v10559_v41  ;;  %3791 = vmatprep.subr.bf16.mxu0 %v10564_v42  ;;  %v10616_v41 = vld [vmem:[#allocation4 + $0xce4] ss:$24 sps:$4 sm:$0xff]  }
 0x24c   :  { %4238 = vmatprep.subr.bf16.mxu1 %v10567_v22  ;;  %v10619_v42 = vld [vmem:[#allocation4 + $0xcec] ss:$24 sps:$4 sm:$0xff]   ;;  %v10614_v22 = vld [vmem:[#allocation4 + $0xce0] ss:$24 sps:$4 sm:$0xff]  }
 0x24e   :  { %3792 = vmatpush1.bf16.msra.mxu0 %v10562_v46  ;;  %v10617_v46 = vld [vmem:[#allocation4 + $0xce8] ss:$24 sps:$4 sm:$0xff]  }
 0x24f   :  { %4239 = vmatpush1.bf16.msra.mxu1 %v10565_v47  ;;  %3793 = vmatprep.subr.bf16.mxu0 %v10570_v48  ;;  %v10622_v47 = vld [vmem:[#allocation4 + $0xd14] ss:$24 sps:$4 sm:$0xff]  }
 0x250   :  { %4240 = vmatprep.subr.bf16.mxu1 %v10573_v49  ;;  %v10625_v48 = vld [vmem:[#allocation4 + $0xd1c] ss:$24 sps:$4 sm:$0xff]   ;;  %v10620_v49 = vld [vmem:[#allocation4 + $0xd10] ss:$24 sps:$4 sm:$0xff]  }
 0x252   :  { %3794 = vmatpush1.bf16.msra.mxu0 %v10568_v52  ;;  %v10631_v52 = vld [vmem:[#allocation4 + $0xd4c] ss:$24 sps:$4 sm:$0xff]  }
 0x253   :  { %4241 = vmatpush1.bf16.msra.mxu1 %v10571_v55  ;;  %8886 = vmatprep.subr.msk.bf16.mxu0 %vm1554_vm1, %v8881_v56  ;;  %v10626_v55 = vld [vmem:[#allocation4 + $0xd40] ss:$24 sps:$4 sm:$0xff]   ;;  %v10634_v56 = vld [vmem:[#allocation4 + $0xd74] ss:$24 sps:$4 sm:$0xff]  }
 0x254   :  { %8966 = vmatprep.subr.msk.bf16.mxu1 %vm1554_vm1, %v8961_v57  ;;  %v10637_v57 = vld [vmem:[#allocation4 + $0xd7c] ss:$24 sps:$4 sm:$0xff]  }
 0x256   :  { %3796 = vmatpush1.bf16.msra.mxu0 %v3684_v59  ;;  %v10635_v59 = vld [vmem:[#allocation4 + $0xd78] ss:$24 sps:$4 sm:$0xff]  }
 0x257   :  { %4243 = vmatpush1.bf16.msra.mxu1 %v4201_v60  ;;  %4259 = vmatprep.subr.bf16.mxu0 %v10580_v61  ;;  %v10640_v60 = vld [vmem:[#allocation4 + $0xda4] ss:$24 sps:$4 sm:$0xff]  }
 0x258   :  { %4300 = vmatprep.subr.bf16.mxu1 %v10583_v63  ;;  %v10643_v61 = vld [vmem:[#allocation4 + $0xdac] ss:$24 sps:$4 sm:$0xff]   ;;  %v10638_v63 = vld [vmem:[#allocation4 + $0xda0] ss:$24 sps:$4 sm:$0xff]  }
 0x259   :  { %3804 = vmatmul.mubr.bf16.vlgmr.msra.gmra.mrb[28].mxu0 %v11974_v38 }
 0x25a   :  { %4251 = vmatmul.mubr.bf16.vlgmr.msra.gmra.mrb[28].mxu1 %v12009_v0  ;;  %4260 = vmatpush1.bf16.msra.mxu0 %v10578_v1  ;;  %v10641_v1 = vld [vmem:[#allocation4 + $0xda8] ss:$24 sps:$4 sm:$0xff]  }
 0x25b   :  { %4301 = vmatpush1.bf16.msra.mxu1 %v10581_v2  ;;  %4261 = vmatprep.subr.bf16.mxu0 %v10586_v23  ;;  %v10646_v2 = vld [vmem:[#allocation4 + $0xdd4] ss:$24 sps:$4 sm:$0xff]  }
 0x25c   :  { %4302 = vmatprep.subr.bf16.mxu1 %v10589_v50  ;;  %v2665_v17 = vpop.f32.mrb[12].mxu0  ;;  %8969 = vmatprep.mubr.msk.bf16.mxu0 %vm1550_vm0, %v11978_v43  ;;  %v10649_v23 = vld [vmem:[#allocation4 + $0xddc] ss:$24 sps:$4 sm:$0xff]   ;;  %v633_v50 = vld [vmem:[#allocation4 + $0xe00] sm:$0xff] }
 0x25d   :  { %v2706_v19 = vpop.f32.mrb[12].mxu1  ;;  %8971 = vmatprep.mubr.msk.bf16.mxu1 %vm1550_vm0, %v11978_v43  ;;  %v7590_v38 = vrot.slane %v2665_v17, 6  ;;  %v2667_v11 = vpop.f32.mrb[13].mxu0  ;;  %v8963_v17 = vcombine.high %v633_v50, %v633_v50 }
 0x25e   :  { %v7624_v24 = vrot.slane %v2706_v19, 6  ;;  %v2708_v33 = vpop.f32.mrb[13].mxu1  ;;  %v7610_v9 = vrot.slane %v2667_v11, 6  ;;  %v2669_v53 = vpop.f32.mrb[14].mxu0  ;;  %4262 = vmatpush1.bf16.msra.mxu0 %v10584_v31  ;;  %v634_v31 = vld [vmem:[#allocation4 + $0xe08] sm:$0xff] }
 0x25f   :  { %v7638_v13 = vrot.slane %v2708_v33, 6  ;;  %v2710_v25 = vpop.f32.mrb[14].mxu1  ;;  %4303 = vmatpush1.bf16.msra.mxu1 %v10587_v7  ;;  %v12019_v27 = vsel %vm7591_vm3, %v7590_v38, %v11959_v39  ;;  %v2670_v43 = vpop.f32.mrb[15].mxu0  ;;  %4263 = vmatprep.subr.bf16.mxu0 %v10592_v37  ;;  %v10596_v39 = vld [vmem:[#allocation4 + $0xc50] ss:$24 sps:$4 sm:$0xff]   ;;  %v8965_v19 = vcombine.high %v634_v31, %v634_v31  ;;  %v12035_v38 = vcombine.high %v11868_v4, %v11868_v4 }
 0x260   :  { %v12023_v16 = vsel %vm7591_vm3, %v7624_v24, %v11988_v62  ;;  %v2711_v18 = vpop.f32.mrb[15].mxu1  ;;  %4304 = vmatprep.subr.bf16.mxu1 %v10595_v8  ;;  %v12027_v20 = vsel %vm7591_vm3, %v7610_v9, %v11963_v45  ;;  %v10604_v62 = vld [vmem:[#allocation4 + $0xc84] ss:$24 sps:$4 sm:$0xff]   ;;  %v10610_v45 = vld [vmem:[#allocation4 + $0xcb4] ss:$24 sps:$4 sm:$0xff]   ;;  %v8962_v8 = vcombine.low %v633_v50, %v633_v50 }
 0x261   :  { %v12031_v32 = vsel %vm7591_vm3, %v7638_v13, %v11996_v3  ;;  %v10608_v3 = vld [vmem:[#allocation4 + $0xcb0] ss:$24 sps:$4 sm:$0xff]   ;;  %v10656_v33 = vld [vmem:[#allocation4 + $0xe14] ss:$24 sps:$4 sm:$0xff]   ;;  %v12043_v13 = vpack.i.b16 %v12035_v38, %v12035_v38  ;;  %v10662_v25 = vld [vmem:[#allocation4 + $0xe44] ss:$24 sps:$4 sm:$0xff]  }
 0x262   :  { %4264 = vmatpush1.bf16.msra.mxu0 %v10590_v21  ;;  %v10644_v7 = vld [vmem:[#allocation4 + $0xdd0] ss:$24 sps:$4 sm:$0xff]   ;;  %v8964_v21 = vcombine.low %v634_v31, %v634_v31  ;;  %v4207_v24 = vsel %vm1554_vm1, %v8962_v8, 0  ;;  %v10659_v9 = vld [vmem:[#allocation4 + $0xe1c] ss:$24 sps:$4 sm:$0xff]  }
 0x263   :  { %4305 = vmatpush1.bf16.msra.mxu1 %v10593_v26  ;;  %4265 = vmatprep.subr.bf16.mxu0 %v10598_v29  ;;  %v10647_v37 = vld [vmem:[#allocation4 + $0xdd8] ss:$24 sps:$4 sm:$0xff]   ;;  %v10665_v26 = vld [vmem:[#allocation4 + $0xe4c] ss:$24 sps:$4 sm:$0xff]   ;;  %v12047_v43 = vrot.slane %v12043_v13, %v11823_v54  ;;  %v10663_v29 = vld [vmem:[#allocation4 + $0xe48] ss:$24 sps:$4 sm:$0xff]  }
 0x264   :  { %4306 = vmatprep.subr.bf16.mxu1 %v10601_v30  ;;  %v4213_v11 = vsel %vm1554_vm1, %v8964_v21, 0  ;;  %v10654_v4 = vld [vmem:[#allocation4 + $0xe10] ss:$24 sps:$4 sm:$0xff]   ;;  %v10660_v18 = vld [vmem:[#allocation4 + $0xe40] ss:$24 sps:$4 sm:$0xff]  }
 0x265   :  { %v10657_v53 = vld [vmem:[#allocation4 + $0xe18] ss:$24 sps:$4 sm:$0xff]   ;;  %v10668_v30 = vld [vmem:[#allocation4 + $0xe74] ss:$24 sps:$4 sm:$0xff]   ;;  %v10699_v31 = vld [vmem:[#allocation4 + $0xf68] ss:$24 sps:$4 sm:$0xff]  }
 0x266   :  { %4266 = vmatpush1.bf16.msra.mxu0 %v10596_v39  ;;  %v10671_v39 = vld [vmem:[#allocation4 + $0xe7c] ss:$24 sps:$4 sm:$0xff]   ;;  %v10696_v50 = vld [vmem:[#allocation4 + $0xf60] ss:$24 sps:$4 sm:$0xff]   ;;  %v10702_v8 = vld [vmem:[#allocation4 + $0xf90] ss:$24 sps:$4 sm:$0xff]  }
 0x267   :  { %4307 = vmatpush1.bf16.msra.mxu1 %v10599_v15  ;;  %4267 = vmatprep.subr.bf16.mxu0 %v10604_v62  ;;  %v10713_v21 = vld [vmem:[#allocation4 + $0xfcc] ss:$24 sps:$4 sm:$0xff]  }
 0x268   :  { %4308 = vmatprep.subr.bf16.mxu1 %v10607_v34  ;;  %v10666_v34 = vld [vmem:[#allocation4 + $0xe70] ss:$24 sps:$4 sm:$0xff]  }
 0x26a   :  { %4268 = vmatpush1.bf16.msra.mxu0 %v10602_v35 }
 0x26b   :  { %4309 = vmatpush1.bf16.msra.mxu1 %v10605_v36  ;;  %4269 = vmatprep.subr.bf16.mxu0 %v10610_v45 }
 0x26c   :  { %4310 = vmatprep.subr.bf16.mxu1 %v10613_v10 }
 0x26e   :  { %4270 = vmatpush1.bf16.msra.mxu0 %v10608_v3 }
 0x26f   :  { %4311 = vmatpush1.bf16.msra.mxu1 %v10611_v40  ;;  %4271 = vmatprep.subr.bf16.mxu0 %v10616_v41 }
 0x270   :  { %4312 = vmatprep.subr.bf16.mxu1 %v10619_v42  ;;  %v10669_v42 = vld [vmem:[#allocation4 + $0xe78] ss:$24 sps:$4 sm:$0xff]  }
 0x272   :  { %4272 = vmatpush1.bf16.msra.mxu0 %v10614_v22 }
 0x273   :  { %4313 = vmatpush1.bf16.msra.mxu1 %v10617_v46  ;;  %4273 = vmatprep.subr.bf16.mxu0 %v10622_v47 }
 0x274   :  { %4314 = vmatprep.subr.bf16.mxu1 %v10625_v48 }
 0x276   :  { %4274 = vmatpush1.bf16.msra.mxu0 %v10620_v49  ;;  %v10674_v49 = vld [vmem:[#allocation4 + $0xea4] ss:$24 sps:$4 sm:$0xff]  }
 0x277   :  { %4315 = vmatpush1.bf16.msra.mxu1 %v10623_v12  ;;  %4275 = vmatprep.subr.bf16.mxu0 %v10628_v51  ;;  %v10677_v12 = vld [vmem:[#allocation4 + $0xeac] ss:$24 sps:$4 sm:$0xff]  }
 0x278   :  { %4316 = vmatprep.subr.bf16.mxu1 %v10631_v52 }
 0x27a   :  { %4276 = vmatpush1.bf16.msra.mxu0 %v10626_v55  ;;  %v10675_v55 = vld [vmem:[#allocation4 + $0xea8] ss:$24 sps:$4 sm:$0xff]  }
 0x27b   :  { %4317 = vmatpush1.bf16.msra.mxu1 %v10629_v14  ;;  %4277 = vmatprep.subr.bf16.mxu0 %v10634_v56  ;;  %v10683_v14 = vld [vmem:[#allocation4 + $0xedc] ss:$24 sps:$4 sm:$0xff]   ;;  %v10678_v56 = vld [vmem:[#allocation4 + $0xed0] ss:$24 sps:$4 sm:$0xff]  }
 0x27c   :  { %4318 = vmatprep.subr.bf16.mxu1 %v10637_v57  ;;  %v10681_v57 = vld [vmem:[#allocation4 + $0xed8] ss:$24 sps:$4 sm:$0xff]  }
 0x27e   :  { %4278 = vmatpush1.bf16.msra.mxu0 %v10632_v58  ;;  %v10689_v58 = vld [vmem:[#allocation4 + $0xf0c] ss:$24 sps:$4 sm:$0xff]  }
 0x27f   :  { %4319 = vmatpush1.bf16.msra.mxu1 %v10635_v59  ;;  %4279 = vmatprep.subr.bf16.mxu0 %v10640_v60  ;;  %v10687_v59 = vld [vmem:[#allocation4 + $0xf08] ss:$24 sps:$4 sm:$0xff]   ;;  %v10692_v60 = vld [vmem:[#allocation4 + $0xf34] ss:$24 sps:$4 sm:$0xff]  }
 0x280   :  { %4320 = vmatprep.subr.bf16.mxu1 %v10643_v61  ;;  %v10695_v61 = vld [vmem:[#allocation4 + $0xf3c] ss:$24 sps:$4 sm:$0xff]  }
 0x282   :  { %4280 = vmatpush1.bf16.msra.mxu0 %v10638_v63  ;;  %v10690_v63 = vld [vmem:[#allocation4 + $0xf30] ss:$24 sps:$4 sm:$0xff]  }
 0x283   :  { %4321 = vmatpush1.bf16.msra.mxu1 %v10641_v1  ;;  %4281 = vmatprep.subr.bf16.mxu0 %v10646_v2  ;;  %v10693_v1 = vld [vmem:[#allocation4 + $0xf38] ss:$24 sps:$4 sm:$0xff]   ;;  %v10698_v2 = vld [vmem:[#allocation4 + $0xf64] ss:$24 sps:$4 sm:$0xff]  }
 0x284   :  { %4322 = vmatprep.subr.bf16.mxu1 %v10649_v23  ;;  %v10701_v23 = vld [vmem:[#allocation4 + $0xf6c] ss:$24 sps:$4 sm:$0xff]  }
 0x286   :  { %4282 = vmatpush1.bf16.msra.mxu0 %v10644_v7  ;;  %v10704_v7 = vld [vmem:[#allocation4 + $0xf94] ss:$24 sps:$4 sm:$0xff]  }
 0x287   :  { %4323 = vmatpush1.bf16.msra.mxu1 %v10647_v37  ;;  %8968 = vmatprep.subr.msk.bf16.mxu0 %vm1554_vm1, %v8963_v17  ;;  %v10707_v37 = vld [vmem:[#allocation4 + $0xf9c] ss:$24 sps:$4 sm:$0xff]   ;;  %v10705_v17 = vld [vmem:[#allocation4 + $0xf98] ss:$24 sps:$4 sm:$0xff]  }
 0x288   :  { %8970 = vmatprep.subr.msk.bf16.mxu1 %vm1554_vm1, %v8965_v19  ;;  %v10710_v19 = vld [vmem:[#allocation4 + $0xfc4] ss:$24 sps:$4 sm:$0xff]  }
 0x28a   :  { %4284 = vmatpush1.bf16.msra.mxu0 %v4207_v24  ;;  %v10708_v24 = vld [vmem:[#allocation4 + $0xfc0] ss:$24 sps:$4 sm:$0xff]  }
 0x28b   :  { %4325 = vmatpush1.bf16.msra.mxu1 %v4213_v11  ;;  %4747 = vmatprep.subr.bf16.mxu0 %v10656_v33  ;;  %v10711_v11 = vld [vmem:[#allocation4 + $0xfc8] ss:$24 sps:$4 sm:$0xff]   ;;  %v10716_v33 = vld [vmem:[#allocation4 + $0xff4] ss:$24 sps:$4 sm:$0xff]  }
 0x28c   :  { %4788 = vmatprep.subr.bf16.mxu1 %v10659_v9  ;;  %v10719_v9 = vld [vmem:[#allocation4 + $0xffc] ss:$24 sps:$4 sm:$0xff]  }
 0x28d   :  { %4292 = vmatmul.mubr.bf16.vlgmr.msra.gmra.mrb[32].mxu0 %v12009_v0 }
 0x28e   :  { %4333 = vmatmul.mubr.bf16.vlgmr.msra.gmra.mrb[32].mxu1 %v12009_v0  ;;  %4748 = vmatpush1.bf16.msra.mxu0 %v10654_v4  ;;  %v10714_v4 = vld [vmem:[#allocation4 + $0xff0] ss:$24 sps:$4 sm:$0xff]  }
 0x28f   :  { %4789 = vmatpush1.bf16.msra.mxu1 %v10657_v53  ;;  %4749 = vmatprep.subr.bf16.mxu0 %v10662_v25  ;;  %v10717_v53 = vld [vmem:[#allocation4 + $0xff8] ss:$24 sps:$4 sm:$0xff]   ;;  %v10722_v25 = vld [vmem:[#allocation4 + $0x1024] ss:$24 sps:$4 sm:$0xff]  }
 0x290   :  { %4790 = vmatprep.subr.bf16.mxu1 %v10665_v26  ;;  %v2747_v15 = vpop.f32.mrb[16].mxu0  ;;  %9052 = vmatprep.mubr.msk.bf16.mxu0 %vm1550_vm0, %v12047_v43  ;;  %v10725_v26 = vld [vmem:[#allocation4 + $0x102c] ss:$24 sps:$4 sm:$0xff]  }
 0x291   :  { %v3194_v62 = vpop.f32.mrb[16].mxu1  ;;  %9054 = vmatprep.mubr.msk.bf16.mxu1 %vm1550_vm0, %v12047_v43  ;;  %v7652_v35 = vrot.slane %v2747_v15, 6  ;;  %v2749_v36 = vpop.f32.mrb[17].mxu0 }
 0x292   :  { %v7593_v0 = vrot.slane %v3194_v62, 5  ;;  %v3196_v45 = vpop.f32.mrb[17].mxu1  ;;  %v7666_v10 = vrot.slane %v2749_v36, 6  ;;  %v2751_v40 = vpop.f32.mrb[18].mxu0  ;;  %4750 = vmatpush1.bf16.msra.mxu0 %v10660_v18  ;;  %v707_v18 = vld [vmem:[#allocation4 + $0x1050] sm:$0xff]  ;;  %v1160_v36 = vunpack.i.h.s16 %v12035_v38 }
 0x293   :  { %v7612_v3 = vrot.slane %v3196_v45, 5  ;;  %v3198_v41 = vpop.f32.mrb[18].mxu1  ;;  %4791 = vmatpush1.bf16.msra.mxu1 %v10663_v29  ;;  %v12057_v22 = vsel %vm7591_vm3, %v7652_v35, %v11992_v28  ;;  %v2752_v47 = vpop.f32.mrb[19].mxu0  ;;  %4751 = vmatprep.subr.bf16.mxu0 %v10668_v30  ;;  %v10672_v28 = vld [vmem:[#allocation4 + $0xea0] ss:$24 sps:$4 sm:$0xff]   ;;  %v9046_v15 = vcombine.high %v707_v18, %v707_v18 }
 0x294   :  { %v12061_v46 = vsel %vm7594_vm4, %v7593_v0, %v12019_v27  ;;  %v3199_v48 = vpop.f32.mrb[19].mxu1  ;;  %4792 = vmatprep.subr.bf16.mxu1 %v10671_v39  ;;  %v12065_v51 = vsel %vm7591_vm3, %v7666_v10, %v12000_v6  ;;  %v10680_v27 = vld [vmem:[#allocation4 + $0xed4] ss:$24 sps:$4 sm:$0xff]   ;;  %v10686_v6 = vld [vmem:[#allocation4 + $0xf04] ss:$24 sps:$4 sm:$0xff]   ;;  %v11617_v0 = vmov 0.0   ;;  %v12084_v41 = vpack.i.b16 %v1160_v36, %v1160_v36 }
 0x295   :  { %v12069_v52 = vsel %vm7594_vm4, %v7612_v3, %v12027_v20  ;;  %v10684_v20 = vld [vmem:[#allocation4 + $0xf00] ss:$24 sps:$4 sm:$0xff]   ;;  %182 = vst.msk [vmem:[#allocation3] sm:$0xff] %vm181_vm5, %v11617_v0  ;;  %175 = vst [vmem:[#allocation2 + $0x30] sm:$0xf] %v11617_v0 }
 0x296   :  { %4752 = vmatpush1.bf16.msra.mxu0 %v10666_v34  ;;  %v708_v29 = vld [vmem:[#allocation4 + $0x1058] sm:$0xff]  ;;  %v10723_v39 = vld [vmem:[#allocation4 + $0x1028] ss:$24 sps:$4 sm:$0xff]   ;;  %v9045_v34 = vcombine.low %v707_v18, %v707_v18  ;;  %176 = vst [vmem:[#allocation2 + $0x38] sm:$0xf] %v11617_v0 }
 0x297   :  { %4793 = vmatpush1.bf16.msra.mxu1 %v10669_v42  ;;  %4753 = vmatprep.subr.bf16.mxu0 %v10674_v49  ;;  %v10720_v30 = vld [vmem:[#allocation4 + $0x1020] ss:$24 sps:$4 sm:$0xff]   ;;  %v9048_v62 = vcombine.high %v708_v29, %v708_v29  ;;  %v9047_v35 = vcombine.low %v708_v29, %v708_v29  ;;  %177 = vst [vmem:[#allocation2 + $0x40] sm:$0xf] %v11617_v0  ;;  %178 = vst [vmem:[#allocation2 + $0x48] sm:$0xf] %v11617_v0 }
 0x298   :  { %4794 = vmatprep.subr.bf16.mxu1 %v10677_v12  ;;  %179 = vst [vmem:[#allocation2 + $0x50] sm:$0xf] %v11617_v0  ;;  %180 = vst [vmem:[#allocation2 + $0x58] sm:$0xf] %v11617_v0  ;;  %v4730_v45 = vsel %vm1554_vm1, %v9045_v34, 0  ;;  %v12088_v42 = vrot.slane %v12043_v13, %v11831_v5 }
 0x299   :  { %v4736_v10 = vsel %vm1554_vm1, %v9047_v35, 0  ;;  %v10732_v3 = vld [vmem:[#allocation4 + $0xe24] ss:$24 sps:$4 sm:$0xff]   ;;  %v10730_v38 = vld [vmem:[#allocation4 + $0xe20] ss:$24 sps:$4 sm:$0xff]  }
 0x29a   :  { %4754 = vmatpush1.bf16.msra.mxu0 %v10672_v28  ;;  %v10735_v40 = vld [vmem:[#allocation4 + $0x106c] ss:$24 sps:$4 sm:$0xff]   ;;  %v10733_v47 = vld [vmem:[#allocation4 + $0x1068] ss:$24 sps:$4 sm:$0xff]   ;;  %v10741_v28 = vld [vmem:[#allocation4 + $0x109c] ss:$24 sps:$4 sm:$0xff]  }
 0x29b   :  { %4795 = vmatpush1.bf16.msra.mxu1 %v10675_v55  ;;  %4755 = vmatprep.subr.bf16.mxu0 %v10680_v27  ;;  %v10738_v12 = vld [vmem:[#allocation4 + $0xe54] ss:$24 sps:$4 sm:$0xff]   ;;  %v12092_v27 = vrot.slane %v12084_v41, %v11823_v54  ;;  %v10736_v13 = vld [vmem:[#allocation4 + $0xe50] ss:$24 sps:$4 sm:$0xff]   ;;  %184 = vst.msk [vmem:[#allocation3 + $0x8] sm:$0xf] %vm183_vm11, %v11617_v0 }
 0x29c   :  { %4796 = vmatprep.subr.bf16.mxu1 %v10683_v14  ;;  %v7750_v49 = vld [vmem:[#allocation3] sm:$0xff]  ;;  %v11186_v0 = vld [vmem:[#allocation4 + $0x1780] ss:$24 sps:$4 sm:$0xff]  }
 0x29d   :  { %v10739_v14 = vld [vmem:[#allocation4 + $0x1098] ss:$24 sps:$4 sm:$0xff]   ;;  %v10774_v34 = vld [vmem:[#allocation4 + $0xf74] ss:$24 sps:$4 sm:$0xff]  }
 0x29e   :  { %4756 = vmatpush1.bf16.msra.mxu0 %v10678_v56  ;;  %v10744_v56 = vld [vmem:[#allocation4 + $0xe84] ss:$24 sps:$4 sm:$0xff]   ;;  %v10760_v18 = vld [vmem:[#allocation4 + $0xf10] ss:$24 sps:$4 sm:$0xff]  }
 0x29f   :  { %4797 = vmatpush1.bf16.msra.mxu1 %v10681_v57  ;;  %4757 = vmatprep.subr.bf16.mxu0 %v10686_v6  ;;  %v10747_v57 = vld [vmem:[#allocation4 + $0x10cc] ss:$24 sps:$4 sm:$0xff]   ;;  %v10763_v29 = vld [vmem:[#allocation4 + $0x1158] ss:$24 sps:$4 sm:$0xff]   ;;  %v10777_v35 = vld [vmem:[#allocation4 + $0x11bc] ss:$24 sps:$4 sm:$0xff]  }
 0x2a0   :  { %4798 = vmatprep.subr.bf16.mxu1 %v10689_v58  ;;  %v10772_v36 = vld [vmem:[#allocation4 + $0xf70] ss:$24 sps:$4 sm:$0xff]  }
 0x2a2   :  { %4758 = vmatpush1.bf16.msra.mxu0 %v10684_v20 }
 0x2a3   :  { %4799 = vmatpush1.bf16.msra.mxu1 %v10687_v59  ;;  %4759 = vmatprep.subr.bf16.mxu0 %v10692_v60 }
 0x2a4   :  { %4800 = vmatprep.subr.bf16.mxu1 %v10695_v61 }
 0x2a6   :  { %4760 = vmatpush1.bf16.msra.mxu0 %v10690_v63  ;;  %v10742_v63 = vld [vmem:[#allocation4 + $0xe80] ss:$24 sps:$4 sm:$0xff]  }
 0x2a7   :  { %4801 = vmatpush1.bf16.msra.mxu1 %v10693_v1  ;;  %4761 = vmatprep.subr.bf16.mxu0 %v10698_v2 }
 0x2a8   :  { %4802 = vmatprep.subr.bf16.mxu1 %v10701_v23 }
 0x2aa   :  { %4762 = vmatpush1.bf16.msra.mxu0 %v10696_v50 }
 0x2ab   :  { %4803 = vmatpush1.bf16.msra.mxu1 %v10699_v31  ;;  %4763 = vmatprep.subr.bf16.mxu0 %v10704_v7  ;;  %v10745_v31 = vld [vmem:[#allocation4 + $0x10c8] ss:$24 sps:$4 sm:$0xff]  }
 0x2ac   :  { %4804 = vmatprep.subr.bf16.mxu1 %v10707_v37 }
 0x2ae   :  { %4764 = vmatpush1.bf16.msra.mxu0 %v10702_v8 }
 0x2af   :  { %4805 = vmatpush1.bf16.msra.mxu1 %v10705_v17  ;;  %4765 = vmatprep.subr.bf16.mxu0 %v10710_v19  ;;  %v10750_v17 = vld [vmem:[#allocation4 + $0xeb4] ss:$24 sps:$4 sm:$0xff]  }
 0x2b0   :  { %4806 = vmatprep.subr.bf16.mxu1 %v10713_v21  ;;  %v10753_v19 = vld [vmem:[#allocation4 + $0x10fc] ss:$24 sps:$4 sm:$0xff]  }
 0x2b2   :  { %4766 = vmatpush1.bf16.msra.mxu0 %v10708_v24 }
 0x2b3   :  { %4807 = vmatpush1.bf16.msra.mxu1 %v10711_v11  ;;  %4767 = vmatprep.subr.bf16.mxu0 %v10716_v33  ;;  %v11618_v11 = vmov 0  }
 0x2b4   :  { %4808 = vmatprep.subr.bf16.mxu1 %v10719_v9  ;;  %9968 = vset.pattern.permute.xlu1 %v11618_v11  ;;  %v10751_v9 = vld [vmem:[#allocation4 + $0x10f8] ss:$24 sps:$4 sm:$0xff]  }
 0x2b5   :  { %9969 = vset.pattern.permute.xlu0 %v11618_v11  ;;  %v10812_v11 = vld [vmem:[#allocation4 + $0x10a0] ss:$24 sps:$4 sm:$0xff]  }
 0x2b6   :  { %4768 = vmatpush1.bf16.msra.mxu0 %v10714_v4  ;;  %v10756_v4 = vld [vmem:[#allocation4 + $0xee4] ss:$24 sps:$4 sm:$0xff]  }
 0x2b7   :  { %4809 = vmatpush1.bf16.msra.mxu1 %v10717_v53  ;;  %4769 = vmatprep.subr.bf16.mxu0 %v10722_v25  ;;  %v10759_v53 = vld [vmem:[#allocation4 + $0x112c] ss:$24 sps:$4 sm:$0xff]   ;;  %v10757_v25 = vld [vmem:[#allocation4 + $0x1128] ss:$24 sps:$4 sm:$0xff]  }
 0x2b8   :  { %4810 = vmatprep.subr.bf16.mxu1 %v10725_v26  ;;  %v10765_v26 = vld [vmem:[#allocation4 + $0x115c] ss:$24 sps:$4 sm:$0xff]  }
 0x2ba   :  { %4770 = vmatpush1.bf16.msra.mxu0 %v10720_v30  ;;  %v10768_v30 = vld [vmem:[#allocation4 + $0xf44] ss:$24 sps:$4 sm:$0xff]  }
 0x2bb   :  { %4811 = vmatpush1.bf16.msra.mxu1 %v10723_v39  ;;  %9051 = vmatprep.subr.msk.bf16.mxu0 %vm1554_vm1, %v9046_v15  ;;  %v10771_v39 = vld [vmem:[#allocation4 + $0x118c] ss:$24 sps:$4 sm:$0xff]   ;;  %v10766_v15 = vld [vmem:[#allocation4 + $0xf40] ss:$24 sps:$4 sm:$0xff]  }
 0x2bc   :  { %9053 = vmatprep.subr.msk.bf16.mxu1 %vm1554_vm1, %v9048_v62  ;;  %v10769_v62 = vld [vmem:[#allocation4 + $0x1188] ss:$24 sps:$4 sm:$0xff]  }
 0x2bd   :  { %v7755_v48 = vpop.xlane.xlu0 %7754 }
 0x2be   :  { %4772 = vmatpush1.bf16.msra.mxu0 %v4730_v45  ;;  %v7762_v55 = vadd.f32 %v7755_v48, %v7750_v49  ;;  %v10775_v45 = vld [vmem:[#allocation4 + $0x11b8] ss:$24 sps:$4 sm:$0xff]   ;;  %v10789_v48 = vld [vmem:[#allocation4 + $0x121c] ss:$24 sps:$4 sm:$0xff]  }
 0x2bf   :  { %4813 = vmatpush1.bf16.msra.mxu1 %v4736_v10  ;;  %4829 = vmatprep.subr.bf16.mxu0 %v10732_v3  ;;  %v10780_v10 = vld [vmem:[#allocation4 + $0xfa4] ss:$24 sps:$4 sm:$0xff]   ;;  %v10784_v49 = vld [vmem:[#allocation4 + $0xfd0] ss:$24 sps:$4 sm:$0xff]  }
 0x2c0   :  { %5276 = vmatprep.subr.bf16.mxu1 %v10735_v40  ;;  %7765 = vst.msk [vmem:[#allocation3] sm:$0xff] %vm181_vm5, %v7762_v55  ;;  %v10783_v3 = vld [vmem:[#allocation4 + $0x11ec] ss:$24 sps:$4 sm:$0xff]   ;;  %v10778_v40 = vld [vmem:[#allocation4 + $0xfa0] ss:$24 sps:$4 sm:$0xff]  }
 0x2c1   :  { %4780 = vmatmul.mubr.bf16.vlgmr.msra.gmra.mrb[36].mxu0 %v12088_v42  ;;  %v10795_v55 = vld [vmem:[#allocation4 + $0x124c] ss:$24 sps:$4 sm:$0xff]  }
 0x2c2   :  { %4821 = vmatmul.mubr.bf16.vlgmr.msra.gmra.mrb[36].mxu1 %v12088_v42  ;;  %4830 = vmatpush1.bf16.msra.mxu0 %v10730_v38  ;;  %v10781_v38 = vld [vmem:[#allocation4 + $0x11e8] ss:$24 sps:$4 sm:$0xff]  }
 0x2c3   :  { %5277 = vmatpush1.bf16.msra.mxu1 %v10733_v47  ;;  %4831 = vmatprep.subr.bf16.mxu0 %v10738_v12  ;;  %v10786_v47 = vld [vmem:[#allocation4 + $0xfd4] ss:$24 sps:$4 sm:$0xff]   ;;  %v10787_v12 = vld [vmem:[#allocation4 + $0x1218] ss:$24 sps:$4 sm:$0xff]  }
 0x2c4   :  { %5278 = vmatprep.subr.bf16.mxu1 %v10741_v28  ;;  %v3235_v6 = vpop.f32.mrb[20].mxu0  ;;  %9056 = vmatprep.mubr.msk.bf16.mxu0 %vm1550_vm0, %v12047_v43  ;;  %v10792_v28 = vld [vmem:[#allocation4 + $0x1004] ss:$24 sps:$4 sm:$0xff]  }
 0x2c5   :  { %v3276_v58 = vpop.f32.mrb[20].mxu1  ;;  %9136 = vmatprep.mubr.msk.bf16.mxu1 %vm1550_vm0, %v12092_v27  ;;  %v7626_v20 = vrot.slane %v3235_v6, 5  ;;  %v3237_v60 = vpop.f32.mrb[21].mxu0  ;;  %v709_v6 = vld [vmem:[#allocation4 + $0x1060] sm:$0xff] }
 0x2c6   :  { %v7654_v59 = vrot.slane %v3276_v58, 5  ;;  %v3278_v61 = vpop.f32.mrb[21].mxu1  ;;  %v7640_v1 = vrot.slane %v3237_v60, 5  ;;  %v3239_v23 = vpop.f32.mrb[22].mxu0  ;;  %4832 = vmatpush1.bf16.msra.mxu0 %v10736_v13  ;;  %v10790_v13 = vld [vmem:[#allocation4 + $0x1000] ss:$24 sps:$4 sm:$0xff]   ;;  %v9050_v60 = vcombine.high %v709_v6, %v709_v6 }
 0x2c7   :  { %v7668_v2 = vrot.slane %v3278_v61, 5  ;;  %v3280_v50 = vpop.f32.mrb[22].mxu1  ;;  %5279 = vmatpush1.bf16.msra.mxu1 %v10739_v14  ;;  %v12103_v7 = vsel %vm7594_vm4, %v7626_v20, %v12023_v16  ;;  %v3240_v37 = vpop.f32.mrb[23].mxu0  ;;  %4833 = vmatprep.subr.bf16.mxu0 %v10744_v56  ;;  %v7771_v16 = vld [vmem:[#allocation3] sm:$0xff]  ;;  %v10793_v14 = vld [vmem:[#allocation4 + $0x1248] ss:$24 sps:$4 sm:$0xff]  }
 0x2c8   :  { %v12107_v43 = vsel %vm7594_vm4, %v7654_v59, %v12057_v22  ;;  %v3281_v8 = vpop.f32.mrb[23].mxu1  ;;  %5280 = vmatprep.subr.bf16.mxu1 %v10747_v57  ;;  %v12111_v21 = vsel %vm7594_vm4, %v7640_v1, %v12031_v32  ;;  %v7773_v33 = vmax.f32 %v7771_v16, 1e-06  ;;  %v10748_v22 = vld [vmem:[#allocation4 + $0xeb0] ss:$24 sps:$4 sm:$0xff]   ;;  %v12123_v37 = vrot.slane %v12084_v41, %v11831_v5 }
 0x2c9   :  { %v12115_v24 = vsel %vm7594_vm4, %v7668_v2, %v12065_v51  ;;  %v10754_v32 = vld [vmem:[#allocation4 + $0xee0] ss:$24 sps:$4 sm:$0xff]   ;;  %v10762_v51 = vld [vmem:[#allocation4 + $0xf14] ss:$24 sps:$4 sm:$0xff]   ;;  %v10796_v20 = vld [vmem:[#allocation4 + $0x1030] ss:$24 sps:$4 sm:$0xff]  }
 0x2ca   :  { %4834 = vmatpush1.bf16.msra.mxu0 %v10742_v63  ;;  %7789 = vperm.xlu1 %9968, %v7773_v33   ;;  %v10798_v56 = vld [vmem:[#allocation4 + $0x1034] ss:$24 sps:$4 sm:$0xff]   ;;  %v10799_v59 = vld [vmem:[#allocation4 + $0x1278] ss:$24 sps:$4 sm:$0xff]   ;;  %v9049_v63 = vcombine.low %v709_v6, %v709_v6  ;;  %v10815_v33 = vld [vmem:[#allocation4 + $0x10a8] ss:$24 sps:$4 sm:$0xff]  }
 0x2cb   :  { %5281 = vmatpush1.bf16.msra.mxu1 %v10745_v31  ;;  %4835 = vmatprep.subr.bf16.mxu0 %v10750_v17  ;;  %v10801_v57 = vld [vmem:[#allocation4 + $0x127c] ss:$24 sps:$4 sm:$0xff]   ;;  %v782_v58 = vld [vmem:[#allocation4 + $0x12a8] sm:$0xff]  ;;  %v10809_v17 = vld [vmem:[#allocation4 + $0x1078] ss:$24 sps:$4 sm:$0xff]  }
 0x2cc   :  { %5282 = vmatprep.subr.bf16.mxu1 %v10753_v19  ;;  %v9130_v61 = vcombine.high %v782_v58, %v782_v58  ;;  %v9129_v1 = vcombine.low %v782_v58, %v782_v58  ;;  %v4742_v2 = vsel %vm1554_vm1, %v9049_v63, 0  ;;  %v10808_v50 = vld [vmem:[#allocation4 + $0x1074] ss:$24 sps:$4 sm:$0xff]   ;;  %v10806_v8 = vld [vmem:[#allocation4 + $0x1070] ss:$24 sps:$4 sm:$0xff]  }
 0x2cd   :  { %v10811_v31 = vld [vmem:[#allocation4 + $0x107c] ss:$24 sps:$4 sm:$0xff]   ;;  %v10817_v16 = vld [vmem:[#allocation4 + $0x10ac] ss:$24 sps:$4 sm:$0xff]   ;;  %v10851_v6 = vld [vmem:[#allocation4 + $0x11c8] ss:$24 sps:$4 sm:$0xff]  }
 0x2ce   :  { %4836 = vmatpush1.bf16.msra.mxu0 %v10748_v22  ;;  %v5259_v23 = vsel %vm1554_vm1, %v9129_v1, 0  ;;  %v10814_v19 = vld [vmem:[#allocation4 + $0x10a4] ss:$24 sps:$4 sm:$0xff]   ;;  %v10820_v41 = vld [vmem:[#allocation4 + $0x10d4] ss:$24 sps:$4 sm:$0xff]  }
 0x2cf   :  { %5283 = vmatpush1.bf16.msra.mxu1 %v10751_v9  ;;  %4837 = vmatprep.subr.bf16.mxu0 %v10756_v4  ;;  %v10823_v22 = vld [vmem:[#allocation4 + $0x10dc] ss:$24 sps:$4 sm:$0xff]   ;;  %v10865_v63 = vld [vmem:[#allocation4 + $0x122c] ss:$24 sps:$4 sm:$0xff]   ;;  %v12147_v1 = vld [vmem:[#allocation7 + $0x10] sm:$0xf] }
 0x2d0   :  { %5284 = vmatprep.subr.bf16.mxu1 %v10759_v53  ;;  %v10856_v58 = vld [vmem:[#allocation4 + $0x11f4] ss:$24 sps:$4 sm:$0xff]  }
 0x2d2   :  { %4838 = vmatpush1.bf16.msra.mxu0 %v10754_v32 }
 0x2d3   :  { %5285 = vmatpush1.bf16.msra.mxu1 %v10757_v25  ;;  %4839 = vmatprep.subr.bf16.mxu0 %v10762_v51  ;;  %v10818_v51 = vld [vmem:[#allocation4 + $0x10d0] ss:$24 sps:$4 sm:$0xff]  }
 0x2d4   :  { %5286 = vmatprep.subr.bf16.mxu1 %v10765_v26 }
 0x2d6   :  { %4840 = vmatpush1.bf16.msra.mxu0 %v10760_v18 }
 0x2d7   :  { %5287 = vmatpush1.bf16.msra.mxu1 %v10763_v29  ;;  %4841 = vmatprep.subr.bf16.mxu0 %v10768_v30 }
 0x2d8   :  { %5288 = vmatprep.subr.bf16.mxu1 %v10771_v39  ;;  %v10821_v39 = vld [vmem:[#allocation4 + $0x10d8] ss:$24 sps:$4 sm:$0xff]  }
 0x2da   :  { %4842 = vmatpush1.bf16.msra.mxu0 %v10766_v15 }
 0x2db   :  { %5289 = vmatpush1.bf16.msra.mxu1 %v10769_v62  ;;  %4843 = vmatprep.subr.bf16.mxu0 %v10774_v34 }
 0x2dc   :  { %5290 = vmatprep.subr.bf16.mxu1 %v10777_v35  ;;  %v10826_v35 = vld [vmem:[#allocation4 + $0x1104] ss:$24 sps:$4 sm:$0xff]  }
 0x2de   :  { %4844 = vmatpush1.bf16.msra.mxu0 %v10772_v36  ;;  %v10829_v36 = vld [vmem:[#allocation4 + $0x110c] ss:$24 sps:$4 sm:$0xff]  }
 0x2df   :  { %5291 = vmatpush1.bf16.msra.mxu1 %v10775_v45  ;;  %4845 = vmatprep.subr.bf16.mxu0 %v10780_v10 }
 0x2e0   :  { %5292 = vmatprep.subr.bf16.mxu1 %v10783_v3  ;;  %v10827_v3 = vld [vmem:[#allocation4 + $0x1108] ss:$24 sps:$4 sm:$0xff]  }
 0x2e2   :  { %4846 = vmatpush1.bf16.msra.mxu0 %v10778_v40  ;;  %v10835_v40 = vld [vmem:[#allocation4 + $0x113c] ss:$24 sps:$4 sm:$0xff]  }
 0x2e3   :  { %5293 = vmatpush1.bf16.msra.mxu1 %v10781_v38  ;;  %4847 = vmatprep.subr.bf16.mxu0 %v10786_v47  ;;  %v10830_v38 = vld [vmem:[#allocation4 + $0x1130] ss:$24 sps:$4 sm:$0xff]  }
 0x2e4   :  { %5294 = vmatprep.subr.bf16.mxu1 %v10789_v48  ;;  %v10833_v47 = vld [vmem:[#allocation4 + $0x1138] ss:$24 sps:$4 sm:$0xff]   ;;  %v10841_v48 = vld [vmem:[#allocation4 + $0x116c] ss:$24 sps:$4 sm:$0xff]  }
 0x2e6   :  { %4848 = vmatpush1.bf16.msra.mxu0 %v10784_v49  ;;  %v10839_v49 = vld [vmem:[#allocation4 + $0x1168] ss:$24 sps:$4 sm:$0xff]  }
 0x2e7   :  { %5295 = vmatpush1.bf16.msra.mxu1 %v10787_v12  ;;  %4849 = vmatprep.subr.bf16.mxu0 %v10792_v28  ;;  %v10844_v12 = vld [vmem:[#allocation4 + $0x1194] ss:$24 sps:$4 sm:$0xff]  }
 0x2e8   :  { %5296 = vmatprep.subr.bf16.mxu1 %v10795_v55  ;;  %v10847_v28 = vld [vmem:[#allocation4 + $0x119c] ss:$24 sps:$4 sm:$0xff]   ;;  %v10842_v55 = vld [vmem:[#allocation4 + $0x1190] ss:$24 sps:$4 sm:$0xff]  }
 0x2ea   :  { %4850 = vmatpush1.bf16.msra.mxu0 %v10790_v13  ;;  %v10845_v13 = vld [vmem:[#allocation4 + $0x1198] ss:$24 sps:$4 sm:$0xff]  }
 0x2eb   :  { %5297 = vmatpush1.bf16.msra.mxu1 %v10793_v14  ;;  %4851 = vmatprep.subr.bf16.mxu0 %v10798_v56  ;;  %v10850_v14 = vld [vmem:[#allocation4 + $0x11c4] ss:$24 sps:$4 sm:$0xff]  }
 0x2ec   :  { %5298 = vmatprep.subr.bf16.mxu1 %v10801_v57  ;;  %v10853_v56 = vld [vmem:[#allocation4 + $0x11cc] ss:$24 sps:$4 sm:$0xff]   ;;  %v10848_v57 = vld [vmem:[#allocation4 + $0x11c0] ss:$24 sps:$4 sm:$0xff]  }
 0x2ee   :  { %4852 = vmatpush1.bf16.msra.mxu0 %v10796_v20  ;;  %v10859_v20 = vld [vmem:[#allocation4 + $0x11fc] ss:$24 sps:$4 sm:$0xff]  }
 0x2ef   :  { %5299 = vmatpush1.bf16.msra.mxu1 %v10799_v59  ;;  %9055 = vmatprep.subr.msk.bf16.mxu0 %vm1554_vm1, %v9050_v60  ;;  %v10854_v59 = vld [vmem:[#allocation4 + $0x11f0] ss:$24 sps:$4 sm:$0xff]  }
 0x2f0   :  { %9135 = vmatprep.subr.msk.bf16.mxu1 %vm1554_vm1, %v9130_v61  ;;  %v10857_v60 = vld [vmem:[#allocation4 + $0x11f8] ss:$24 sps:$4 sm:$0xff]   ;;  %v10862_v61 = vld [vmem:[#allocation4 + $0x1224] ss:$24 sps:$4 sm:$0xff]  }
 0x2f2   :  { %4854 = vmatpush1.bf16.msra.mxu0 %v4742_v2  ;;  %v12149_v2 = vld [vmem:[#allocation7 + $0x18] sm:$0xf] }
 0x2f3   :  { %5301 = vmatpush1.bf16.msra.mxu1 %v5259_v23  ;;  %5317 = vmatprep.subr.bf16.mxu0 %v10808_v50  ;;  %v10860_v23 = vld [vmem:[#allocation4 + $0x1220] ss:$24 sps:$4 sm:$0xff]  }
 0x2f4   :  { %5358 = vmatprep.subr.bf16.mxu1 %v10811_v31  ;;  %v10863_v50 = vld [vmem:[#allocation4 + $0x1228] ss:$24 sps:$4 sm:$0xff]   ;;  %v10868_v31 = vld [vmem:[#allocation4 + $0x1254] ss:$24 sps:$4 sm:$0xff]  }
 0x2f5   :  { %4862 = vmatmul.mubr.bf16.vlgmr.msra.gmra.mrb[40].mxu0 %v12088_v42 }
 0x2f6   :  { %5309 = vmatmul.mubr.bf16.vlgmr.msra.gmra.mrb[40].mxu1 %v12123_v37  ;;  %5318 = vmatpush1.bf16.msra.mxu0 %v10806_v8  ;;  %v10871_v8 = vld [vmem:[#allocation4 + $0x125c] ss:$24 sps:$4 sm:$0xff]  }
 0x2f7   :  { %5359 = vmatpush1.bf16.msra.mxu1 %v10809_v17  ;;  %5319 = vmatprep.subr.bf16.mxu0 %v10814_v19  ;;  %v8464_v17 = vpack.c.bf16 %v12149_v2, %v12147_v1  ;;  %v10866_v19 = vld [vmem:[#allocation4 + $0x1250] ss:$24 sps:$4 sm:$0xff]  }
 0x2f8   :  { %5360 = vmatprep.subr.bf16.mxu1 %v10817_v16  ;;  %v3723_v9 = vpop.f32.mrb[24].mxu0  ;;  %9138 = vmatprep.mubr.msk.bf16.mxu0 %vm1550_vm0, %v12092_v27  ;;  %v10869_v16 = vld [vmem:[#allocation4 + $0x1258] ss:$24 sps:$4 sm:$0xff]  }
 0x2f9   :  { %v3764_v4 = vpop.f32.mrb[24].mxu1  ;;  %9140 = vmatprep.mubr.msk.bf16.mxu1 %vm1550_vm0, %v12092_v27  ;;  %v7596_v42 = vrot.slane %v3723_v9, 4  ;;  %v3725_v32 = vpop.f32.mrb[25].mxu0  ;;  %v12154_v9 = vrot.slane %v8464_v17, %v11814_v44  ;;  %v10909_v17 = vld [vmem:[#allocation4 + $0x1388] ss:$24 sps:$4 sm:$0xff]  }
 0x2fa   :  { %v7628_v53 = vrot.slane %v3764_v4, 4  ;;  %v3766_v25 = vpop.f32.mrb[25].mxu1  ;;  %v7614_v26 = vrot.slane %v3725_v32, 4  ;;  %v3727_v29 = vpop.f32.mrb[26].mxu0  ;;  %5320 = vmatpush1.bf16.msra.mxu0 %v10812_v11  ;;  %v10874_v11 = vld [vmem:[#allocation4 + $0x1284] ss:$24 sps:$4 sm:$0xff]  }
 0x2fb   :  { %v7642_v18 = vrot.slane %v3766_v25, 4  ;;  %v3768_v30 = vpop.f32.mrb[26].mxu1  ;;  %5361 = vmatpush1.bf16.msra.mxu1 %v10815_v33  ;;  %v12133_v15 = vsel %vm7597_vm6, %v7596_v42, %v12061_v46  ;;  %v3728_v27 = vpop.f32.mrb[27].mxu0  ;;  %5321 = vmatprep.subr.bf16.mxu0 %v10820_v41  ;;  %v10824_v46 = vld [vmem:[#allocation4 + $0x1100] ss:$24 sps:$4 sm:$0xff]   ;;  %v783_v41 = vld [vmem:[#allocation4 + $0x12b0] sm:$0xff] }
 0x2fc   :  { %v12137_v62 = vsel %vm7597_vm6, %v7628_v53, %v12103_v7  ;;  %v3769_v34 = vpop.f32.mrb[27].mxu1  ;;  %5362 = vmatprep.subr.bf16.mxu1 %v10823_v22  ;;  %v12141_v45 = vsel %vm7597_vm6, %v7614_v26, %v12069_v52  ;;  %v10832_v7 = vld [vmem:[#allocation4 + $0x1134] ss:$24 sps:$4 sm:$0xff]   ;;  %v10838_v52 = vld [vmem:[#allocation4 + $0x1164] ss:$24 sps:$4 sm:$0xff]   ;;  %v9132_v53 = vcombine.high %v783_v41, %v783_v41  ;;  %v9131_v25 = vcombine.low %v783_v41, %v783_v41 }
 0x2fd   :  { %v12145_v10 = vsel %vm7597_vm6, %v7642_v18, %v12111_v21  ;;  %v10836_v21 = vld [vmem:[#allocation4 + $0x1160] ss:$24 sps:$4 sm:$0xff]   ;;  %v10877_v33 = vld [vmem:[#allocation4 + $0x128c] ss:$24 sps:$4 sm:$0xff]   ;;  %v12158_v26 = vrot.slane %v12154_v9, %v11814_v44 }
 0x2fe   :  { %5322 = vmatpush1.bf16.msra.mxu0 %v10818_v51  ;;  %v784_v22 = vld [vmem:[#allocation4 + $0x12b8] sm:$0xff]  ;;  %v10875_v42 = vld [vmem:[#allocation4 + $0x1288] ss:$24 sps:$4 sm:$0xff]   ;;  %v5265_v18 = vsel %vm1554_vm1, %v9131_v25, 0 }
 0x2ff   :  { %5363 = vmatpush1.bf16.msra.mxu1 %v10821_v39  ;;  %5323 = vmatprep.subr.bf16.mxu0 %v10826_v35  ;;  %v10872_v4 = vld [vmem:[#allocation4 + $0x1280] ss:$24 sps:$4 sm:$0xff]   ;;  %v9134_v32 = vcombine.high %v784_v22, %v784_v22  ;;  %v9133_v51 = vcombine.low %v784_v22, %v784_v22  ;;  %v10884_v30 = vld [vmem:[#allocation4 + $0x12c4] ss:$24 sps:$4 sm:$0xff]   ;;  %v12166_v27 = vpack.i.b16 %v12158_v26, %v12158_v26 }
 0x300   :  { %5364 = vmatprep.subr.bf16.mxu1 %v10829_v36  ;;  %v10887_v39 = vld [vmem:[#allocation4 + $0x12cc] ss:$24 sps:$4 sm:$0xff]   ;;  %v10882_v34 = vld [vmem:[#allocation4 + $0x12c0] ss:$24 sps:$4 sm:$0xff]  }
 0x301   :  { %v5271_v29 = vsel %vm1554_vm1, %v9133_v51, 0  ;;  %v10885_v35 = vld [vmem:[#allocation4 + $0x12c8] ss:$24 sps:$4 sm:$0xff]   ;;  %v10890_v36 = vld [vmem:[#allocation4 + $0x12f4] ss:$24 sps:$4 sm:$0xff]  }
 0x302   :  { %5324 = vmatpush1.bf16.msra.mxu0 %v10824_v46  ;;  %v10893_v46 = vld [vmem:[#allocation4 + $0x12fc] ss:$24 sps:$4 sm:$0xff]   ;;  %v10918_v41 = vld [vmem:[#allocation4 + $0x13e0] ss:$24 sps:$4 sm:$0xff]   ;;  %v10935_v51 = vld [vmem:[#allocation4 + $0x144c] ss:$24 sps:$4 sm:$0xff]  }
 0x303   :  { %5365 = vmatpush1.bf16.msra.mxu1 %v10827_v3  ;;  %5325 = vmatprep.subr.bf16.mxu0 %v10832_v7  ;;  %v12170_v3 = vrot.slane %v12166_v27, %v11823_v54  ;;  %v10888_v7 = vld [vmem:[#allocation4 + $0x12f0] ss:$24 sps:$4 sm:$0xff]   ;;  %v10932_v25 = vld [vmem:[#allocation4 + $0x1444] ss:$24 sps:$4 sm:$0xff]  }
 0x304   :  { %5366 = vmatprep.subr.bf16.mxu1 %v10835_v40  ;;  %v10891_v40 = vld [vmem:[#allocation4 + $0x12f8] ss:$24 sps:$4 sm:$0xff]   ;;  %v10921_v22 = vld [vmem:[#allocation4 + $0x13e8] ss:$24 sps:$4 sm:$0xff]  }
 0x306   :  { %5326 = vmatpush1.bf16.msra.mxu0 %v10830_v38  ;;  %v10896_v38 = vld [vmem:[#allocation4 + $0x1324] ss:$24 sps:$4 sm:$0xff]  }
 0x307   :  { %5367 = vmatpush1.bf16.msra.mxu1 %v10833_v47  ;;  %5327 = vmatprep.subr.bf16.mxu0 %v10838_v52  ;;  %v10899_v47 = vld [vmem:[#allocation4 + $0x132c] ss:$24 sps:$4 sm:$0xff]  }
 0x308   :  { %5368 = vmatprep.subr.bf16.mxu1 %v10841_v48 }
 0x30a   :  { %5328 = vmatpush1.bf16.msra.mxu0 %v10836_v21 }
 0x30b   :  { %5369 = vmatpush1.bf16.msra.mxu1 %v10839_v49  ;;  %5329 = vmatprep.subr.bf16.mxu0 %v10844_v12 }
 0x30c   :  { %5370 = vmatprep.subr.bf16.mxu1 %v10847_v28  ;;  %v10894_v28 = vld [vmem:[#allocation4 + $0x1320] ss:$24 sps:$4 sm:$0xff]  }
 0x30e   :  { %5330 = vmatpush1.bf16.msra.mxu0 %v10842_v55 }
 0x30f   :  { %5371 = vmatpush1.bf16.msra.mxu1 %v10845_v13  ;;  %5331 = vmatprep.subr.bf16.mxu0 %v10850_v14 }
 0x310   :  { %5372 = vmatprep.subr.bf16.mxu1 %v10853_v56 }
 0x312   :  { %5332 = vmatpush1.bf16.msra.mxu0 %v10848_v57  ;;  %v10897_v57 = vld [vmem:[#allocation4 + $0x1328] ss:$24 sps:$4 sm:$0xff]  }
 0x313   :  { %5373 = vmatpush1.bf16.msra.mxu1 %v10851_v6  ;;  %5333 = vmatprep.subr.bf16.mxu0 %v10856_v58 }
 0x314   :  { %5374 = vmatprep.subr.bf16.mxu1 %v10859_v20 }
 0x316   :  { %5334 = vmatpush1.bf16.msra.mxu0 %v10854_v59 }
 0x317   :  { %5375 = vmatpush1.bf16.msra.mxu1 %v10857_v60  ;;  %5335 = vmatprep.subr.bf16.mxu0 %v10862_v61  ;;  %v10902_v60 = vld [vmem:[#allocation4 + $0x1354] ss:$24 sps:$4 sm:$0xff]  }
 0x318   :  { %5376 = vmatprep.subr.bf16.mxu1 %v10865_v63  ;;  %v10905_v61 = vld [vmem:[#allocation4 + $0x135c] ss:$24 sps:$4 sm:$0xff]  }
 0x31a   :  { %5336 = vmatpush1.bf16.msra.mxu0 %v10860_v23 }
 0x31b   :  { %5377 = vmatpush1.bf16.msra.mxu1 %v10863_v50  ;;  %5337 = vmatprep.subr.bf16.mxu0 %v10868_v31  ;;  %v10903_v50 = vld [vmem:[#allocation4 + $0x1358] ss:$24 sps:$4 sm:$0xff]   ;;  %v10911_v31 = vld [vmem:[#allocation4 + $0x138c] ss:$24 sps:$4 sm:$0xff]  }
 0x31c   :  { %5378 = vmatprep.subr.bf16.mxu1 %v10871_v8  ;;  %v10906_v8 = vld [vmem:[#allocation4 + $0x1380] ss:$24 sps:$4 sm:$0xff]  }
 0x31e   :  { %5338 = vmatpush1.bf16.msra.mxu0 %v10866_v19  ;;  %v10917_v19 = vld [vmem:[#allocation4 + $0x13bc] ss:$24 sps:$4 sm:$0xff]  }
 0x31f   :  { %5379 = vmatpush1.bf16.msra.mxu1 %v10869_v16  ;;  %5339 = vmatprep.subr.bf16.mxu0 %v10874_v11  ;;  %v10915_v16 = vld [vmem:[#allocation4 + $0x13b8] ss:$24 sps:$4 sm:$0xff]   ;;  %v10920_v11 = vld [vmem:[#allocation4 + $0x13e4] ss:$24 sps:$4 sm:$0xff]  }
 0x320   :  { %5380 = vmatprep.subr.bf16.mxu1 %v10877_v33  ;;  %v10923_v33 = vld [vmem:[#allocation4 + $0x13ec] ss:$24 sps:$4 sm:$0xff]  }
 0x322   :  { %5340 = vmatpush1.bf16.msra.mxu0 %v10872_v4  ;;  %v10926_v4 = vld [vmem:[#allocation4 + $0x1414] ss:$24 sps:$4 sm:$0xff]  }
 0x323   :  { %5381 = vmatpush1.bf16.msra.mxu1 %v10875_v42  ;;  %9137 = vmatprep.subr.msk.bf16.mxu0 %vm1554_vm1, %v9132_v53  ;;  %v10929_v42 = vld [vmem:[#allocation4 + $0x141c] ss:$24 sps:$4 sm:$0xff]   ;;  %v10924_v53 = vld [vmem:[#allocation4 + $0x1410] ss:$24 sps:$4 sm:$0xff]  }
 0x324   :  { %9139 = vmatprep.subr.msk.bf16.mxu1 %vm1554_vm1, %v9134_v32  ;;  %v10927_v32 = vld [vmem:[#allocation4 + $0x1418] ss:$24 sps:$4 sm:$0xff]  }
 0x326   :  { %5342 = vmatpush1.bf16.msra.mxu0 %v5265_v18  ;;  %v10930_v18 = vld [vmem:[#allocation4 + $0x1440] ss:$24 sps:$4 sm:$0xff]  }
 0x327   :  { %5383 = vmatpush1.bf16.msra.mxu1 %v5271_v29  ;;  %5805 = vmatprep.subr.bf16.mxu0 %v10884_v30  ;;  %v10933_v29 = vld [vmem:[#allocation4 + $0x1448] ss:$24 sps:$4 sm:$0xff]   ;;  %v10938_v30 = vld [vmem:[#allocation4 + $0x1474] ss:$24 sps:$4 sm:$0xff]  }
 0x328   :  { %5846 = vmatprep.subr.bf16.mxu1 %v10887_v39  ;;  %v10941_v39 = vld [vmem:[#allocation4 + $0x147c] ss:$24 sps:$4 sm:$0xff]  }
 0x329   :  { %5350 = vmatmul.mubr.bf16.vlgmr.msra.gmra.mrb[44].mxu0 %v12123_v37 }
 0x32a   :  { %5391 = vmatmul.mubr.bf16.vlgmr.msra.gmra.mrb[44].mxu1 %v12123_v37  ;;  %5806 = vmatpush1.bf16.msra.mxu0 %v10882_v34  ;;  %v10936_v34 = vld [vmem:[#allocation4 + $0x1470] ss:$24 sps:$4 sm:$0xff]  }
 0x32b   :  { %5847 = vmatpush1.bf16.msra.mxu1 %v10885_v35  ;;  %5807 = vmatprep.subr.bf16.mxu0 %v10890_v36  ;;  %v10939_v35 = vld [vmem:[#allocation4 + $0x1478] ss:$24 sps:$4 sm:$0xff]   ;;  %v10944_v36 = vld [vmem:[#allocation4 + $0x14a4] ss:$24 sps:$4 sm:$0xff]  }
 0x32c   :  { %5848 = vmatprep.subr.bf16.mxu1 %v10893_v46  ;;  %v3805_v52 = vpop.f32.mrb[28].mxu0  ;;  %9221 = vmatprep.mubr.msk.bf16.mxu0 %vm1550_vm0, %v12170_v3  ;;  %v10947_v46 = vld [vmem:[#allocation4 + $0x14ac] ss:$24 sps:$4 sm:$0xff]  }
 0x32d   :  { %v4252_v48 = vpop.f32.mrb[28].mxu1  ;;  %9223 = vmatprep.mubr.msk.bf16.mxu1 %vm1550_vm0, %v12170_v3  ;;  %v7656_v21 = vrot.slane %v3805_v52, 4  ;;  %v3807_v37 = vpop.f32.mrb[29].mxu0  ;;  %v857_v52 = vld [vmem:[#allocation4 + $0x1500] sm:$0xff] }
 0x32e   :  { %v7599_v49 = vrot.slane %v4252_v48, 3  ;;  %v4254_v12 = vpop.f32.mrb[29].mxu1  ;;  %v7670_v55 = vrot.slane %v3807_v37, 4  ;;  %v3809_v14 = vpop.f32.mrb[30].mxu0  ;;  %5808 = vmatpush1.bf16.msra.mxu0 %v10888_v7  ;;  %v10942_v7 = vld [vmem:[#allocation4 + $0x14a0] ss:$24 sps:$4 sm:$0xff]   ;;  %v9215_v37 = vcombine.high %v857_v52, %v857_v52 }
 0x32f   :  { %v7616_v13 = vrot.slane %v4254_v12, 3  ;;  %v4256_v56 = vpop.f32.mrb[30].mxu1  ;;  %5849 = vmatpush1.bf16.msra.mxu1 %v10891_v40  ;;  %v12180_v6 = vsel %vm7597_vm6, %v7656_v21, %v12107_v43  ;;  %v3810_v20 = vpop.f32.mrb[31].mxu0  ;;  %5809 = vmatprep.subr.bf16.mxu0 %v10896_v38  ;;  %v10900_v43 = vld [vmem:[#allocation4 + $0x1350] ss:$24 sps:$4 sm:$0xff]  }
 0x330   :  { %v12184_v58 = vsel %vm7600_vm7, %v7599_v49, %v12133_v15  ;;  %v4257_v59 = vpop.f32.mrb[31].mxu1  ;;  %5850 = vmatprep.subr.bf16.mxu1 %v10899_v47  ;;  %v12188_v63 = vsel %vm7597_vm6, %v7670_v55, %v12115_v24  ;;  %v10908_v15 = vld [vmem:[#allocation4 + $0x1384] ss:$24 sps:$4 sm:$0xff]   ;;  %v10914_v24 = vld [vmem:[#allocation4 + $0x13b4] ss:$24 sps:$4 sm:$0xff]  }
 0x331   :  { %v12192_v23 = vsel %vm7600_vm7, %v7616_v13, %v12141_v45  ;;  %v10912_v45 = vld [vmem:[#allocation4 + $0x13b0] ss:$24 sps:$4 sm:$0xff]   ;;  %v10950_v38 = vld [vmem:[#allocation4 + $0x14d4] ss:$24 sps:$4 sm:$0xff]   ;;  %v1162_v13 = vunpack.i.h.s16 %v12158_v26 }
 0x332   :  { %5810 = vmatpush1.bf16.msra.mxu0 %v10894_v28  ;;  %v10945_v40 = vld [vmem:[#allocation4 + $0x14a8] ss:$24 sps:$4 sm:$0xff]   ;;  %v10953_v47 = vld [vmem:[#allocation4 + $0x14dc] ss:$24 sps:$4 sm:$0xff]   ;;  %v10951_v49 = vld [vmem:[#allocation4 + $0x14d8] ss:$24 sps:$4 sm:$0xff]   ;;  %v9214_v28 = vcombine.low %v857_v52, %v857_v52 }
 0x333   :  { %5851 = vmatpush1.bf16.msra.mxu1 %v10897_v57  ;;  %5811 = vmatprep.subr.bf16.mxu0 %v10902_v60  ;;  %v858_v48 = vld [vmem:[#allocation4 + $0x1508] sm:$0xff]  ;;  %v10963_v20 = vld [vmem:[#allocation4 + $0x151c] ss:$24 sps:$4 sm:$0xff]   ;;  %v12199_v59 = vpack.i.b16 %v1162_v13, %v1162_v13  ;;  %v12203_v60 = vrot.slane %v12166_v27, %v11831_v5  ;;  %v10964_v27 = vld [vmem:[#allocation4 + $0x1300] ss:$24 sps:$4 sm:$0xff]  }
 0x334   :  { %5852 = vmatprep.subr.bf16.mxu1 %v10905_v61  ;;  %v10948_v21 = vld [vmem:[#allocation4 + $0x14d0] ss:$24 sps:$4 sm:$0xff]   ;;  %v9217_v12 = vcombine.high %v858_v48, %v858_v48  ;;  %v9216_v55 = vcombine.low %v858_v48, %v858_v48  ;;  %v5788_v14 = vsel %vm1554_vm1, %v9214_v28, 0  ;;  %v10960_v57 = vld [vmem:[#allocation4 + $0x12d4] ss:$24 sps:$4 sm:$0xff]  }
 0x335   :  { %v10958_v26 = vld [vmem:[#allocation4 + $0x12d0] ss:$24 sps:$4 sm:$0xff]   ;;  %v10988_v52 = vld [vmem:[#allocation4 + $0x13c0] ss:$24 sps:$4 sm:$0xff]   ;;  %v10999_v48 = vld [vmem:[#allocation4 + $0x163c] ss:$24 sps:$4 sm:$0xff]  }
 0x336   :  { %5812 = vmatpush1.bf16.msra.mxu0 %v10900_v43  ;;  %v5794_v56 = vsel %vm1554_vm1, %v9216_v55, 0  ;;  %v10961_v61 = vld [vmem:[#allocation4 + $0x1518] ss:$24 sps:$4 sm:$0xff]   ;;  %v10966_v43 = vld [vmem:[#allocation4 + $0x1304] ss:$24 sps:$4 sm:$0xff]  }
 0x337   :  { %5853 = vmatpush1.bf16.msra.mxu1 %v10903_v50  ;;  %5813 = vmatprep.subr.bf16.mxu0 %v10908_v15  ;;  %v10969_v50 = vld [vmem:[#allocation4 + $0x154c] ss:$24 sps:$4 sm:$0xff]   ;;  %v12207_v15 = vrot.slane %v12199_v59, %v11823_v54  ;;  %v11000_v28 = vld [vmem:[#allocation4 + $0x1420] ss:$24 sps:$4 sm:$0xff]  }
 0x338   :  { %5854 = vmatprep.subr.bf16.mxu1 %v10911_v31  ;;  %v10967_v31 = vld [vmem:[#allocation4 + $0x1548] ss:$24 sps:$4 sm:$0xff]   ;;  %v11008_v13 = vld [vmem:[#allocation4 + $0x1454] ss:$24 sps:$4 sm:$0xff]  }
 0x339   :  { %v11003_v55 = vld [vmem:[#allocation4 + $0x1668] ss:$24 sps:$4 sm:$0xff]  }
 0x33a   :  { %5814 = vmatpush1.bf16.msra.mxu0 %v10906_v8  ;;  %v10972_v8 = vld [vmem:[#allocation4 + $0x1334] ss:$24 sps:$4 sm:$0xff]  }
 0x33b   :  { %5855 = vmatpush1.bf16.msra.mxu1 %v10909_v17  ;;  %5815 = vmatprep.subr.bf16.mxu0 %v10914_v24  ;;  %v10975_v17 = vld [vmem:[#allocation4 + $0x157c] ss:$24 sps:$4 sm:$0xff]  }
 0x33c   :  { %5856 = vmatprep.subr.bf16.mxu1 %v10917_v19 }
 0x33e   :  { %5816 = vmatpush1.bf16.msra.mxu0 %v10912_v45 }
 0x33f   :  { %5857 = vmatpush1.bf16.msra.mxu1 %v10915_v16  ;;  %5817 = vmatprep.subr.bf16.mxu0 %v10920_v11 }
 0x340   :  { %5858 = vmatprep.subr.bf16.mxu1 %v10923_v33 }
 0x342   :  { %5818 = vmatpush1.bf16.msra.mxu0 %v10918_v41  ;;  %v10970_v41 = vld [vmem:[#allocation4 + $0x1330] ss:$24 sps:$4 sm:$0xff]  }
 0x343   :  { %5859 = vmatpush1.bf16.msra.mxu1 %v10921_v22  ;;  %5819 = vmatprep.subr.bf16.mxu0 %v10926_v4 }
 0x344   :  { %5860 = vmatprep.subr.bf16.mxu1 %v10929_v42 }
 0x346   :  { %5820 = vmatpush1.bf16.msra.mxu0 %v10924_v53 }
 0x347   :  { %5861 = vmatpush1.bf16.msra.mxu1 %v10927_v32  ;;  %5821 = vmatprep.subr.bf16.mxu0 %v10932_v25  ;;  %v10973_v32 = vld [vmem:[#allocation4 + $0x1578] ss:$24 sps:$4 sm:$0xff]  }
 0x348   :  { %5862 = vmatprep.subr.bf16.mxu1 %v10935_v51 }
 0x34a   :  { %5822 = vmatpush1.bf16.msra.mxu0 %v10930_v18 }
 0x34b   :  { %5863 = vmatpush1.bf16.msra.mxu1 %v10933_v29  ;;  %5823 = vmatprep.subr.bf16.mxu0 %v10938_v30  ;;  %v10978_v29 = vld [vmem:[#allocation4 + $0x1364] ss:$24 sps:$4 sm:$0xff]  }
 0x34c   :  { %5864 = vmatprep.subr.bf16.mxu1 %v10941_v39  ;;  %v10981_v30 = vld [vmem:[#allocation4 + $0x15ac] ss:$24 sps:$4 sm:$0xff]  }
 0x34e   :  { %5824 = vmatpush1.bf16.msra.mxu0 %v10936_v34 }
 0x34f   :  { %5865 = vmatpush1.bf16.msra.mxu1 %v10939_v35  ;;  %5825 = vmatprep.subr.bf16.mxu0 %v10944_v36  ;;  %v7756_v35 = vsel %vm1554_vm1, %v12147_v1, 0.0  ;;  %v7758_v36 = vsel %vm7757_vm8, %v12149_v2, 0.0  ;;  %v10991_v1 = vld [vmem:[#allocation4 + $0x1608] ss:$24 sps:$4 sm:$0xff]   ;;  %v10996_v2 = vld [vmem:[#allocation4 + $0x13f4] ss:$24 sps:$4 sm:$0xff]  }
 0x350   :  { %5866 = vmatprep.subr.bf16.mxu1 %v10947_v46  ;;  %v10984_v46 = vld [vmem:[#allocation4 + $0x1394] ss:$24 sps:$4 sm:$0xff]  }
 0x352   :  { %5826 = vmatpush1.bf16.msra.mxu0 %v10942_v7  ;;  %v10987_v7 = vld [vmem:[#allocation4 + $0x15dc] ss:$24 sps:$4 sm:$0xff]  }
 0x353   :  { %5867 = vmatpush1.bf16.msra.mxu1 %v10945_v40  ;;  %5827 = vmatprep.subr.bf16.mxu0 %v10950_v38  ;;  %v10985_v40 = vld [vmem:[#allocation4 + $0x15d8] ss:$24 sps:$4 sm:$0xff]   ;;  %v10990_v38 = vld [vmem:[#allocation4 + $0x13c4] ss:$24 sps:$4 sm:$0xff]  }
 0x354   :  { %5868 = vmatprep.subr.bf16.mxu1 %v10953_v47  ;;  %v10993_v47 = vld [vmem:[#allocation4 + $0x160c] ss:$24 sps:$4 sm:$0xff]  }
 0x356   :  { %5828 = vmatpush1.bf16.msra.mxu0 %v10948_v21  ;;  %v10994_v21 = vld [vmem:[#allocation4 + $0x13f0] ss:$24 sps:$4 sm:$0xff]  }
 0x357   :  { %5869 = vmatpush1.bf16.msra.mxu1 %v10951_v49  ;;  %9220 = vmatprep.subr.msk.bf16.mxu0 %vm1554_vm1, %v9215_v37  ;;  %v10997_v49 = vld [vmem:[#allocation4 + $0x1638] ss:$24 sps:$4 sm:$0xff]   ;;  %v11002_v37 = vld [vmem:[#allocation4 + $0x1424] ss:$24 sps:$4 sm:$0xff]  }
 0x358   :  { %9222 = vmatprep.subr.msk.bf16.mxu1 %vm1554_vm1, %v9217_v12  ;;  %v11005_v12 = vld [vmem:[#allocation4 + $0x166c] ss:$24 sps:$4 sm:$0xff]  }
 0x35a   :  { %5830 = vmatpush1.bf16.msra.mxu0 %v5788_v14  ;;  %v11011_v14 = vld [vmem:[#allocation4 + $0x169c] ss:$24 sps:$4 sm:$0xff]  }
 0x35b   :  { %5871 = vmatpush1.bf16.msra.mxu1 %v5794_v56  ;;  %5887 = vmatprep.subr.bf16.mxu0 %v10960_v57  ;;  %v11006_v56 = vld [vmem:[#allocation4 + $0x1450] ss:$24 sps:$4 sm:$0xff]  }
 0x35c   :  { %6334 = vmatprep.subr.bf16.mxu1 %v10963_v20  ;;  %v11009_v57 = vld [vmem:[#allocation4 + $0x1698] ss:$24 sps:$4 sm:$0xff]   ;;  %v11014_v20 = vld [vmem:[#allocation4 + $0x1484] ss:$24 sps:$4 sm:$0xff]  }
 0x35d   :  { %5838 = vmatmul.mubr.bf16.vlgmr.msra.gmra.mrb[48].mxu0 %v12203_v60 }
 0x35e   :  { %5879 = vmatmul.mubr.bf16.vlgmr.msra.gmra.mrb[48].mxu1 %v12203_v60  ;;  %5888 = vmatpush1.bf16.msra.mxu0 %v10958_v26  ;;  %v11017_v26 = vld [vmem:[#allocation4 + $0x16cc] ss:$24 sps:$4 sm:$0xff]  }
 0x35f   :  { %6335 = vmatpush1.bf16.msra.mxu1 %v10961_v61  ;;  %5889 = vmatprep.subr.bf16.mxu0 %v10966_v43  ;;  %v11012_v61 = vld [vmem:[#allocation4 + $0x1480] ss:$24 sps:$4 sm:$0xff]  }
 0x360   :  { %6336 = vmatprep.subr.bf16.mxu1 %v10969_v50  ;;  %v4293_v24 = vpop.f32.mrb[32].mxu0  ;;  %9225 = vmatprep.mubr.msk.bf16.mxu0 %vm1550_vm0, %v12170_v3  ;;  %v11015_v43 = vld [vmem:[#allocation4 + $0x16c8] ss:$24 sps:$4 sm:$0xff]   ;;  %v11020_v50 = vld [vmem:[#allocation4 + $0x14b4] ss:$24 sps:$4 sm:$0xff]  }
 0x361   :  { %v4334_v19 = vpop.f32.mrb[32].mxu1  ;;  %9305 = vmatprep.mubr.msk.bf16.mxu1 %vm1550_vm0, %v12207_v15  ;;  %v7630_v45 = vrot.slane %v4293_v24, 3  ;;  %v4295_v11 = vpop.f32.mrb[33].mxu0  ;;  %v11029_v24 = vld [vmem:[#allocation4 + $0x172c] ss:$24 sps:$4 sm:$0xff]  }
 0x362   :  { %v7658_v16 = vrot.slane %v4334_v19, 3  ;;  %v4336_v33 = vpop.f32.mrb[33].mxu1  ;;  %v7644_v22 = vrot.slane %v4295_v11, 3  ;;  %v4297_v42 = vpop.f32.mrb[34].mxu0  ;;  %5890 = vmatpush1.bf16.msra.mxu0 %v10964_v27  ;;  %v11023_v27 = vld [vmem:[#allocation4 + $0x16fc] ss:$24 sps:$4 sm:$0xff]  }
 0x363   :  { %v7672_v4 = vrot.slane %v4336_v33, 3  ;;  %v4338_v53 = vpop.f32.mrb[34].mxu1  ;;  %6337 = vmatpush1.bf16.msra.mxu1 %v10967_v31  ;;  %v12217_v25 = vsel %vm7600_vm7, %v7630_v45, %v12137_v62  ;;  %v4298_v51 = vpop.f32.mrb[35].mxu0  ;;  %5891 = vmatprep.subr.bf16.mxu0 %v10972_v8  ;;  %v10976_v62 = vld [vmem:[#allocation4 + $0x1360] ss:$24 sps:$4 sm:$0xff]   ;;  %v859_v19 = vld [vmem:[#allocation4 + $0x1510] sm:$0xff] }
 0x364   :  { %v12221_v3 = vsel %vm7600_vm7, %v7658_v16, %v12180_v6  ;;  %v4339_v18 = vpop.f32.mrb[35].mxu1  ;;  %6338 = vmatprep.subr.bf16.mxu1 %v10975_v17  ;;  %v12225_v39 = vsel %vm7600_vm7, %v7644_v22, %v12145_v10  ;;  %v10979_v6 = vld [vmem:[#allocation4 + $0x15a8] ss:$24 sps:$4 sm:$0xff]   ;;  %v7759_v10 = vadd.f32 %v7758_v36, %v7756_v35  ;;  %v11021_v8 = vld [vmem:[#allocation4 + $0x16f8] ss:$24 sps:$4 sm:$0xff]   ;;  %v9219_v33 = vcombine.high %v859_v19, %v859_v19 }
 0x365   :  { %v12229_v34 = vsel %vm7600_vm7, %v7672_v4, %v12188_v63  ;;  %v10982_v63 = vld [vmem:[#allocation4 + $0x1390] ss:$24 sps:$4 sm:$0xff]   ;;  %v11026_v17 = vld [vmem:[#allocation4 + $0x14e4] ss:$24 sps:$4 sm:$0xff]   ;;  %v11024_v16 = vld [vmem:[#allocation4 + $0x14e0] ss:$24 sps:$4 sm:$0xff]   ;;  %v9218_v22 = vcombine.low %v859_v19, %v859_v19  ;;  %v12240_v18 = vrot.slane %v12199_v59, %v11831_v5 }
 0x366   :  { %5892 = vmatpush1.bf16.msra.mxu0 %v10970_v41  ;;  %7760 = vadd.xlane.f32.xlu0 %v7759_v10  ;;  %v11018_v31 = vld [vmem:[#allocation4 + $0x14b0] ss:$24 sps:$4 sm:$0xff]   ;;  %v932_v45 = vld [vmem:[#allocation4 + $0x1758] sm:$0xff]  ;;  %v11039_v51 = vld [vmem:[#allocation4 + $0x152c] ss:$24 sps:$4 sm:$0xff]  }
 0x367   :  { %6339 = vmatpush1.bf16.msra.mxu1 %v10973_v32  ;;  %5893 = vmatprep.subr.bf16.mxu0 %v10978_v29  ;;  %v11027_v11 = vld [vmem:[#allocation4 + $0x1728] ss:$24 sps:$4 sm:$0xff]   ;;  %v9299_v41 = vcombine.high %v932_v45, %v932_v45  ;;  %v9298_v4 = vcombine.low %v932_v45, %v932_v45  ;;  %v5800_v42 = vsel %vm1554_vm1, %v9218_v22, 0  ;;  %v11036_v32 = vld [vmem:[#allocation4 + $0x1524] ss:$24 sps:$4 sm:$0xff]  }
 0x368   :  { %6340 = vmatprep.subr.bf16.mxu1 %v10981_v30  ;;  %v11034_v29 = vld [vmem:[#allocation4 + $0x1520] ss:$24 sps:$4 sm:$0xff]   ;;  %v11040_v35 = vld [vmem:[#allocation4 + $0x1550] ss:$24 sps:$4 sm:$0xff]   ;;  %v11048_v59 = vld [vmem:[#allocation4 + $0x1584] ss:$24 sps:$4 sm:$0xff]  }
 0x369   :  { %v6317_v53 = vsel %vm1554_vm1, %v9298_v4, 0  ;;  %v11037_v30 = vld [vmem:[#allocation4 + $0x1528] ss:$24 sps:$4 sm:$0xff]   ;;  %v11043_v36 = vld [vmem:[#allocation4 + $0x1558] ss:$24 sps:$4 sm:$0xff]  }
 0x36a   :  { %5894 = vmatpush1.bf16.msra.mxu0 %v10976_v62  ;;  %v11042_v62 = vld [vmem:[#allocation4 + $0x1554] ss:$24 sps:$4 sm:$0xff]   ;;  %v11076_v19 = vld [vmem:[#allocation4 + $0x1670] ss:$24 sps:$4 sm:$0xff]  }
 0x36b   :  { %6341 = vmatpush1.bf16.msra.mxu1 %v10979_v6  ;;  %5895 = vmatprep.subr.bf16.mxu0 %v10984_v46  ;;  %v11045_v6 = vld [vmem:[#allocation4 + $0x155c] ss:$24 sps:$4 sm:$0xff]   ;;  %v11051_v46 = vld [vmem:[#allocation4 + $0x158c] ss:$24 sps:$4 sm:$0xff]   ;;  %v11079_v45 = vld [vmem:[#allocation4 + $0x1678] ss:$24 sps:$4 sm:$0xff]  }
 0x36c   :  { %6342 = vmatprep.subr.bf16.mxu1 %v10987_v7  ;;  %v11090_v22 = vld [vmem:[#allocation4 + $0x16d4] ss:$24 sps:$4 sm:$0xff]  }
 0x36d   :  { %v11093_v4 = vld [vmem:[#allocation4 + $0x16dc] ss:$24 sps:$4 sm:$0xff]  }
 0x36e   :  { %5896 = vmatpush1.bf16.msra.mxu0 %v10982_v63 }
 0x36f   :  { %6343 = vmatpush1.bf16.msra.mxu1 %v10985_v40  ;;  %5897 = vmatprep.subr.bf16.mxu0 %v10990_v38 }
 0x370   :  { %6344 = vmatprep.subr.bf16.mxu1 %v10993_v47  ;;  %v11046_v47 = vld [vmem:[#allocation4 + $0x1580] ss:$24 sps:$4 sm:$0xff]  }
 0x372   :  { %5898 = vmatpush1.bf16.msra.mxu0 %v10988_v52 }
 0x373   :  { %6345 = vmatpush1.bf16.msra.mxu1 %v10991_v1  ;;  %5899 = vmatprep.subr.bf16.mxu0 %v10996_v2 }
 0x374   :  { %6346 = vmatprep.subr.bf16.mxu1 %v10999_v48 }
 0x376   :  { %5900 = vmatpush1.bf16.msra.mxu0 %v10994_v21  ;;  %v11049_v21 = vld [vmem:[#allocation4 + $0x1588] ss:$24 sps:$4 sm:$0xff]  }
 0x377   :  { %6347 = vmatpush1.bf16.msra.mxu1 %v10997_v49  ;;  %5901 = vmatprep.subr.bf16.mxu0 %v11002_v37 }
 0x378   :  { %6348 = vmatprep.subr.bf16.mxu1 %v11005_v12 }
 0x37a   :  { %5902 = vmatpush1.bf16.msra.mxu0 %v11000_v28  ;;  %v11054_v28 = vld [vmem:[#allocation4 + $0x15b4] ss:$24 sps:$4 sm:$0xff]  }
 0x37b   :  { %6349 = vmatpush1.bf16.msra.mxu1 %v11003_v55  ;;  %5903 = vmatprep.subr.bf16.mxu0 %v11008_v13  ;;  %v11057_v55 = vld [vmem:[#allocation4 + $0x15bc] ss:$24 sps:$4 sm:$0xff]  }
 0x37c   :  { %6350 = vmatprep.subr.bf16.mxu1 %v11011_v14 }
 0x37e   :  { %5904 = vmatpush1.bf16.msra.mxu0 %v11006_v56  ;;  %v11055_v56 = vld [vmem:[#allocation4 + $0x15b8] ss:$24 sps:$4 sm:$0xff]  }
 0x37f   :  { %6351 = vmatpush1.bf16.msra.mxu1 %v11009_v57  ;;  %5905 = vmatprep.subr.bf16.mxu0 %v11014_v20  ;;  %v11063_v57 = vld [vmem:[#allocation4 + $0x15ec] ss:$24 sps:$4 sm:$0xff]   ;;  %v11058_v20 = vld [vmem:[#allocation4 + $0x15e0] ss:$24 sps:$4 sm:$0xff]  }
 0x380   :  { %6352 = vmatprep.subr.bf16.mxu1 %v11017_v26  ;;  %v11061_v26 = vld [vmem:[#allocation4 + $0x15e8] ss:$24 sps:$4 sm:$0xff]  }
 0x382   :  { %5906 = vmatpush1.bf16.msra.mxu0 %v11012_v61  ;;  %v11069_v61 = vld [vmem:[#allocation4 + $0x161c] ss:$24 sps:$4 sm:$0xff]  }
 0x383   :  { %6353 = vmatpush1.bf16.msra.mxu1 %v11015_v43  ;;  %5907 = vmatprep.subr.bf16.mxu0 %v11020_v50  ;;  %v11067_v43 = vld [vmem:[#allocation4 + $0x1618] ss:$24 sps:$4 sm:$0xff]   ;;  %v11072_v50 = vld [vmem:[#allocation4 + $0x1644] ss:$24 sps:$4 sm:$0xff]  }
 0x384   :  { %6354 = vmatprep.subr.bf16.mxu1 %v11023_v27  ;;  %v11075_v27 = vld [vmem:[#allocation4 + $0x164c] ss:$24 sps:$4 sm:$0xff]  }
 0x386   :  { %5908 = vmatpush1.bf16.msra.mxu0 %v11018_v31  ;;  %v11070_v31 = vld [vmem:[#allocation4 + $0x1640] ss:$24 sps:$4 sm:$0xff]  }
 0x387   :  { %6355 = vmatpush1.bf16.msra.mxu1 %v11021_v8  ;;  %5909 = vmatprep.subr.bf16.mxu0 %v11026_v17  ;;  %v11073_v8 = vld [vmem:[#allocation4 + $0x1648] ss:$24 sps:$4 sm:$0xff]   ;;  %v11078_v17 = vld [vmem:[#allocation4 + $0x1674] ss:$24 sps:$4 sm:$0xff]  }
 0x388   :  { %6356 = vmatprep.subr.bf16.mxu1 %v11029_v24  ;;  %v11081_v24 = vld [vmem:[#allocation4 + $0x167c] ss:$24 sps:$4 sm:$0xff]  }
 0x38a   :  { %5910 = vmatpush1.bf16.msra.mxu0 %v11024_v16  ;;  %v11084_v16 = vld [vmem:[#allocation4 + $0x16a4] ss:$24 sps:$4 sm:$0xff]  }
 0x38b   :  { %6357 = vmatpush1.bf16.msra.mxu1 %v11027_v11  ;;  %9224 = vmatprep.subr.msk.bf16.mxu0 %vm1554_vm1, %v9219_v33  ;;  %v11087_v11 = vld [vmem:[#allocation4 + $0x16ac] ss:$24 sps:$4 sm:$0xff]   ;;  %v11082_v33 = vld [vmem:[#allocation4 + $0x16a0] ss:$24 sps:$4 sm:$0xff]  }
 0x38c   :  { %9304 = vmatprep.subr.msk.bf16.mxu1 %vm1554_vm1, %v9299_v41  ;;  %v11085_v41 = vld [vmem:[#allocation4 + $0x16a8] ss:$24 sps:$4 sm:$0xff]  }
 0x38e   :  { %5912 = vmatpush1.bf16.msra.mxu0 %v5800_v42  ;;  %v11088_v42 = vld [vmem:[#allocation4 + $0x16d0] ss:$24 sps:$4 sm:$0xff]  }
 0x38f   :  { %6359 = vmatpush1.bf16.msra.mxu1 %v6317_v53  ;;  %6375 = vmatprep.subr.bf16.mxu0 %v11036_v32  ;;  %v11091_v53 = vld [vmem:[#allocation4 + $0x16d8] ss:$24 sps:$4 sm:$0xff]   ;;  %v11096_v32 = vld [vmem:[#allocation4 + $0x1704] ss:$24 sps:$4 sm:$0xff]  }
 0x390   :  { %6416 = vmatprep.subr.bf16.mxu1 %v11039_v51  ;;  %v11099_v51 = vld [vmem:[#allocation4 + $0x170c] ss:$24 sps:$4 sm:$0xff]  }
 0x391   :  { %5920 = vmatmul.mubr.bf16.vlgmr.msra.gmra.mrb[52].mxu0 %v12203_v60 }
 0x392   :  { %6367 = vmatmul.mubr.bf16.vlgmr.msra.gmra.mrb[52].mxu1 %v12240_v18  ;;  %6376 = vmatpush1.bf16.msra.mxu0 %v11034_v29  ;;  %v11094_v29 = vld [vmem:[#allocation4 + $0x1700] ss:$24 sps:$4 sm:$0xff]  }
 0x393   :  { %6417 = vmatpush1.bf16.msra.mxu1 %v11037_v30  ;;  %6377 = vmatprep.subr.bf16.mxu0 %v11042_v62  ;;  %v11097_v30 = vld [vmem:[#allocation4 + $0x1708] ss:$24 sps:$4 sm:$0xff]   ;;  %v11102_v62 = vld [vmem:[#allocation4 + $0x1734] ss:$24 sps:$4 sm:$0xff]  }
 0x394   :  { %6418 = vmatprep.subr.bf16.mxu1 %v11045_v6  ;;  %v4781_v7 = vpop.f32.mrb[36].mxu0  ;;  %9307 = vmatprep.mubr.msk.bf16.mxu0 %vm1550_vm0, %v12207_v15  ;;  %v11105_v6 = vld [vmem:[#allocation4 + $0x173c] ss:$24 sps:$4 sm:$0xff]  }
 0x395   :  { %v4822_v10 = vpop.f32.mrb[36].mxu1  ;;  %9309 = vmatprep.mubr.msk.bf16.mxu1 %vm1550_vm0, %v12207_v15  ;;  %v7602_v60 = vrot.slane %v4781_v7, 2  ;;  %v4783_v40 = vpop.f32.mrb[37].mxu0  ;;  %v11103_v7 = vld [vmem:[#allocation4 + $0x1738] ss:$24 sps:$4 sm:$0xff]  }
 0x396   :  { %v7632_v63 = vrot.slane %v4822_v10, 2  ;;  %v4824_v38 = vpop.f32.mrb[37].mxu1  ;;  %v7618_v52 = vrot.slane %v4783_v40, 2  ;;  %v4785_v2 = vpop.f32.mrb[38].mxu0  ;;  %6378 = vmatpush1.bf16.msra.mxu0 %v11040_v35  ;;  %v933_v35 = vld [vmem:[#allocation4 + $0x1760] sm:$0xff] }
 0x397   :  { %v7646_v1 = vrot.slane %v4824_v38, 2  ;;  %v4826_v48 = vpop.f32.mrb[38].mxu1  ;;  %6419 = vmatpush1.bf16.msra.mxu1 %v11043_v36  ;;  %v12250_v49 = vsel %vm7603_vm9, %v7602_v60, %v12184_v58  ;;  %v4786_v15 = vpop.f32.mrb[39].mxu0  ;;  %6379 = vmatprep.subr.bf16.mxu0 %v11048_v59  ;;  %v11052_v58 = vld [vmem:[#allocation4 + $0x15b0] ss:$24 sps:$4 sm:$0xff]   ;;  %v1122_v59 = vcombine.high %v12154_v9, %v12154_v9  ;;  %v9301_v10 = vcombine.high %v933_v35, %v933_v35 }
 0x398   :  { %v12254_v37 = vsel %vm7603_vm9, %v7632_v63, %v12217_v25  ;;  %v4827_v12 = vpop.f32.mrb[39].mxu1  ;;  %6420 = vmatprep.subr.bf16.mxu1 %v11051_v46  ;;  %v12258_v13 = vsel %vm7603_vm9, %v7618_v52, %v12192_v23  ;;  %v11060_v25 = vld [vmem:[#allocation4 + $0x15e4] ss:$24 sps:$4 sm:$0xff]   ;;  %v11066_v23 = vld [vmem:[#allocation4 + $0x1614] ss:$24 sps:$4 sm:$0xff]   ;;  %v9300_v63 = vcombine.low %v933_v35, %v933_v35 }
 0x399   :  { %v12262_v14 = vsel %vm7603_vm9, %v7646_v1, %v12225_v39  ;;  %v11064_v39 = vld [vmem:[#allocation4 + $0x1610] ss:$24 sps:$4 sm:$0xff]   ;;  %v12267_v38 = vrot.slane %v1122_v59, %v11814_v44  ;;  %v11112_v52 = vld [vmem:[#allocation4 + $0x1774] ss:$24 sps:$4 sm:$0xff]  }
 0x39a   :  { %6380 = vmatpush1.bf16.msra.mxu0 %v11046_v47  ;;  %v934_v36 = vld [vmem:[#allocation4 + $0x1768] sm:$0xff]  ;;  %v6323_v9 = vsel %vm1554_vm1, %v9300_v63, 0  ;;  %v11115_v1 = vld [vmem:[#allocation4 + $0x177c] ss:$24 sps:$4 sm:$0xff]   ;;  %v11113_v48 = vld [vmem:[#allocation4 + $0x1778] ss:$24 sps:$4 sm:$0xff]  }
 0x39b   :  { %6421 = vmatpush1.bf16.msra.mxu1 %v11049_v21  ;;  %6381 = vmatprep.subr.bf16.mxu0 %v11054_v28  ;;  %v11100_v46 = vld [vmem:[#allocation4 + $0x1730] ss:$24 sps:$4 sm:$0xff]   ;;  %v9303_v60 = vcombine.high %v934_v36, %v934_v36  ;;  %v9302_v40 = vcombine.low %v934_v36, %v934_v36  ;;  %v12275_v2 = vpack.i.b16 %v12267_v38, %v12267_v38  ;;  %v11118_v21 = vld [vmem:[#allocation4 + $0x17a4] ss:$24 sps:$4 sm:$0xff]   ;;  %v11116_v28 = vld [vmem:[#allocation4 + $0x17a0] ss:$24 sps:$4 sm:$0xff]  }
 0x39c   :  { %6422 = vmatprep.subr.bf16.mxu1 %v11057_v55  ;;  %v11110_v44 = vld [vmem:[#allocation4 + $0x1770] ss:$24 sps:$4 sm:$0xff]   ;;  %v11121_v15 = vld [vmem:[#allocation4 + $0x17ac] ss:$24 sps:$4 sm:$0xff]   ;;  %v11152_v36 = vld [vmem:[#allocation4 + $0x18c0] ss:$24 sps:$4 sm:$0xff]  }
 0x39d   :  { %v6329_v47 = vsel %vm1554_vm1, %v9302_v40, 0  ;;  %v12279_v12 = vrot.slane %v12275_v2, %v11823_v54  ;;  %v11119_v55 = vld [vmem:[#allocation4 + $0x17a8] ss:$24 sps:$4 sm:$0xff]   ;;  %v11157_v35 = vld [vmem:[#allocation4 + $0x18cc] ss:$24 sps:$4 sm:$0xff]  }
 0x39e   :  { %6382 = vmatpush1.bf16.msra.mxu0 %v11052_v58  ;;  %v11124_v58 = vld [vmem:[#allocation4 + $0x17d4] ss:$24 sps:$4 sm:$0xff]   ;;  %v11155_v59 = vld [vmem:[#allocation4 + $0x18c8] ss:$24 sps:$4 sm:$0xff]   ;;  %v11166_v63 = vld [vmem:[#allocation4 + $0x1924] ss:$24 sps:$4 sm:$0xff]  }
 0x39f   :  { %6423 = vmatpush1.bf16.msra.mxu1 %v11055_v56  ;;  %6383 = vmatprep.subr.bf16.mxu0 %v11060_v25  ;;  %v11127_v56 = vld [vmem:[#allocation4 + $0x17dc] ss:$24 sps:$4 sm:$0xff]   ;;  %v11169_v40 = vld [vmem:[#allocation4 + $0x192c] ss:$24 sps:$4 sm:$0xff]  }
 0x3a0   :  { %6424 = vmatprep.subr.bf16.mxu1 %v11063_v57 }
 0x3a2   :  { %6384 = vmatpush1.bf16.msra.mxu0 %v11058_v20 }
 0x3a3   :  { %6425 = vmatpush1.bf16.msra.mxu1 %v11061_v26  ;;  %6385 = vmatprep.subr.bf16.mxu0 %v11066_v23 }
 0x3a4   :  { %6426 = vmatprep.subr.bf16.mxu1 %v11069_v61  ;;  %v11122_v61 = vld [vmem:[#allocation4 + $0x17d0] ss:$24 sps:$4 sm:$0xff]  }
 0x3a6   :  { %6386 = vmatpush1.bf16.msra.mxu0 %v11064_v39 }
 0x3a7   :  { %6427 = vmatpush1.bf16.msra.mxu1 %v11067_v43  ;;  %6387 = vmatprep.subr.bf16.mxu0 %v11072_v50 }
 0x3a8   :  { %6428 = vmatprep.subr.bf16.mxu1 %v11075_v27 }
 0x3aa   :  { %6388 = vmatpush1.bf16.msra.mxu0 %v11070_v31  ;;  %v11125_v31 = vld [vmem:[#allocation4 + $0x17d8] ss:$24 sps:$4 sm:$0xff]  }
 0x3ab   :  { %6429 = vmatpush1.bf16.msra.mxu1 %v11073_v8  ;;  %6389 = vmatprep.subr.bf16.mxu0 %v11078_v17 }
 0x3ac   :  { %6430 = vmatprep.subr.bf16.mxu1 %v11081_v24 }
 0x3ae   :  { %6390 = vmatpush1.bf16.msra.mxu0 %v11076_v19 }
 0x3af   :  { %6431 = vmatpush1.bf16.msra.mxu1 %v11079_v45  ;;  %6391 = vmatprep.subr.bf16.mxu0 %v11084_v16  ;;  %v11130_v45 = vld [vmem:[#allocation4 + $0x1804] ss:$24 sps:$4 sm:$0xff]  }
 0x3b0   :  { %6432 = vmatprep.subr.bf16.mxu1 %v11087_v11  ;;  %v11133_v16 = vld [vmem:[#allocation4 + $0x180c] ss:$24 sps:$4 sm:$0xff]  }
 0x3b2   :  { %6392 = vmatpush1.bf16.msra.mxu0 %v11082_v33 }
 0x3b3   :  { %6433 = vmatpush1.bf16.msra.mxu1 %v11085_v41  ;;  %6393 = vmatprep.subr.bf16.mxu0 %v11090_v22  ;;  %v11131_v41 = vld [vmem:[#allocation4 + $0x1808] ss:$24 sps:$4 sm:$0xff]   ;;  %v11139_v22 = vld [vmem:[#allocation4 + $0x183c] ss:$24 sps:$4 sm:$0xff]  }
 0x3b4   :  { %6434 = vmatprep.subr.bf16.mxu1 %v11093_v4  ;;  %v11134_v4 = vld [vmem:[#allocation4 + $0x1830] ss:$24 sps:$4 sm:$0xff]  }
 0x3b6   :  { %6394 = vmatpush1.bf16.msra.mxu0 %v11088_v42  ;;  %v11137_v42 = vld [vmem:[#allocation4 + $0x1838] ss:$24 sps:$4 sm:$0xff]  }
 0x3b7   :  { %6435 = vmatpush1.bf16.msra.mxu1 %v11091_v53  ;;  %6395 = vmatprep.subr.bf16.mxu0 %v11096_v32  ;;  %v11145_v53 = vld [vmem:[#allocation4 + $0x186c] ss:$24 sps:$4 sm:$0xff]   ;;  %v11143_v32 = vld [vmem:[#allocation4 + $0x1868] ss:$24 sps:$4 sm:$0xff]  }
 0x3b8   :  { %6436 = vmatprep.subr.bf16.mxu1 %v11099_v51  ;;  %v11148_v51 = vld [vmem:[#allocation4 + $0x1894] ss:$24 sps:$4 sm:$0xff]  }
 0x3ba   :  { %6396 = vmatpush1.bf16.msra.mxu0 %v11094_v29  ;;  %v11151_v29 = vld [vmem:[#allocation4 + $0x189c] ss:$24 sps:$4 sm:$0xff]  }
 0x3bb   :  { %6437 = vmatpush1.bf16.msra.mxu1 %v11097_v30  ;;  %6397 = vmatprep.subr.bf16.mxu0 %v11102_v62  ;;  %v11146_v30 = vld [vmem:[#allocation4 + $0x1890] ss:$24 sps:$4 sm:$0xff]  }
 0x3bc   :  { %6438 = vmatprep.subr.bf16.mxu1 %v11105_v6  ;;  %v11149_v62 = vld [vmem:[#allocation4 + $0x1898] ss:$24 sps:$4 sm:$0xff]   ;;  %v11154_v6 = vld [vmem:[#allocation4 + $0x18c4] ss:$24 sps:$4 sm:$0xff]  }
 0x3be   :  { %6398 = vmatpush1.bf16.msra.mxu0 %v11100_v46  ;;  %v11160_v46 = vld [vmem:[#allocation4 + $0x18f4] ss:$24 sps:$4 sm:$0xff]  }
 0x3bf   :  { %6439 = vmatpush1.bf16.msra.mxu1 %v11103_v7  ;;  %9306 = vmatprep.subr.msk.bf16.mxu0 %vm1554_vm1, %v9301_v10  ;;  %v11163_v7 = vld [vmem:[#allocation4 + $0x18fc] ss:$24 sps:$4 sm:$0xff]   ;;  %v11158_v10 = vld [vmem:[#allocation4 + $0x18f0] ss:$24 sps:$4 sm:$0xff]  }
 0x3c0   :  { %9308 = vmatprep.subr.msk.bf16.mxu1 %vm1554_vm1, %v9303_v60  ;;  %v11161_v60 = vld [vmem:[#allocation4 + $0x18f8] ss:$24 sps:$4 sm:$0xff]  }
 0x3c2   :  { %6400 = vmatpush1.bf16.msra.mxu0 %v6323_v9  ;;  %v11164_v9 = vld [vmem:[#allocation4 + $0x1920] ss:$24 sps:$4 sm:$0xff]  }
 0x3c3   :  { %6441 = vmatpush1.bf16.msra.mxu1 %v6329_v47  ;;  %6863 = vmatprep.subr.bf16.mxu0 %v11112_v52  ;;  %v11167_v47 = vld [vmem:[#allocation4 + $0x1928] ss:$24 sps:$4 sm:$0xff]   ;;  %v11172_v52 = vld [vmem:[#allocation4 + $0x1954] ss:$24 sps:$4 sm:$0xff]  }
 0x3c4   :  { %6904 = vmatprep.subr.bf16.mxu1 %v11115_v1  ;;  %v11175_v1 = vld [vmem:[#allocation4 + $0x195c] ss:$24 sps:$4 sm:$0xff]  }
 0x3c5   :  { %6408 = vmatmul.mubr.bf16.vlgmr.msra.gmra.mrb[56].mxu0 %v12240_v18 }
 0x3c6   :  { %6449 = vmatmul.mubr.bf16.vlgmr.msra.gmra.mrb[56].mxu1 %v12240_v18  ;;  %6864 = vmatpush1.bf16.msra.mxu0 %v11110_v44  ;;  %v11170_v44 = vld [vmem:[#allocation4 + $0x1950] ss:$24 sps:$4 sm:$0xff]  }
 0x3c7   :  { %6905 = vmatpush1.bf16.msra.mxu1 %v11113_v48  ;;  %6865 = vmatprep.subr.bf16.mxu0 %v11118_v21  ;;  %v11173_v48 = vld [vmem:[#allocation4 + $0x1958] ss:$24 sps:$4 sm:$0xff]   ;;  %v11178_v21 = vld [vmem:[#allocation4 + $0x1984] ss:$24 sps:$4 sm:$0xff]  }
 0x3c8   :  { %6906 = vmatprep.subr.bf16.mxu1 %v11121_v15  ;;  %v4863_v25 = vpop.f32.mrb[40].mxu0  ;;  %9390 = vmatprep.mubr.msk.bf16.mxu0 %vm1550_vm0, %v12279_v12  ;;  %v11181_v15 = vld [vmem:[#allocation4 + $0x198c] ss:$24 sps:$4 sm:$0xff]  }
 0x3c9   :  { %v5310_v57 = vpop.f32.mrb[40].mxu1  ;;  %9392 = vmatprep.mubr.msk.bf16.mxu1 %vm1550_vm0, %v12279_v12  ;;  %v7660_v20 = vrot.slane %v4863_v25, 2  ;;  %v4865_v18 = vpop.f32.mrb[41].mxu0 }
 0x3ca   :  { %v7605_v26 = vrot.slane %v5310_v57, 1  ;;  %v5312_v23 = vpop.f32.mrb[41].mxu1  ;;  %v7674_v39 = vrot.slane %v4865_v18, 2  ;;  %v4867_v50 = vpop.f32.mrb[42].mxu0  ;;  %6866 = vmatpush1.bf16.msra.mxu0 %v11116_v28  ;;  %v1007_v28 = vld [vmem:[#allocation4 + $0x19b0] sm:$0xff]  ;;  %v1164_v18 = vunpack.i.h.s16 %v12267_v38  ;;  %v12310_v38 = vrot.slane %v12275_v2, %v11831_v5 }
 0x3cb   :  { %v7620_v43 = vrot.slane %v5312_v23, 1  ;;  %v5314_v27 = vpop.f32.mrb[42].mxu1  ;;  %6907 = vmatpush1.bf16.msra.mxu1 %v11119_v55  ;;  %v12289_v8 = vsel %vm7603_vm9, %v7660_v20, %v12221_v3  ;;  %v4868_v24 = vpop.f32.mrb[43].mxu0  ;;  %6867 = vmatprep.subr.bf16.mxu0 %v11124_v58  ;;  %v11128_v3 = vld [vmem:[#allocation4 + $0x1800] ss:$24 sps:$4 sm:$0xff]   ;;  %v9384_v25 = vcombine.high %v1007_v28, %v1007_v28  ;;  %v9383_v20 = vcombine.low %v1007_v28, %v1007_v28 }
 0x3cc   :  { %v7607_v17 = vsel %vm7606_vm10, %v7605_v26, %v12250_v49  ;;  %v5315_v19 = vpop.f32.mrb[43].mxu1  ;;  %6908 = vmatprep.subr.bf16.mxu1 %v11127_v56  ;;  %v12295_v11 = vsel %vm7603_vm9, %v7674_v39, %v12229_v34  ;;  %v11136_v49 = vld [vmem:[#allocation4 + $0x1834] ss:$24 sps:$4 sm:$0xff]   ;;  %v11142_v34 = vld [vmem:[#allocation4 + $0x1864] ss:$24 sps:$4 sm:$0xff]   ;;  %v12306_v50 = vpack.i.b16 %v1164_v18, %v1164_v18 }
 0x3cd   :  { %v7621_v33 = vsel %vm7606_vm10, %v7620_v43, %v12258_v13  ;;  %7738 = vst [vmem:[#allocation2] sm:$0xff] %v7607_v17  ;;  %v11140_v13 = vld [vmem:[#allocation4 + $0x1860] ss:$24 sps:$4 sm:$0xff]   ;;  %v6846_v23 = vsel %vm1554_vm1, %v9383_v20, 0  ;;  %v11188_v39 = vld [vmem:[#allocation4 + $0x1784] ss:$24 sps:$4 sm:$0xff]  }
 0x3ce   :  { %6868 = vmatpush1.bf16.msra.mxu0 %v11122_v61  ;;  %7739 = vst [vmem:[#allocation2 + $0x8] sm:$0xff] %v7621_v33  ;;  %v1008_v55 = vld [vmem:[#allocation4 + $0x19b8] sm:$0xff]  ;;  %v11179_v56 = vld [vmem:[#allocation4 + $0x1988] ss:$24 sps:$4 sm:$0xff]   ;;  %v11191_v43 = vld [vmem:[#allocation4 + $0x19cc] ss:$24 sps:$4 sm:$0xff]  }
 0x3cf   :  { %6909 = vmatpush1.bf16.msra.mxu1 %v11125_v31  ;;  %6869 = vmatprep.subr.bf16.mxu0 %v11130_v45  ;;  %v11176_v58 = vld [vmem:[#allocation4 + $0x1980] ss:$24 sps:$4 sm:$0xff]   ;;  %v9386_v57 = vcombine.high %v1008_v55, %v1008_v55  ;;  %v9385_v26 = vcombine.low %v1008_v55, %v1008_v55  ;;  %v11194_v17 = vld [vmem:[#allocation4 + $0x17b4] ss:$24 sps:$4 sm:$0xff]   ;;  %v12314_v45 = vrot.slane %v12306_v50, %v11823_v54  ;;  %v11192_v2 = vld [vmem:[#allocation4 + $0x17b0] ss:$24 sps:$4 sm:$0xff]  }
 0x3d0   :  { %6910 = vmatprep.subr.bf16.mxu1 %v11133_v16  ;;  %v11189_v27 = vld [vmem:[#allocation4 + $0x19c8] ss:$24 sps:$4 sm:$0xff]   ;;  %v11197_v24 = vld [vmem:[#allocation4 + $0x19fc] ss:$24 sps:$4 sm:$0xff]   ;;  %v7751_v19 = vld [vmem:[#allocation3 + $0x8] sm:$0xf] }
 0x3d1   :  { %v6852_v61 = vsel %vm1554_vm1, %v9385_v26, 0  ;;  %v11195_v33 = vld [vmem:[#allocation4 + $0x19f8] ss:$24 sps:$4 sm:$0xff]   ;;  %v11230_v28 = vld [vmem:[#allocation4 + $0x18d4] ss:$24 sps:$4 sm:$0xff]  }
 0x3d2   :  { %6870 = vmatpush1.bf16.msra.mxu0 %v11128_v3  ;;  %v11200_v3 = vld [vmem:[#allocation4 + $0x17e4] ss:$24 sps:$4 sm:$0xff]   ;;  %v11234_v20 = vld [vmem:[#allocation4 + $0x1900] ss:$24 sps:$4 sm:$0xff]   ;;  %v11242_v18 = vld [vmem:[#allocation4 + $0x1934] ss:$24 sps:$4 sm:$0xff]  }
 0x3d3   :  { %6911 = vmatpush1.bf16.msra.mxu1 %v11131_v41  ;;  %6871 = vmatprep.subr.bf16.mxu0 %v11136_v49  ;;  %v11203_v41 = vld [vmem:[#allocation4 + $0x1a2c] ss:$24 sps:$4 sm:$0xff]   ;;  %v11233_v55 = vld [vmem:[#allocation4 + $0x1b1c] ss:$24 sps:$4 sm:$0xff]   ;;  %v11237_v26 = vld [vmem:[#allocation4 + $0x1b48] ss:$24 sps:$4 sm:$0xff]  }
 0x3d4   :  { %6912 = vmatprep.subr.bf16.mxu1 %v11139_v22 }
 0x3d6   :  { %6872 = vmatpush1.bf16.msra.mxu0 %v11134_v4 }
 0x3d7   :  { %6913 = vmatpush1.bf16.msra.mxu1 %v11137_v42  ;;  %6873 = vmatprep.subr.bf16.mxu0 %v11142_v34 }
 0x3d8   :  { %6914 = vmatprep.subr.bf16.mxu1 %v11145_v53  ;;  %v11198_v53 = vld [vmem:[#allocation4 + $0x17e0] ss:$24 sps:$4 sm:$0xff]  }
 0x3da   :  { %6874 = vmatpush1.bf16.msra.mxu0 %v11140_v13 }
 0x3db   :  { %6915 = vmatpush1.bf16.msra.mxu1 %v11143_v32  ;;  %6875 = vmatprep.subr.bf16.mxu0 %v11148_v51 }
 0x3dc   :  { %6916 = vmatprep.subr.bf16.mxu1 %v11151_v29 }
 0x3de   :  { %6876 = vmatpush1.bf16.msra.mxu0 %v11146_v30  ;;  %v11201_v30 = vld [vmem:[#allocation4 + $0x1a28] ss:$24 sps:$4 sm:$0xff]  }
 0x3df   :  { %6917 = vmatpush1.bf16.msra.mxu1 %v11149_v62  ;;  %6877 = vmatprep.subr.bf16.mxu0 %v11154_v6 }
 0x3e0   :  { %6918 = vmatprep.subr.bf16.mxu1 %v11157_v35 }
 0x3e2   :  { %6878 = vmatpush1.bf16.msra.mxu0 %v11152_v36  ;;  %v11206_v36 = vld [vmem:[#allocation4 + $0x1814] ss:$24 sps:$4 sm:$0xff]  }
 0x3e3   :  { %6919 = vmatpush1.bf16.msra.mxu1 %v11155_v59  ;;  %6879 = vmatprep.subr.bf16.mxu0 %v11160_v46  ;;  %v11209_v59 = vld [vmem:[#allocation4 + $0x1a5c] ss:$24 sps:$4 sm:$0xff]  }
 0x3e4   :  { %6920 = vmatprep.subr.bf16.mxu1 %v11163_v7 }
 0x3e6   :  { %6880 = vmatpush1.bf16.msra.mxu0 %v11158_v10 }
 0x3e7   :  { %6921 = vmatpush1.bf16.msra.mxu1 %v11161_v60  ;;  %6881 = vmatprep.subr.bf16.mxu0 %v11166_v63  ;;  %v11207_v60 = vld [vmem:[#allocation4 + $0x1a58] ss:$24 sps:$4 sm:$0xff]   ;;  %v11212_v63 = vld [vmem:[#allocation4 + $0x1844] ss:$24 sps:$4 sm:$0xff]  }
 0x3e8   :  { %6922 = vmatprep.subr.bf16.mxu1 %v11169_v40  ;;  %v11215_v40 = vld [vmem:[#allocation4 + $0x1a8c] ss:$24 sps:$4 sm:$0xff]  }
 0x3ea   :  { %6882 = vmatpush1.bf16.msra.mxu0 %v11164_v9  ;;  %v11213_v9 = vld [vmem:[#allocation4 + $0x1a88] ss:$24 sps:$4 sm:$0xff]  }
 0x3eb   :  { %6923 = vmatpush1.bf16.msra.mxu1 %v11167_v47  ;;  %6883 = vmatprep.subr.bf16.mxu0 %v11172_v52  ;;  %v11221_v47 = vld [vmem:[#allocation4 + $0x1abc] ss:$24 sps:$4 sm:$0xff]   ;;  %v11216_v52 = vld [vmem:[#allocation4 + $0x1870] ss:$24 sps:$4 sm:$0xff]  }
 0x3ec   :  { %6924 = vmatprep.subr.bf16.mxu1 %v11175_v1  ;;  %v11219_v1 = vld [vmem:[#allocation4 + $0x1ab8] ss:$24 sps:$4 sm:$0xff]  }
 0x3ee   :  { %6884 = vmatpush1.bf16.msra.mxu0 %v11170_v44  ;;  %v11224_v44 = vld [vmem:[#allocation4 + $0x18a4] ss:$24 sps:$4 sm:$0xff]  }
 0x3ef   :  { %6925 = vmatpush1.bf16.msra.mxu1 %v11173_v48  ;;  %6885 = vmatprep.subr.bf16.mxu0 %v11178_v21  ;;  %v11227_v48 = vld [vmem:[#allocation4 + $0x1aec] ss:$24 sps:$4 sm:$0xff]   ;;  %v11222_v21 = vld [vmem:[#allocation4 + $0x18a0] ss:$24 sps:$4 sm:$0xff]  }
 0x3f0   :  { %6926 = vmatprep.subr.bf16.mxu1 %v11181_v15  ;;  %v11225_v15 = vld [vmem:[#allocation4 + $0x1ae8] ss:$24 sps:$4 sm:$0xff]  }
 0x3f2   :  { %6886 = vmatpush1.bf16.msra.mxu0 %v11176_v58  ;;  %v11228_v58 = vld [vmem:[#allocation4 + $0x18d0] ss:$24 sps:$4 sm:$0xff]  }
 0x3f3   :  { %6927 = vmatpush1.bf16.msra.mxu1 %v11179_v56  ;;  %9389 = vmatprep.subr.msk.bf16.mxu0 %vm1554_vm1, %v9384_v25  ;;  %v7761_v31 = vpop.xlane.xlu0 %7760  ;;  %v11231_v56 = vld [vmem:[#allocation4 + $0x1b18] ss:$24 sps:$4 sm:$0xff]   ;;  %v11236_v25 = vld [vmem:[#allocation4 + $0x1904] ss:$24 sps:$4 sm:$0xff]  }
 0x3f4   :  { %9391 = vmatprep.subr.msk.bf16.mxu1 %vm1554_vm1, %v9386_v57  ;;  %v7763_v16 = vadd.f32 %v7761_v31, %v7751_v19  ;;  %v11239_v57 = vld [vmem:[#allocation4 + $0x1b4c] ss:$24 sps:$4 sm:$0xff]   ;;  %v11249_v31 = vld [vmem:[#allocation4 + $0x1ba8] ss:$24 sps:$4 sm:$0xff]  }
 0x3f5   :  { %v1009_v19 = vld [vmem:[#allocation4 + $0x19c0] sm:$0xff] }
 0x3f6   :  { %6888 = vmatpush1.bf16.msra.mxu0 %v6846_v23  ;;  %7767 = vst.msk [vmem:[#allocation3 + $0x8] sm:$0xf] %vm183_vm11, %v7763_v16  ;;  %v11245_v23 = vld [vmem:[#allocation4 + $0x1b7c] ss:$24 sps:$4 sm:$0xff]   ;;  %v1082_v16 = vld [vmem:[#allocation4 + $0x1c08] sm:$0xff] }
 0x3f7   :  { %6929 = vmatpush1.bf16.msra.mxu1 %v6852_v61  ;;  %6945 = vmatprep.subr.bf16.mxu0 %v11188_v39  ;;  %v11240_v61 = vld [vmem:[#allocation4 + $0x1930] ss:$24 sps:$4 sm:$0xff]  }
 0x3f8   :  { %7392 = vmatprep.subr.bf16.mxu1 %v11191_v43  ;;  %v11243_v39 = vld [vmem:[#allocation4 + $0x1b78] ss:$24 sps:$4 sm:$0xff]   ;;  %v11248_v43 = vld [vmem:[#allocation4 + $0x1964] ss:$24 sps:$4 sm:$0xff]  }
 0x3f9   :  { %6896 = vmatmul.mubr.bf16.vlgmr.msra.gmra.mrb[60].mxu0 %v12310_v38 }
 0x3fa   :  { %6937 = vmatmul.mubr.bf16.vlgmr.msra.gmra.mrb[60].mxu1 %v12310_v38  ;;  %6946 = vmatpush1.bf16.msra.mxu0 %v11186_v0  ;;  %v11251_v0 = vld [vmem:[#allocation4 + $0x1bac] ss:$24 sps:$4 sm:$0xff]  }
 0x3fb   :  { %7393 = vmatpush1.bf16.msra.mxu1 %v11189_v27  ;;  %6947 = vmatprep.subr.bf16.mxu0 %v11194_v17  ;;  %v11246_v27 = vld [vmem:[#allocation4 + $0x1960] ss:$24 sps:$4 sm:$0xff]   ;;  %v11254_v17 = vld [vmem:[#allocation4 + $0x1994] ss:$24 sps:$4 sm:$0xff]  }
 0x3fc   :  { %7394 = vmatprep.subr.bf16.mxu1 %v11197_v24  ;;  %v5351_v49 = vpop.f32.mrb[44].mxu0  ;;  %9394 = vmatprep.mubr.msk.bf16.mxu0 %vm1550_vm0, %v12279_v12  ;;  %v11257_v24 = vld [vmem:[#allocation4 + $0x1bdc] ss:$24 sps:$4 sm:$0xff]  }
 0x3fd   :  { %v5392_v22 = vpop.f32.mrb[44].mxu1  ;;  %9474 = vmatprep.mubr.msk.bf16.mxu1 %vm1550_vm0, %v12314_v45  ;;  %v7634_v54 = vrot.slane %v5351_v49, 1  ;;  %v5353_v42 = vpop.f32.mrb[45].mxu0  ;;  %v7772_v10 = vld [vmem:[#allocation3 + $0x8] sm:$0xf]  ;;  %v9387_v49 = vcombine.low %v1009_v19, %v1009_v19 }
 0x3fe   :  { %v7662_v4 = vrot.slane %v5392_v22, 1  ;;  %v5394_v34 = vpop.f32.mrb[45].mxu1  ;;  %v7648_v13 = vrot.slane %v5353_v42, 1  ;;  %v5355_v51 = vpop.f32.mrb[46].mxu0  ;;  %6948 = vmatpush1.bf16.msra.mxu0 %v11192_v2  ;;  %v11252_v2 = vld [vmem:[#allocation4 + $0x1990] ss:$24 sps:$4 sm:$0xff]   ;;  %v9467_v22 = vcombine.low %v1082_v16, %v1082_v16 }
 0x3ff   :  { %v7676_v32 = vrot.slane %v5394_v34, 1  ;;  %v5396_v29 = vpop.f32.mrb[46].mxu1  ;;  %7395 = vmatpush1.bf16.msra.mxu1 %v11195_v33  ;;  %v12325_v62 = vsel %vm7606_vm10, %v7634_v54, %v12254_v37  ;;  %v5356_v6 = vpop.f32.mrb[47].mxu0  ;;  %6949 = vmatprep.subr.bf16.mxu0 %v11200_v3  ;;  %v11204_v37 = vld [vmem:[#allocation4 + $0x1810] ss:$24 sps:$4 sm:$0xff]   ;;  %v9388_v3 = vcombine.high %v1009_v19, %v1009_v19  ;;  %v6858_v54 = vsel %vm1554_vm1, %v9387_v49, 0 }
 0x400   :  { %v7663_v12 = vsel %vm7606_vm10, %v7662_v4, %v12289_v8  ;;  %v5397_v35 = vpop.f32.mrb[47].mxu1  ;;  %7396 = vmatprep.subr.bf16.mxu1 %v11203_v41  ;;  %v12331_v46 = vsel %vm7606_vm10, %v7648_v13, %v12262_v14  ;;  %v7774_v8 = vmax.f32 %v7772_v10, 1e-06  ;;  %v11210_v14 = vld [vmem:[#allocation4 + $0x1840] ss:$24 sps:$4 sm:$0xff]   ;;  %v9468_v41 = vcombine.high %v1082_v16, %v1082_v16 }
 0x401   :  { %v7677_v7 = vsel %vm7606_vm10, %v7676_v32, %v12295_v11  ;;  %7742 = vst [vmem:[#allocation2 + $0x20] sm:$0xff] %v7663_v12  ;;  %v11218_v11 = vld [vmem:[#allocation4 + $0x1874] ss:$24 sps:$4 sm:$0xff]   ;;  %v11255_v33 = vld [vmem:[#allocation4 + $0x1bd8] ss:$24 sps:$4 sm:$0xff]   ;;  %v7375_v4 = vsel %vm1554_vm1, %v9467_v22, 0 }
 0x402   :  { %6950 = vmatpush1.bf16.msra.mxu0 %v11198_v53  ;;  %7743 = vst [vmem:[#allocation2 + $0x28] sm:$0xff] %v7677_v7  ;;  %7794 = vperm.xlu1 %9968, %v7774_v8   ;;  %v11264_v42 = vld [vmem:[#allocation4 + $0x19d4] ss:$24 sps:$4 sm:$0xff]   ;;  %v12341_v53 = vrot.slane %v12306_v50, %v11831_v5  ;;  %v11262_v13 = vld [vmem:[#allocation4 + $0x19d0] ss:$24 sps:$4 sm:$0xff]  }
 0x403   :  { %7397 = vmatpush1.bf16.msra.mxu1 %v11201_v30  ;;  %6951 = vmatprep.subr.bf16.mxu0 %v11206_v36  ;;  %v11267_v34 = vld [vmem:[#allocation4 + $0x19dc] ss:$24 sps:$4 sm:$0xff]   ;;  %v11265_v32 = vld [vmem:[#allocation4 + $0x19d8] ss:$24 sps:$4 sm:$0xff]   ;;  %v11273_v29 = vld [vmem:[#allocation4 + $0x1a0c] ss:$24 sps:$4 sm:$0xff]  }
 0x404   :  { %7398 = vmatprep.subr.bf16.mxu1 %v11209_v59  ;;  %v11270_v51 = vld [vmem:[#allocation4 + $0x1a04] ss:$24 sps:$4 sm:$0xff]   ;;  %v11268_v30 = vld [vmem:[#allocation4 + $0x1a00] ss:$24 sps:$4 sm:$0xff]   ;;  %v11276_v5 = vld [vmem:[#allocation4 + $0x1a34] ss:$24 sps:$4 sm:$0xff]  }
 0x405   :  { %v11271_v12 = vld [vmem:[#allocation4 + $0x1a08] ss:$24 sps:$4 sm:$0xff]   ;;  %v11279_v50 = vld [vmem:[#allocation4 + $0x1a3c] ss:$24 sps:$4 sm:$0xff]   ;;  %v11325_v16 = vld [vmem:[#allocation4 + $0x1bb8] ss:$24 sps:$4 sm:$0xff]  }
 0x406   :  { %6952 = vmatpush1.bf16.msra.mxu0 %v11204_v37  ;;  %v11274_v10 = vld [vmem:[#allocation4 + $0x1a30] ss:$24 sps:$4 sm:$0xff]   ;;  %v11328_v49 = vld [vmem:[#allocation4 + $0x1be0] ss:$24 sps:$4 sm:$0xff]  }
 0x407   :  { %7399 = vmatpush1.bf16.msra.mxu1 %v11207_v60  ;;  %6953 = vmatprep.subr.bf16.mxu0 %v11212_v63  ;;  %v11277_v37 = vld [vmem:[#allocation4 + $0x1a38] ss:$24 sps:$4 sm:$0xff]   ;;  %v11282_v63 = vld [vmem:[#allocation4 + $0x1a64] ss:$24 sps:$4 sm:$0xff]   ;;  %v11331_v22 = vld [vmem:[#allocation4 + $0x1be8] ss:$24 sps:$4 sm:$0xff]  }
 0x408   :  { %7400 = vmatprep.subr.bf16.mxu1 %v11215_v40  ;;  %v11285_v40 = vld [vmem:[#allocation4 + $0x1a6c] ss:$24 sps:$4 sm:$0xff]   ;;  %v11322_v19 = vld [vmem:[#allocation4 + $0x1bb0] ss:$24 sps:$4 sm:$0xff]  }
 0x40a   :  { %6954 = vmatpush1.bf16.msra.mxu0 %v11210_v14  ;;  %v11280_v14 = vld [vmem:[#allocation4 + $0x1a60] ss:$24 sps:$4 sm:$0xff]  }
 0x40b   :  { %7401 = vmatpush1.bf16.msra.mxu1 %v11213_v9  ;;  %6955 = vmatprep.subr.bf16.mxu0 %v11218_v11  ;;  %v11288_v9 = vld [vmem:[#allocation4 + $0x1a94] ss:$24 sps:$4 sm:$0xff]  }
 0x40c   :  { %7402 = vmatprep.subr.bf16.mxu1 %v11221_v47  ;;  %v11291_v11 = vld [vmem:[#allocation4 + $0x1a9c] ss:$24 sps:$4 sm:$0xff]   ;;  %v11286_v47 = vld [vmem:[#allocation4 + $0x1a90] ss:$24 sps:$4 sm:$0xff]  }
 0x40e   :  { %6956 = vmatpush1.bf16.msra.mxu0 %v11216_v52  ;;  %v11289_v52 = vld [vmem:[#allocation4 + $0x1a98] ss:$24 sps:$4 sm:$0xff]  }
 0x40f   :  { %7403 = vmatpush1.bf16.msra.mxu1 %v11219_v1  ;;  %6957 = vmatprep.subr.bf16.mxu0 %v11224_v44  ;;  %v11294_v1 = vld [vmem:[#allocation4 + $0x1ac4] ss:$24 sps:$4 sm:$0xff]  }
 0x410   :  { %7404 = vmatprep.subr.bf16.mxu1 %v11227_v48  ;;  %v11297_v44 = vld [vmem:[#allocation4 + $0x1acc] ss:$24 sps:$4 sm:$0xff]   ;;  %v11292_v48 = vld [vmem:[#allocation4 + $0x1ac0] ss:$24 sps:$4 sm:$0xff]  }
 0x412   :  { %6958 = vmatpush1.bf16.msra.mxu0 %v11222_v21  ;;  %v11295_v21 = vld [vmem:[#allocation4 + $0x1ac8] ss:$24 sps:$4 sm:$0xff]  }
 0x413   :  { %7405 = vmatpush1.bf16.msra.mxu1 %v11225_v15  ;;  %6959 = vmatprep.subr.bf16.mxu0 %v11230_v28  ;;  %v11300_v15 = vld [vmem:[#allocation4 + $0x1af4] ss:$24 sps:$4 sm:$0xff]  }
 0x414   :  { %7406 = vmatprep.subr.bf16.mxu1 %v11233_v55  ;;  %v11303_v28 = vld [vmem:[#allocation4 + $0x1afc] ss:$24 sps:$4 sm:$0xff]   ;;  %v11298_v55 = vld [vmem:[#allocation4 + $0x1af0] ss:$24 sps:$4 sm:$0xff]  }
 0x416   :  { %6960 = vmatpush1.bf16.msra.mxu0 %v11228_v58  ;;  %v11301_v58 = vld [vmem:[#allocation4 + $0x1af8] ss:$24 sps:$4 sm:$0xff]  }
 0x417   :  { %7407 = vmatpush1.bf16.msra.mxu1 %v11231_v56  ;;  %6961 = vmatprep.subr.bf16.mxu0 %v11236_v25  ;;  %v11306_v56 = vld [vmem:[#allocation4 + $0x1b24] ss:$24 sps:$4 sm:$0xff]  }
 0x418   :  { %7408 = vmatprep.subr.bf16.mxu1 %v11239_v57  ;;  %v11309_v25 = vld [vmem:[#allocation4 + $0x1b2c] ss:$24 sps:$4 sm:$0xff]   ;;  %v11304_v57 = vld [vmem:[#allocation4 + $0x1b20] ss:$24 sps:$4 sm:$0xff]  }
 0x41a   :  { %6962 = vmatpush1.bf16.msra.mxu0 %v11234_v20  ;;  %v11307_v20 = vld [vmem:[#allocation4 + $0x1b28] ss:$24 sps:$4 sm:$0xff]  }
 0x41b   :  { %7409 = vmatpush1.bf16.msra.mxu1 %v11237_v26  ;;  %6963 = vmatprep.subr.bf16.mxu0 %v11242_v18  ;;  %v11312_v26 = vld [vmem:[#allocation4 + $0x1b54] ss:$24 sps:$4 sm:$0xff]  }
 0x41c   :  { %7410 = vmatprep.subr.bf16.mxu1 %v11245_v23  ;;  %v11315_v18 = vld [vmem:[#allocation4 + $0x1b5c] ss:$24 sps:$4 sm:$0xff]   ;;  %v11310_v23 = vld [vmem:[#allocation4 + $0x1b50] ss:$24 sps:$4 sm:$0xff]  }
 0x41e   :  { %6964 = vmatpush1.bf16.msra.mxu0 %v11240_v61  ;;  %v11313_v61 = vld [vmem:[#allocation4 + $0x1b58] ss:$24 sps:$4 sm:$0xff]  }
 0x41f   :  { %7411 = vmatpush1.bf16.msra.mxu1 %v11243_v39  ;;  %6965 = vmatprep.subr.bf16.mxu0 %v11248_v43  ;;  %v11318_v39 = vld [vmem:[#allocation4 + $0x1b84] ss:$24 sps:$4 sm:$0xff]  }
 0x420   :  { %7412 = vmatprep.subr.bf16.mxu1 %v11251_v0  ;;  %v11321_v43 = vld [vmem:[#allocation4 + $0x1b8c] ss:$24 sps:$4 sm:$0xff]   ;;  %v11316_v0 = vld [vmem:[#allocation4 + $0x1b80] ss:$24 sps:$4 sm:$0xff]  }
 0x422   :  { %6966 = vmatpush1.bf16.msra.mxu0 %v11246_v27  ;;  %v11319_v27 = vld [vmem:[#allocation4 + $0x1b88] ss:$24 sps:$4 sm:$0xff]  }
 0x423   :  { %7413 = vmatpush1.bf16.msra.mxu1 %v11249_v31  ;;  %6967 = vmatprep.subr.bf16.mxu0 %v11254_v17  ;;  %v11324_v31 = vld [vmem:[#allocation4 + $0x1bb4] ss:$24 sps:$4 sm:$0xff]  }
 0x424   :  { %7414 = vmatprep.subr.bf16.mxu1 %v11257_v24  ;;  %v11327_v17 = vld [vmem:[#allocation4 + $0x1bbc] ss:$24 sps:$4 sm:$0xff]   ;;  %v7790_v24 = vpop.permute.xlu1 %7789 }
 0x425   :  { %11338 = vrcp.f32 %v7790_v24 }
 0x426   :  { %6968 = vmatpush1.bf16.msra.mxu0 %v11252_v2  ;;  %v11330_v2 = vld [vmem:[#allocation4 + $0x1be4] ss:$24 sps:$4 sm:$0xff]  }
 0x427   :  { %7415 = vmatpush1.bf16.msra.mxu1 %v11255_v33  ;;  %9393 = vmatprep.subr.msk.bf16.mxu0 %vm1554_vm1, %v9388_v3  ;;  %v11333_v33 = vld [vmem:[#allocation4 + $0x1bec] ss:$24 sps:$4 sm:$0xff]   ;;  %v1083_v3 = vld [vmem:[#allocation4 + $0x1c10] sm:$0xff] }
 0x428   :  { %9473 = vmatprep.subr.msk.bf16.mxu1 %vm1554_vm1, %v9468_v41  ;;  %v1084_v41 = vld [vmem:[#allocation4 + $0x1c18] sm:$0xff] }
 0x42a   :  { %6970 = vmatpush1.bf16.msra.mxu0 %v6858_v54  ;;  %v9470_v54 = vcombine.high %v1083_v3, %v1083_v3 }
 0x42b   :  { %7417 = vmatpush1.bf16.msra.mxu1 %v7375_v4  ;;  %7433 = vmatprep.subr.bf16.mxu0 %v11264_v42  ;;  %v9472_v4 = vcombine.high %v1084_v41, %v1084_v41  ;;  %v9469_v42 = vcombine.low %v1083_v3, %v1083_v3 }
 0x42c   :  { %7474 = vmatprep.subr.bf16.mxu1 %v11267_v34  ;;  %v9471_v34 = vcombine.low %v1084_v41, %v1084_v41 }
 0x42d   :  { %6978 = vmatmul.mubr.bf16.vlgmr.msra.gmra.mrb[64].mxu0 %v12310_v38 }
 0x42e   :  { %7425 = vmatmul.mubr.bf16.vlgmr.msra.gmra.mrb[64].mxu1 %v12341_v53  ;;  %7434 = vmatpush1.bf16.msra.mxu0 %v11262_v13  ;;  %v7827_v13 = vld [vmem:[#allocation9 + $0x80] sm:$0xff] }
 0x42f   :  { %7475 = vmatpush1.bf16.msra.mxu1 %v11265_v32  ;;  %7435 = vmatprep.subr.bf16.mxu0 %v11270_v51  ;;  %v7828_v32 = vld [vmem:[#allocation9 + $0x88] sm:$0xff]  ;;  %v7859_v51 = vld [vmem:[#allocation9 + $0x180] sm:$0xff] }
 0x430   :  { %7476 = vmatprep.subr.bf16.mxu1 %v11273_v29  ;;  %v12345_v6 = vpop.f32.mrb[48].mxu0  ;;  %9476 = vmatprep.mubr.msk.bf16.mxu0 %vm1550_vm0, %v12314_v45  ;;  %v7860_v29 = vld [vmem:[#allocation9 + $0x188] sm:$0xff] }
 0x431   :  { %v12347_v35 = vpop.f32.mrb[48].mxu1  ;;  %9478 = vmatprep.mubr.msk.bf16.mxu1 %vm1550_vm0, %v12314_v45  ;;  %v12353_v38 = vpop.f32.mrb[49].mxu0  ;;  %v11283_v45 = vld [vmem:[#allocation4 + $0x1a68] ss:$24 sps:$4 sm:$0xff]  }
 0x432   :  { %v12355_v36 = vpop.f32.mrb[49].mxu1  ;;  %v5843_v59 = vpop.f32.mrb[50].mxu0  ;;  %7436 = vmatpush1.bf16.msra.mxu0 %v11268_v30  ;;  %v7381_v30 = vsel %vm1554_vm1, %v9469_v42, 0 }
 0x433   :  { %v5884_v7 = vpop.f32.mrb[50].mxu1  ;;  %7477 = vmatpush1.bf16.msra.mxu1 %v11271_v12  ;;  %v5844_v60 = vpop.f32.mrb[51].mxu0  ;;  %7437 = vmatprep.subr.bf16.mxu0 %v11276_v5  ;;  %v7387_v12 = vsel %vm1554_vm1, %v9471_v34, 0  ;;  %v9756_v5 = vpack.c.bf16 %v7828_v32, %v7827_v13  ;;  %v7811_v59 = vld [vmem:[#allocation9] sm:$0xff]  ;;  %v7817_v34 = vld [vmem:[#allocation9 + $0x30] sm:$0xff]  ;;  %v7818_v13 = vld [vmem:[#allocation9 + $0x38] sm:$0xff] }
 0x434   :  { %v5885_v8 = vpop.f32.mrb[51].mxu1  ;;  %7478 = vmatprep.subr.bf16.mxu1 %v11279_v50  ;;  %v9788_v50 = vpack.c.bf16 %v7860_v29, %v7859_v51  ;;  %v7812_v7 = vld [vmem:[#allocation9 + $0x8] sm:$0xff]  ;;  %v7849_v32 = vld [vmem:[#allocation9 + $0x130] sm:$0xff] }
 0x435   :  { %v7844_v60 = vld [vmem:[#allocation9 + $0x108] sm:$0xff]  ;;  %v7829_v8 = vld [vmem:[#allocation9 + $0x90] sm:$0xff] }
 0x436   :  { %7438 = vmatpush1.bf16.msra.mxu0 %v11274_v10  ;;  %v7776_v10 = vld [vmem:[#allocation2 + $0x8] sm:$0xff] }
 0x437   :  { %7479 = vmatpush1.bf16.msra.mxu1 %v11277_v37  ;;  %7439 = vmatprep.subr.bf16.mxu0 %v11282_v63  ;;  %v7843_v37 = vld [vmem:[#allocation9 + $0x100] sm:$0xff]  ;;  %v12361_v63 = vpop.eup %11338 }
 0x438   :  { %7480 = vmatprep.subr.bf16.mxu1 %v11285_v40  ;;  %v7830_v40 = vld [vmem:[#allocation9 + $0x98] sm:$0xff] }
 0x43a   :  { %7440 = vmatpush1.bf16.msra.mxu0 %v11280_v14  ;;  %v7861_v14 = vld [vmem:[#allocation9 + $0x190] sm:$0xff] }
 0x43b   :  { %7481 = vmatpush1.bf16.msra.mxu1 %v11283_v45  ;;  %7441 = vmatprep.subr.bf16.mxu0 %v11288_v9  ;;  %v7862_v45 = vld [vmem:[#allocation9 + $0x198] sm:$0xff]  ;;  %v9758_v9 = vpack.c.bf16 %v7812_v7, %v7811_v59  ;;  %v9770_v59 = vpack.c.bf16 %v7818_v13, %v7817_v34 }
 0x43c   :  { %7482 = vmatprep.subr.bf16.mxu1 %v11291_v11  ;;  %v9790_v11 = vpack.c.bf16 %v7844_v60, %v7843_v37  ;;  %v7819_v37 = vld [vmem:[#allocation9 + $0x40] sm:$0xff]  ;;  %v7820_v60 = vld [vmem:[#allocation9 + $0x48] sm:$0xff] }
 0x43e   :  { %7442 = vmatpush1.bf16.msra.mxu0 %v11286_v47  ;;  %v7813_v47 = vld [vmem:[#allocation9 + $0x10] sm:$0xff] }
 0x43f   :  { %7483 = vmatpush1.bf16.msra.mxu1 %v11289_v52  ;;  %7443 = vmatprep.subr.bf16.mxu0 %v11294_v1  ;;  %v7814_v52 = vld [vmem:[#allocation9 + $0x18] sm:$0xff]  ;;  %v7845_v1 = vld [vmem:[#allocation9 + $0x110] sm:$0xff] }
 0x440   :  { %7484 = vmatprep.subr.bf16.mxu1 %v11297_v44  ;;  %v7799_v44 = vmul.f32 %v12361_v63, %v7776_v10 }
 0x442   :  { %7444 = vmatpush1.bf16.msra.mxu0 %v11292_v48  ;;  %v9760_v48 = vpack.c.bf16 %v7830_v40, %v7829_v8  ;;  %v7851_v8 = vld [vmem:[#allocation9 + $0x140] sm:$0xff] }
 0x443   :  { %7485 = vmatpush1.bf16.msra.mxu1 %v11295_v21  ;;  %7445 = vmatprep.subr.bf16.mxu0 %v11300_v15  ;;  %v9792_v21 = vpack.c.bf16 %v7862_v45, %v7861_v14  ;;  %v7846_v15 = vld [vmem:[#allocation9 + $0x118] sm:$0xff]  ;;  %v7837_v14 = vld [vmem:[#allocation9 + $0xd0] sm:$0xff] }
 0x444   :  { %7486 = vmatprep.subr.bf16.mxu1 %v11303_v28  ;;  %v7831_v28 = vld [vmem:[#allocation9 + $0xa0] sm:$0xff]  ;;  %v7838_v45 = vld [vmem:[#allocation9 + $0xd8] sm:$0xff] }
 0x446   :  { %7446 = vmatpush1.bf16.msra.mxu0 %v11298_v55  ;;  %v7832_v55 = vld [vmem:[#allocation9 + $0xa8] sm:$0xff] }
 0x447   :  { %7487 = vmatpush1.bf16.msra.mxu1 %v11301_v58  ;;  %7447 = vmatprep.subr.bf16.mxu0 %v11306_v56  ;;  %v7801_v58 = vmul.f32 %v12361_v63, %v12331_v46  ;;  %v7863_v56 = vld [vmem:[#allocation9 + $0x1a0] sm:$0xff]  ;;  %v7833_v46 = vld [vmem:[#allocation9 + $0xb0] sm:$0xff] }
 0x448   :  { %7488 = vmatprep.subr.bf16.mxu1 %v11309_v25  ;;  %v7864_v25 = vld [vmem:[#allocation9 + $0x1a8] sm:$0xff] }
 0x44a   :  { %7448 = vmatpush1.bf16.msra.mxu0 %v11304_v57  ;;  %v9762_v57 = vpack.c.bf16 %v7814_v52, %v7813_v47  ;;  %v9774_v47 = vpack.c.bf16 %v7820_v60, %v7819_v37  ;;  %v7800_v37 = vmul.f32 %v12361_v63, %v12325_v62  ;;  %v7895_v60 = vld [vmem:[#allocation9 + $0x2a0] sm:$0xff]  ;;  %v7900_v62 = vld [vmem:[#allocation9 + $0x2c8] sm:$0xff] }
 0x44b   :  { %7489 = vmatpush1.bf16.msra.mxu1 %v11307_v20  ;;  %7449 = vmatprep.subr.bf16.mxu0 %v11312_v26  ;;  %v9794_v20 = vpack.c.bf16 %v7846_v15, %v7845_v1  ;;  %v9764_v26 = vpack.c.bf16 %v7832_v55, %v7831_v28  ;;  %v9776_v1 = vpack.c.bf16 %v7838_v45, %v7837_v14  ;;  %v7854_v28 = vld [vmem:[#allocation9 + $0x158] sm:$0xff]  ;;  %v7839_v55 = vld [vmem:[#allocation9 + $0xe0] sm:$0xff]  ;;  %v7880_v45 = vld [vmem:[#allocation9 + $0x228] sm:$0xff] }
 0x44c   :  { %7490 = vmatprep.subr.bf16.mxu1 %v11315_v18  ;;  %v7815_v18 = vld [vmem:[#allocation9 + $0x20] sm:$0xff] }
 0x44d   :  { %v7879_v14 = vld [vmem:[#allocation9 + $0x220] sm:$0xff] }
 0x44e   :  { %7450 = vmatpush1.bf16.msra.mxu0 %v11310_v23  ;;  %v7816_v23 = vld [vmem:[#allocation9 + $0x28] sm:$0xff] }
 0x44f   :  { %7491 = vmatpush1.bf16.msra.mxu1 %v11313_v61  ;;  %7451 = vmatprep.subr.bf16.mxu0 %v11318_v39  ;;  %v7847_v61 = vld [vmem:[#allocation9 + $0x120] sm:$0xff]  ;;  %v9766_v41 = vpack.c.bf16 %v7816_v23, %v7815_v18  ;;  %v7824_v23 = vld [vmem:[#allocation9 + $0x68] sm:$0xff] }
 0x450   :  { %7492 = vmatprep.subr.bf16.mxu1 %v11321_v43  ;;  %v7823_v18 = vld [vmem:[#allocation9 + $0x60] sm:$0xff] }
 0x452   :  { %7452 = vmatpush1.bf16.msra.mxu0 %v11316_v0  ;;  %v7848_v0 = vld [vmem:[#allocation9 + $0x128] sm:$0xff] }
 0x453   :  { %7493 = vmatpush1.bf16.msra.mxu1 %v11319_v27  ;;  %7453 = vmatprep.subr.bf16.mxu0 %v11324_v31  ;;  %v7834_v27 = vld [vmem:[#allocation9 + $0xb8] sm:$0xff] }
 0x454   :  { %7494 = vmatprep.subr.bf16.mxu1 %v11327_v17  ;;  %v9768_v42 = vpack.c.bf16 %v7834_v27, %v7833_v46  ;;  %v7842_v46 = vld [vmem:[#allocation9 + $0xf8] sm:$0xff]  ;;  %v7873_v27 = vld [vmem:[#allocation9 + $0x1f0] sm:$0xff] }
 0x456   :  { %7454 = vmatpush1.bf16.msra.mxu0 %v11322_v19  ;;  %v7865_v19 = vld [vmem:[#allocation9 + $0x1b0] sm:$0xff] }
 0x457   :  { %7495 = vmatpush1.bf16.msra.mxu1 %v11325_v16  ;;  %7455 = vmatprep.subr.bf16.mxu0 %v11330_v2  ;;  %v7866_v16 = vld [vmem:[#allocation9 + $0x1b8] sm:$0xff] }
 0x458   :  { %7496 = vmatprep.subr.bf16.mxu1 %v11333_v33  ;;  %v9800_v29 = vpack.c.bf16 %v7866_v16, %v7865_v19 }
 0x45a   :  { %7456 = vmatpush1.bf16.msra.mxu0 %v11328_v49 }
 0x45b   :  { %7497 = vmatpush1.bf16.msra.mxu1 %v11331_v22  ;;  %9475 = vmatprep.subr.msk.bf16.mxu0 %vm1554_vm1, %v9470_v54 }
 0x45c   :  { %9477 = vmatprep.subr.msk.bf16.mxu1 %vm1554_vm1, %v9472_v4  ;;  %v9798_v4 = vpack.c.bf16 %v7848_v0, %v7847_v61  ;;  %v7855_v61 = vld [vmem:[#allocation9 + $0x160] sm:$0xff]  ;;  %v7841_v0 = vld [vmem:[#allocation9 + $0xf0] sm:$0xff] }
 0x45d   :  { %v9784_v16 = vpack.c.bf16 %v7842_v46, %v7841_v0  ;;  %v7888_v0 = vld [vmem:[#allocation9 + $0x268] sm:$0xff]  ;;  %v7905_v46 = vld [vmem:[#allocation9 + $0x2f0] sm:$0xff] }
 0x45e   :  { %7458 = vmatpush1.bf16.msra.mxu0 %v7381_v30  ;;  %v7850_v30 = vld [vmem:[#allocation9 + $0x138] sm:$0xff] }
 0x45f   :  { %7499 = vmatpush1.bf16.msra.mxu1 %v7387_v12  ;;  %9757 = vmatprep.subr.bf16.mxu0 %v9756_v5  ;;  %v7835_v12 = vld [vmem:[#allocation9 + $0xc0] sm:$0xff]  ;;  %v7836_v5 = vld [vmem:[#allocation9 + $0xc8] sm:$0xff]  ;;  %v9802_v7 = vpack.c.bf16 %v7850_v30, %v7849_v32  ;;  %v7775_v30 = vld [vmem:[#allocation2] sm:$0xff] }
 0x460   :  { %9789 = vmatprep.subr.bf16.mxu1 %v9788_v50  ;;  %v7868_v50 = vld [vmem:[#allocation9 + $0x1c8] sm:$0xff]  ;;  %v9772_v10 = vpack.c.bf16 %v7836_v5, %v7835_v12  ;;  %v7875_v32 = vld [vmem:[#allocation9 + $0x200] sm:$0xff]  ;;  %v7893_v12 = vld [vmem:[#allocation9 + $0x290] sm:$0xff] }
 0x461   :  { %7466 = vmatmul.mubr.bf16.vlgmr.msra.gmra.mrb[68].mxu0 %v12341_v53  ;;  %v7894_v5 = vld [vmem:[#allocation9 + $0x298] sm:$0xff] }
 0x462   :  { %7507 = vmatmul.mubr.bf16.vlgmr.msra.gmra.mrb[68].mxu1 %v12341_v53  ;;  %9759 = vmatpush3.bf16.msra.mxu0 %v9758_v9  ;;  %v9796_v53 = vpack.c.bf16 %v7864_v25, %v7863_v56  ;;  %v7869_v9 = vld [vmem:[#allocation9 + $0x1d0] sm:$0xff]  ;;  %v7871_v56 = vld [vmem:[#allocation9 + $0x1e0] sm:$0xff]  ;;  %v7872_v25 = vld [vmem:[#allocation9 + $0x1e8] sm:$0xff] }
 0x463   :  { %7978 = vmatprep.mubr.f32.mxu0 %v7799_v44  ;;  %9791 = vmatpush3.bf16.msra.mxu1 %v9790_v11  ;;  %v7870_v11 = vld [vmem:[#allocation9 + $0x1d8] sm:$0xff]  ;;  %v7821_v44 = vld [vmem:[#allocation9 + $0x50] sm:$0xff] }
 0x464   :  { %8053 = vmatprep.mubr.f32.mxu1 %v7801_v58  ;;  %v12368_v39 = vpop.f32.mrb[52].mxu0  ;;  %9761 = vmatprep.subr.bf16.mxu0 %v9760_v48  ;;  %v7822_v48 = vld [vmem:[#allocation9 + $0x58] sm:$0xff]  ;;  %v9808_v15 = vpack.c.bf16 %v7870_v11, %v7869_v9  ;;  %v7840_v58 = vld [vmem:[#allocation9 + $0xe8] sm:$0xff]  ;;  %v7897_v9 = vld [vmem:[#allocation9 + $0x2b0] sm:$0xff] }
 0x465   :  { %v6368_v43 = vpop.f32.mrb[52].mxu1  ;;  %9793 = vmatprep.subr.bf16.mxu1 %v9792_v21  ;;  %v12370_v17 = vpop.f32.mrb[53].mxu0  ;;  %v7853_v21 = vld [vmem:[#allocation9 + $0x150] sm:$0xff]  ;;  %v7898_v11 = vld [vmem:[#allocation9 + $0x2b8] sm:$0xff] }
 0x466   :  { %v7678_v31 = vrot.slane %v6368_v43, 7  ;;  %v6370_v24 = vpop.f32.mrb[53].mxu1  ;;  %v5925_v33 = vpop.f32.mrb[54].mxu0  ;;  %9763 = vmatpush3.bf16.msra.mxu0 %v9762_v57  ;;  %v9778_v57 = vpack.c.bf16 %v7822_v48, %v7821_v44  ;;  %v9812_v43 = vpack.c.bf16 %v7872_v25, %v7871_v56  ;;  %v7882_v44 = vld [vmem:[#allocation9 + $0x238] sm:$0xff]  ;;  %v7899_v48 = vld [vmem:[#allocation9 + $0x2c0] sm:$0xff] }
 0x467   :  { %v7684_v2 = vrot.slane %v6370_v24, 7  ;;  %v6372_v3 = vpop.f32.mrb[54].mxu1  ;;  %9795 = vmatpush3.bf16.msra.mxu1 %v9794_v20  ;;  %v5926_v22 = vpop.f32.mrb[55].mxu0  ;;  %9765 = vmatprep.subr.bf16.mxu0 %v9764_v26  ;;  %v9810_v20 = vpack.c.bf16 %v7854_v28, %v7853_v21  ;;  %v9780_v26 = vpack.c.bf16 %v7840_v58, %v7839_v55  ;;  %v9782_v24 = vpack.c.bf16 %v7824_v23, %v7823_v18  ;;  %v7826_v33 = vld [vmem:[#allocation9 + $0x78] sm:$0xff]  ;;  %v7883_v28 = vld [vmem:[#allocation9 + $0x240] sm:$0xff]  ;;  %v7884_v55 = vld [vmem:[#allocation9 + $0x248] sm:$0xff] }
 0x468   :  { %v12374_v49 = vsel %vm7588_vm2, %v7678_v31, %v12345_v6  ;;  %v6373_v54 = vpop.f32.mrb[55].mxu1  ;;  %9797 = vmatprep.subr.bf16.mxu1 %v9796_v53  ;;  %v7867_v6 = vld [vmem:[#allocation9 + $0x1c0] sm:$0xff]  ;;  %v7856_v53 = vld [vmem:[#allocation9 + $0x168] sm:$0xff]  ;;  %v7874_v31 = vld [vmem:[#allocation9 + $0x1f8] sm:$0xff]  ;;  %v9838_v25 = vpack.c.bf16 %v7884_v55, %v7883_v28 }
 0x469   :  { %v12378_v51 = vsel %vm7588_vm2, %v7684_v2, %v12353_v38  ;;  %v9804_v40 = vpack.c.bf16 %v7868_v50, %v7867_v6  ;;  %v7852_v38 = vld [vmem:[#allocation9 + $0x148] sm:$0xff]  ;;  %v9814_v19 = vpack.c.bf16 %v7856_v53, %v7855_v61  ;;  %v7825_v2 = vld [vmem:[#allocation9 + $0x70] sm:$0xff]  ;;  %v7858_v22 = vld [vmem:[#allocation9 + $0x178] sm:$0xff]  ;;  %v7798_v50 = vmul.f32 %v12361_v63, %v7775_v30 }
 0x46a   :  { %9767 = vmatpush3.bf16.msra.mxu0 %v9766_v41  ;;  %v9806_v52 = vpack.c.bf16 %v7852_v38, %v7851_v8  ;;  %v7857_v3 = vld [vmem:[#allocation9 + $0x170] sm:$0xff]  ;;  %v9816_v41 = vpack.c.bf16 %v7874_v31, %v7873_v27  ;;  %v7891_v54 = vld [vmem:[#allocation9 + $0x280] sm:$0xff]  ;;  %v7896_v8 = vld [vmem:[#allocation9 + $0x2a8] sm:$0xff] }
 0x46b   :  { %9799 = vmatpush3.bf16.msra.mxu1 %v9798_v4  ;;  %9769 = vmatprep.subr.bf16.mxu0 %v9768_v42  ;;  %v7892_v4 = vld [vmem:[#allocation9 + $0x288] sm:$0xff]  ;;  %v9786_v42 = vpack.c.bf16 %v7826_v33, %v7825_v2  ;;  %v9818_v34 = vpack.c.bf16 %v7858_v22, %v7857_v3  ;;  %v9828_v38 = vpack.c.bf16 %v7896_v8, %v7895_v60  ;;  %v7901_v58 = vld [vmem:[#allocation9 + $0x2d0] sm:$0xff]  ;;  %v7902_v56 = vld [vmem:[#allocation9 + $0x2d8] sm:$0xff] }
 0x46c   :  { %9801 = vmatprep.subr.bf16.mxu1 %v9800_v29  ;;  %v9820_v13 = vpack.c.bf16 %v7892_v4, %v7891_v54  ;;  %v7876_v29 = vld [vmem:[#allocation9 + $0x208] sm:$0xff]  ;;  %v7903_v18 = vld [vmem:[#allocation9 + $0x2e0] sm:$0xff]  ;;  %v7906_v27 = vld [vmem:[#allocation9 + $0x2f8] sm:$0xff] }
 0x46d   :  { %v9822_v6 = vpack.c.bf16 %v7876_v29, %v7875_v32  ;;  %v7904_v23 = vld [vmem:[#allocation9 + $0x2e8] sm:$0xff]  ;;  %v7887_v53 = vld [vmem:[#allocation9 + $0x260] sm:$0xff] }
 0x46e   :  { %9771 = vmatpush3.bf16.msra.mxu0 %v9770_v59  ;;  %v9824_v59 = vpack.c.bf16 %v7894_v5, %v7893_v12  ;;  %v9846_v31 = vpack.c.bf16 %v7888_v0, %v7887_v53  ;;  %v1098_v55 = vld [vmem:[#allocation2 + $0x38] sm:$0xf] }
 0x46f   :  { %9803 = vmatpush3.bf16.msra.mxu1 %v9802_v7  ;;  %9773 = vmatprep.subr.bf16.mxu0 %v9772_v10  ;;  %v7877_v7 = vld [vmem:[#allocation9 + $0x210] sm:$0xff]  ;;  %v7878_v10 = vld [vmem:[#allocation9 + $0x218] sm:$0xff] }
 0x470   :  { %9805 = vmatprep.subr.bf16.mxu1 %v9804_v40  ;;  %v9826_v40 = vpack.c.bf16 %v7878_v10, %v7877_v7 }
 0x472   :  { %9775 = vmatpush3.bf16.msra.mxu0 %v9774_v47  ;;  %v9830_v47 = vpack.c.bf16 %v7880_v45, %v7879_v14 }
 0x473   :  { %9807 = vmatpush3.bf16.msra.mxu1 %v9806_v52  ;;  %9777 = vmatprep.subr.bf16.mxu0 %v9776_v1  ;;  %v9832_v52 = vpack.c.bf16 %v7898_v11, %v7897_v9  ;;  %v7881_v1 = vld [vmem:[#allocation9 + $0x230] sm:$0xff] }
 0x474   :  { %9809 = vmatprep.subr.bf16.mxu1 %v9808_v15  ;;  %v9834_v21 = vpack.c.bf16 %v7882_v44, %v7881_v1  ;;  %v9836_v15 = vpack.c.bf16 %v7900_v62, %v7899_v48  ;;  %v1097_v48 = vld [vmem:[#allocation2 + $0x30] sm:$0xf] }
 0x476   :  { %9779 = vmatpush3.bf16.msra.mxu0 %v9778_v57  ;;  %v9840_v57 = vpack.c.bf16 %v7902_v56, %v7901_v58 }
 0x477   :  { %9811 = vmatpush3.bf16.msra.mxu1 %v9810_v20  ;;  %9781 = vmatprep.subr.bf16.mxu0 %v9780_v26  ;;  %v7885_v20 = vld [vmem:[#allocation9 + $0x250] sm:$0xff]  ;;  %v7886_v26 = vld [vmem:[#allocation9 + $0x258] sm:$0xff] }
 0x478   :  { %9813 = vmatprep.subr.bf16.mxu1 %v9812_v43  ;;  %v9842_v61 = vpack.c.bf16 %v7886_v26, %v7885_v20  ;;  %v9844_v43 = vpack.c.bf16 %v7904_v23, %v7903_v18 }
 0x47a   :  { %9783 = vmatpush3.bf16.msra.mxu0 %v9782_v24  ;;  %v9848_v24 = vpack.c.bf16 %v7906_v27, %v7905_v46  ;;  %v7780_v46 = vld [vmem:[#allocation2 + $0x28] sm:$0xff] }
 0x47b   :  { %9815 = vmatpush3.bf16.msra.mxu1 %v9814_v19  ;;  %9785 = vmatprep.subr.bf16.mxu0 %v9784_v16  ;;  %v7889_v19 = vld [vmem:[#allocation9 + $0x270] sm:$0xff]  ;;  %v7890_v16 = vld [vmem:[#allocation9 + $0x278] sm:$0xff] }
 0x47c   :  { %9817 = vmatprep.subr.bf16.mxu1 %v9816_v41  ;;  %v9850_v32 = vpack.c.bf16 %v7890_v16, %v7889_v19  ;;  %v7779_v19 = vld [vmem:[#allocation2 + $0x20] sm:$0xff] }
 0x47d   :  { %v7802_v16 = vmul.f32 %v12361_v63, %v7779_v19  ;;  %v8155_v19 = vld [vmem:[#allocation12 + $0x70] sm:$0xff] }
 0x47e   :  { %9787 = vmatpush3.bf16.msra.mxu0 %v9786_v42 }
 0x47f   :  { %9819 = vmatpush3.bf16.msra.mxu1 %v9818_v34  ;;  %9821 = vmatprep.subr.bf16.mxu0 %v9820_v13 }
 0x481   :  { %7979 = vmatmul.mubr.f32.vlgmr.msra.gmra.mrb[72].mxu0 %v7798_v50 }
 0x482   :  { %8054 = vmatmul.mubr.f32.vlgmr.msra.gmra.mrb[72].mxu1 %v7800_v37  ;;  %9823 = vmatpush3.bf16.msra.mxu0 %v9822_v6 }
 0x483   :  { %9825 = vmatprep.subr.bf16.mxu0 %v9824_v59 }
 0x486   :  { %9827 = vmatpush3.bf16.msra.mxu0 %v9826_v40 }
 0x487   :  { %9829 = vmatprep.subr.bf16.mxu0 %v9828_v38 }
 0x48a   :  { %9831 = vmatpush3.bf16.msra.mxu0 %v9830_v47  ;;  %v7795_v47 = vpop.permute.xlu1 %7794 }
 0x48b   :  { %9833 = vmatprep.subr.bf16.mxu0 %v9832_v52  ;;  %11340 = vrcp.f32 %v7795_v47  ;;  %v12407_v47 = vld [vmem:[#allocation10] ss:$0 sm:$0xff] }
 0x48e   :  { %9835 = vmatpush3.bf16.msra.mxu0 %v9834_v21 }
 0x48f   :  { %9837 = vmatprep.subr.bf16.mxu0 %v9836_v15 }
 0x492   :  { %9839 = vmatpush3.bf16.msra.mxu0 %v9838_v25 }
 0x493   :  { %9841 = vmatprep.subr.bf16.mxu0 %v9840_v57 }
 0x496   :  { %9843 = vmatpush3.bf16.msra.mxu0 %v9842_v61 }
 0x497   :  { %9845 = vmatprep.subr.bf16.mxu0 %v9844_v43  ;;  %v11341_v43 = vpop.eup %11340 }
 0x498   :  { %v6409_v2 = vpop.f32.mrb[56].mxu0 }
 0x499   :  { %v6450_v33 = vpop.f32.mrb[56].mxu1  ;;  %v7690_v3 = vrot.slane %v6409_v2, 7  ;;  %v6411_v22 = vpop.f32.mrb[57].mxu0  ;;  %v1099_v2 = vld [vmem:[#allocation2 + $0x40] sm:$0xf] }
 0x49a   :  { %v7702_v41 = vrot.slane %v6450_v33, 7  ;;  %v6452_v54 = vpop.f32.mrb[57].mxu1  ;;  %v7696_v4 = vrot.slane %v6411_v22, 7  ;;  %v6413_v34 = vpop.f32.mrb[58].mxu0  ;;  %9847 = vmatpush3.bf16.msra.mxu0 %v9846_v31 }
 0x49b   :  { %v7708_v42 = vrot.slane %v6452_v54, 7  ;;  %v6454_v13 = vpop.f32.mrb[58].mxu1  ;;  %v7691_v29 = vsel %vm7588_vm2, %v7690_v3, %v12347_v35  ;;  %v6414_v12 = vpop.f32.mrb[59].mxu0  ;;  %9849 = vmatprep.subr.bf16.mxu0 %v9848_v24  ;;  %v7803_v24 = vmul.f32 %v12361_v63, %v7780_v46  ;;  %v1101_v3 = vld [vmem:[#allocation2 + $0x50] sm:$0xf] }
 0x49c   :  { %v7703_v30 = vsel %vm7588_vm2, %v7702_v41, %v12368_v39  ;;  %v6455_v5 = vpop.f32.mrb[59].mxu1  ;;  %v7697_v6 = vsel %vm7588_vm2, %v7696_v4, %v12355_v36  ;;  %v1100_v4 = vld [vmem:[#allocation2 + $0x48] sm:$0xf] }
 0x49d   :  { %v7709_v50 = vsel %vm7588_vm2, %v7708_v42, %v12370_v17 }
 0x49e   :  { %9851 = vmatpush3.bf16.msra.mxu0 %v9850_v32  ;;  %v1102_v32 = vld [vmem:[#allocation2 + $0x58] sm:$0xf] }
 0x4cc   :  { %v6897_v59 = vpop.f32.mrb[60].mxu0 }
 0x4cd   :  { %v6938_v7 = vpop.f32.mrb[60].mxu1  ;;  %v7680_v10 = vrot.slane %v6897_v59, 6  ;;  %v6899_v60 = vpop.f32.mrb[61].mxu0 }
 0x4ce   :  { %v7692_v37 = vrot.slane %v6938_v7, 6  ;;  %v6940_v8 = vpop.f32.mrb[61].mxu1  ;;  %v7686_v35 = vrot.slane %v6899_v60, 6  ;;  %v6901_v38 = vpop.f32.mrb[62].mxu0 }
 0x4cf   :  { %v7698_v40 = vrot.slane %v6940_v8, 6  ;;  %v6942_v39 = vpop.f32.mrb[62].mxu1  ;;  %v7681_v14 = vsel %vm7591_vm3, %v7680_v10, %v12374_v49  ;;  %v6902_v36 = vpop.f32.mrb[63].mxu0 }
 0x4d0   :  { %v7693_v45 = vsel %vm7591_vm3, %v7692_v37, %v7691_v29  ;;  %v6943_v9 = vpop.f32.mrb[63].mxu1  ;;  %v7687_v17 = vsel %vm7591_vm3, %v7686_v35, %v12378_v51 }
 0x4d1   :  { %v7699_v11 = vsel %vm7591_vm3, %v7698_v40, %v7697_v6 }
 0x500   :  { %v6979_v52 = vpop.f32.mrb[64].mxu0 }
 0x501   :  { %v7426_v1 = vpop.f32.mrb[64].mxu1  ;;  %v7704_v44 = vrot.slane %v6979_v52, 6  ;;  %v6981_v21 = vpop.f32.mrb[65].mxu0 }
 0x502   :  { %v7682_v62 = vrot.slane %v7426_v1, 5  ;;  %v7428_v15 = vpop.f32.mrb[65].mxu1  ;;  %v7710_v28 = vrot.slane %v6981_v21, 6  ;;  %v6983_v58 = vpop.f32.mrb[66].mxu0 }
 0x503   :  { %v7688_v49 = vrot.slane %v7428_v15, 5  ;;  %v7430_v56 = vpop.f32.mrb[66].mxu1  ;;  %v7705_v25 = vsel %vm7591_vm3, %v7704_v44, %v7703_v30  ;;  %v6984_v57 = vpop.f32.mrb[67].mxu0  ;;  %v8141_v15 = vld [vmem:[#allocation12] sm:$0xff]  ;;  %v8144_v58 = vld [vmem:[#allocation12 + $0x18] sm:$0xff] }
 0x504   :  { %v7683_v51 = vsel %vm7594_vm4, %v7682_v62, %v7681_v14  ;;  %v7431_v20 = vpop.f32.mrb[67].mxu1  ;;  %v7711_v18 = vsel %vm7591_vm3, %v7710_v28, %v7709_v50  ;;  %v8142_v28 = vld [vmem:[#allocation12 + $0x8] sm:$0xff] }
 0x505   :  { %v7732_v26 = vadd.f32 %v7683_v51, %v1097_v48  ;;  %v7689_v23 = vsel %vm7594_vm4, %v7688_v49, %v7687_v17  ;;  %v9852_v49 = vpack.c.bf16 %v8142_v28, %v8141_v15  ;;  %v8146_v51 = vld [vmem:[#allocation12 + $0x28] sm:$0xff]  ;;  %v8147_v20 = vld [vmem:[#allocation12 + $0x30] sm:$0xff] }
 0x506   :  { %v7733_v61 = vadd.f32 %v7689_v23, %v1098_v55  ;;  %v8143_v55 = vld [vmem:[#allocation12 + $0x10] sm:$0xff]  ;;  %v8149_v23 = vld [vmem:[#allocation12 + $0x40] sm:$0xff] }
 0x507   :  { %7744 = vst [vmem:[#allocation2 + $0x30] sm:$0xf] %v7732_v26  ;;  %v9856_v56 = vpack.c.bf16 %v8144_v58, %v8143_v55  ;;  %9853 = vmatprep.subr.bf16.mxu1 %v9852_v49  ;;  %v8148_v26 = vld [vmem:[#allocation12 + $0x38] sm:$0xff]  ;;  %v8342_v58 = vld [vmem:[#allocation18 + $0x8] sm:$0xff] }
 0x508   :  { %7745 = vst [vmem:[#allocation2 + $0x38] sm:$0xf] %v7733_v61  ;;  %9855 = vmatpush3.bf16.msra.mxu1 %v9852_v49  ;;  %v8150_v61 = vld [vmem:[#allocation12 + $0x48] sm:$0xff]  ;;  %v8255_v28 = vld [vmem:[#allocation15 + $0x70] sm:$0xff]  ;;  %v8256_v55 = vld [vmem:[#allocation15 + $0x78] sm:$0xff] }
 0x509   :  { %9857 = vmatprep.subr.bf16.mxu1 %v9856_v56  ;;  %v9912_v49 = vpack.c.bf16 %v8256_v55, %v8255_v28 }
 0x50c   :  { %9859 = vmatpush3.bf16.msra.mxu1 %v9856_v56  ;;  %v8343_v56 = vld [vmem:[#allocation18 + $0x10] sm:$0xff] }
 0x50e   :  { %v7781_v53 = vld [vmem:[#allocation2 + $0x30] sm:$0xf] }
 0x50f   :  { %v7782_v0 = vld [vmem:[#allocation2 + $0x38] sm:$0xf]  ;;  %v7805_v31 = vmul.f32 %v11341_v43, %v7781_v53  ;;  %v8151_v53 = vld [vmem:[#allocation12 + $0x50] sm:$0xff] }
 0x510   :  { %v7806_v27 = vmul.f32 %v11341_v43, %v7782_v0  ;;  %v8152_v0 = vld [vmem:[#allocation12 + $0x58] sm:$0xff] }
 0x511   :  { %v9872_v46 = vpack.c.bf16 %v8152_v0, %v8151_v53  ;;  %v8350_v53 = vld [vmem:[#allocation18 + $0x48] sm:$0xff] }
 0x512   :  { %7983 = vmatprep.mubr.f32.mxu0 %v7806_v27  ;;  %v8153_v27 = vld [vmem:[#allocation12 + $0x60] sm:$0xff] }
 0x513   :  { %7984 = vmatmul.mubr.f32.gmra.mrb[74].mxu0 %v7805_v31  ;;  %v8154_v31 = vld [vmem:[#allocation12 + $0x68] sm:$0xff] }
 0x514   :  { %8128 = vmatprep.mubr.f32.mxu0 %v7803_v24  ;;  %v9876_v24 = vpack.c.bf16 %v8154_v31, %v8153_v27  ;;  %v8352_v27 = vld [vmem:[#allocation18 + $0x58] sm:$0xff] }
 0x517   :  { %8129 = vmatmul.mubr.f32.vlgmr.msra.gmra.mrb[76].mxu0 %v7802_v16  ;;  %v8156_v16 = vld [vmem:[#allocation12 + $0x78] sm:$0xff] }
 0x534   :  { %v7467_v33 = vpop.f32.mrb[68].mxu0 }
 0x535   :  { %v7508_v41 = vpop.f32.mrb[68].mxu1  ;;  %v7694_v22 = vrot.slane %v7467_v33, 5  ;;  %v7469_v42 = vpop.f32.mrb[69].mxu0  ;;  %v8241_v33 = vld [vmem:[#allocation15] sm:$0xff] }
 0x536   :  { %v7706_v54 = vrot.slane %v7508_v41, 5  ;;  %v7510_v34 = vpop.f32.mrb[69].mxu1  ;;  %v7700_v13 = vrot.slane %v7469_v42, 5  ;;  %v7471_v30 = vpop.f32.mrb[70].mxu0  ;;  %v8243_v41 = vld [vmem:[#allocation15 + $0x10] sm:$0xff]  ;;  %v8245_v42 = vld [vmem:[#allocation15 + $0x20] sm:$0xff] }
 0x537   :  { %v7712_v29 = vrot.slane %v7510_v34, 5  ;;  %v7512_v12 = vpop.f32.mrb[70].mxu1  ;;  %v7695_v5 = vsel %vm7594_vm4, %v7694_v22, %v7693_v45  ;;  %v7472_v63 = vpop.f32.mrb[71].mxu0  ;;  %v8246_v34 = vld [vmem:[#allocation15 + $0x28] sm:$0xff] }
 0x538   :  { %v7707_v6 = vsel %vm7594_vm4, %v7706_v54, %v7705_v25  ;;  %v7513_v50 = vpop.f32.mrb[71].mxu1  ;;  %v7734_v59 = vadd.f32 %v7695_v5, %v1099_v2  ;;  %v7701_v10 = vsel %vm7594_vm4, %v7700_v13, %v7699_v11  ;;  %v8145_v25 = vld [vmem:[#allocation12 + $0x20] sm:$0xff]  ;;  %v9880_v2 = vpack.c.bf16 %v8156_v16, %v8155_v19  ;;  %v8250_v5 = vld [vmem:[#allocation15 + $0x48] sm:$0xff]  ;;  %v8251_v63 = vld [vmem:[#allocation15 + $0x50] sm:$0xff] }
 0x539   :  { %v7736_v7 = vadd.f32 %v7707_v6, %v1101_v3  ;;  %v7713_v37 = vsel %vm7594_vm4, %v7712_v29, %v7711_v18  ;;  %v7735_v60 = vadd.f32 %v7701_v10, %v1100_v4  ;;  %v9860_v57 = vpack.c.bf16 %v8146_v51, %v8145_v25  ;;  %v8242_v3 = vld [vmem:[#allocation15 + $0x8] sm:$0xff]  ;;  %v8244_v54 = vld [vmem:[#allocation15 + $0x18] sm:$0xff]  ;;  %v8249_v12 = vld [vmem:[#allocation15 + $0x40] sm:$0xff] }
 0x53a   :  { %v7737_v8 = vadd.f32 %v7713_v37, %v1102_v32  ;;  %7746 = vst [vmem:[#allocation2 + $0x40] sm:$0xf] %v7734_v59  ;;  %v9864_v18 = vpack.c.bf16 %v8148_v26, %v8147_v20  ;;  %v9884_v22 = vpack.c.bf16 %v8242_v3, %v8241_v33  ;;  %v9888_v4 = vpack.c.bf16 %v8244_v54, %v8243_v41  ;;  %v8247_v32 = vld [vmem:[#allocation15 + $0x30] sm:$0xff]  ;;  %v8248_v29 = vld [vmem:[#allocation15 + $0x38] sm:$0xff]  ;;  %v8254_v10 = vld [vmem:[#allocation15 + $0x68] sm:$0xff] }
 0x53b   :  { %7748 = vst [vmem:[#allocation2 + $0x50] sm:$0xf] %v7736_v7  ;;  %7747 = vst [vmem:[#allocation2 + $0x48] sm:$0xf] %v7735_v60  ;;  %9861 = vmatprep.subr.bf16.mxu1 %v9860_v57  ;;  %v9892_v13 = vpack.c.bf16 %v8246_v34, %v8245_v42  ;;  %v9896_v30 = vpack.c.bf16 %v8248_v29, %v8247_v32  ;;  %v9900_v6 = vpack.c.bf16 %v8250_v5, %v8249_v12  ;;  %v8252_v50 = vld [vmem:[#allocation15 + $0x58] sm:$0xff]  ;;  %v8253_v7 = vld [vmem:[#allocation15 + $0x60] sm:$0xff] }
 0x53c   :  { %7749 = vst [vmem:[#allocation2 + $0x58] sm:$0xf] %v7737_v8  ;;  %9863 = vmatpush3.bf16.msra.mxu1 %v9860_v57  ;;  %9885 = vmatprep.subr.bf16.mxu0 %v9884_v22  ;;  %v9904_v59 = vpack.c.bf16 %v8252_v50, %v8251_v63  ;;  %v9908_v37 = vpack.c.bf16 %v8254_v10, %v8253_v7  ;;  %v8344_v51 = vld [vmem:[#allocation18 + $0x18] sm:$0xff]  ;;  %v8345_v20 = vld [vmem:[#allocation18 + $0x20] sm:$0xff]  ;;  %v8346_v26 = vld [vmem:[#allocation18 + $0x28] sm:$0xff] }
 0x53d   :  { %9865 = vmatprep.subr.bf16.mxu1 %v9864_v18  ;;  %9887 = vmatpush3.bf16.msra.mxu0 %v9884_v22  ;;  %v9920_v57 = vpack.c.bf16 %v8344_v51, %v8343_v56  ;;  %v8354_v19 = vld [vmem:[#allocation18 + $0x68] sm:$0xff]  ;;  %v8355_v42 = vld [vmem:[#allocation18 + $0x70] sm:$0xff]  ;;  %v8356_v34 = vld [vmem:[#allocation18 + $0x78] sm:$0xff] }
 0x53e   :  { %9889 = vmatprep.subr.bf16.mxu0 %v9888_v4  ;;  %v9481_v32 = vld [vmem:[#allocation16] ss:$0 sm:$0xff]  ;;  %v9482_v50 = vld [vmem:[#allocation19] ss:$0 sm:$0xff] }
 0x540   :  { %9867 = vmatpush3.bf16.msra.mxu1 %v9864_v18  ;;  %v8347_v18 = vld [vmem:[#allocation18 + $0x30] sm:$0xff] }
 0x541   :  { %v7783_v35 = vld [vmem:[#allocation2 + $0x40] sm:$0xf]  ;;  %9891 = vmatpush3.bf16.msra.mxu0 %v9888_v4 }
 0x542   :  { %v7785_v40 = vld [vmem:[#allocation2 + $0x50] sm:$0xf]  ;;  %v7784_v38 = vld [vmem:[#allocation2 + $0x48] sm:$0xf]  ;;  %v7807_v36 = vmul.f32 %v11341_v43, %v7783_v35  ;;  %9893 = vmatprep.subr.bf16.mxu0 %v9892_v13 }
 0x543   :  { %v7786_v39 = vld [vmem:[#allocation2 + $0x58] sm:$0xf]  ;;  %v7808_v14 = vmul.f32 %v11341_v43, %v7784_v38  ;;  %v7809_v9 = vmul.f32 %v11341_v43, %v7785_v40 }
 0x544   :  { %v7810_v45 = vmul.f32 %v11341_v43, %v7786_v39  ;;  %v9868_v43 = vpack.c.bf16 %v8150_v61, %v8149_v23  ;;  %v8348_v23 = vld [vmem:[#allocation18 + $0x38] sm:$0xff] }
 0x545   :  { %8058 = vmatprep.mubr.f32.mxu1 %v7808_v14  ;;  %9895 = vmatpush3.bf16.msra.mxu0 %v9892_v13  ;;  %v9928_v61 = vpack.c.bf16 %v8348_v23, %v8347_v18  ;;  %v9944_v13 = vpack.c.bf16 %v8356_v34, %v8355_v42 }
 0x546   :  { %8133 = vmatprep.mubr.f32.mxu0 %v7810_v45  ;;  %8059 = vmatmul.mubr.f32.gmra.mrb[74].mxu1 %v7807_v36 }
 0x547   :  { %8134 = vmatmul.mubr.f32.gmra.mrb[78].mxu0 %v7809_v9  ;;  %9869 = vmatprep.subr.bf16.mxu1 %v9868_v43 }
 0x548   :  { %9871 = vmatpush3.bf16.msra.mxu1 %v9868_v43  ;;  %9897 = vmatprep.subr.bf16.mxu0 %v9896_v30  ;;  %v8349_v43 = vld [vmem:[#allocation18 + $0x40] sm:$0xff] }
 0x549   :  { %9873 = vmatprep.subr.bf16.mxu1 %v9872_v46  ;;  %9899 = vmatpush3.bf16.msra.mxu0 %v9896_v30  ;;  %v9932_v0 = vpack.c.bf16 %v8350_v53, %v8349_v43 }
 0x54a   :  { %9901 = vmatprep.subr.bf16.mxu0 %v9900_v6 }
 0x54c   :  { %9875 = vmatpush3.bf16.msra.mxu1 %v9872_v46  ;;  %v8351_v46 = vld [vmem:[#allocation18 + $0x50] sm:$0xff] }
 0x54d   :  { %9877 = vmatprep.subr.bf16.mxu1 %v9876_v24  ;;  %9903 = vmatpush3.bf16.msra.mxu0 %v9900_v6  ;;  %v9936_v31 = vpack.c.bf16 %v8352_v27, %v8351_v46 }
 0x54e   :  { %9905 = vmatprep.subr.bf16.mxu0 %v9904_v59 }
 0x550   :  { %9879 = vmatpush3.bf16.msra.mxu1 %v9876_v24  ;;  %v8353_v24 = vld [vmem:[#allocation18 + $0x60] sm:$0xff] }
 0x551   :  { %9881 = vmatprep.subr.bf16.mxu1 %v9880_v2  ;;  %9907 = vmatpush3.bf16.msra.mxu0 %v9904_v59  ;;  %v9940_v16 = vpack.c.bf16 %v8354_v19, %v8353_v24 }
 0x552   :  { %9909 = vmatprep.subr.bf16.mxu0 %v9908_v37 }
 0x554   :  { %v9515_v17 = vpop.f32.mrb[72].mxu0  ;;  %9883 = vmatpush3.bf16.msra.mxu1 %v9880_v2  ;;  %v9480_v2 = vld [vmem:[#allocation13] ss:$0 sm:$0xff] }
 0x555   :  { %v9553_v11 = vpop.f32.mrb[72].mxu1  ;;  %v9516_v52 = vpop.f32.mrb[73].mxu0  ;;  %9911 = vmatpush3.bf16.msra.mxu0 %v9908_v37 }
 0x556   :  { %v9517_v1 = vadd.f32 %v9516_v52, %v9515_v17  ;;  %v9554_v44 = vpop.f32.mrb[73].mxu1  ;;  %9913 = vmatprep.subr.bf16.mxu0 %v9912_v49 }
 0x557   :  { %v9555_v48 = vadd.f32 %v9554_v44, %v9553_v11 }
 0x558   :  { %v7981_v62 = vadd.f32 %v9517_v1, %v12407_v47 }
 0x559   :  { %9915 = vmatpush3.bf16.msra.mxu0 %v9912_v49 }
 0x55a   :  { %v12410_v21 = vadd.f32 %v9555_v48, %v7981_v62 }
 0x5e6   :  { %v9518_v60 = vpop.f32.mrb[74].mxu0 }
 0x5e7   :  { %v9519_v8 = vpop.f32.mrb[75].mxu0 }
 0x5e8   :  { %v9520_v35 = vadd.f32 %v9519_v8, %v9518_v60 }
 0x5ea   :  { %v9591_v40 = vpop.f32.mrb[76].mxu0  ;;  %v7986_v52 = vadd.f32 %v9520_v35, %v12407_v47  ;;  %v9924_v47 = vpack.c.bf16 %v8346_v26, %v8345_v20 }
 0x5eb   :  { %v9592_v38 = vpop.f32.mrb[77].mxu0 }
 0x5ec   :  { %v9593_v39 = vadd.f32 %v9592_v38, %v9591_v40 }
 0x5ee   :  { %v8131_v14 = vadd.f32 %v9593_v39, %v12410_v21  ;;  %v8341_v21 = vld [vmem:[#allocation18] sm:$0xff] }
 0x5ef   :  { %v9916_v25 = vpack.c.bf16 %v8342_v58, %v8341_v21 }
 0x5f0   :  { %v8139_v45 = vmax.f32 %v8131_v14, 0.0 }
 0x5f1   :  { %9917 = vmatprep.subr.bf16.mxu1 %v9916_v25 }
 0x5f2   :  { %9683 = vmatprep.mubr.f32.mxu1 %v8139_v45 }
 0x619   :  { %v9556_v36 = vpop.f32.mrb[74].mxu1 }
 0x61a   :  { %v9594_v9 = vpop.f32.mrb[78].mxu0  ;;  %v9557_v17 = vpop.f32.mrb[75].mxu1 }
 0x61b   :  { %v9595_v11 = vpop.f32.mrb[79].mxu0  ;;  %v9558_v1 = vadd.f32 %v9557_v17, %v9556_v36 }
 0x61c   :  { %v9596_v44 = vadd.f32 %v9595_v11, %v9594_v9 }
 0x61d   :  { %v8061_v48 = vadd.f32 %v9558_v1, %v7986_v52 }
 0x61f   :  { %v8136_v62 = vadd.f32 %v9596_v44, %v8061_v48 }
 0x621   :  { %v8140_v15 = vmax.f32 %v8136_v62, 0.0 }
 0x623   :  { %9684 = vmatmul.mubr.f32.vlgmr.msra.gmra.mrb[76].mxu1 %v8140_v15 }
 0x624   :  { %9919 = vmatpush3.bf16.msra.mxu1 %v9916_v25 }
 0x625   :  { %9921 = vmatprep.subr.bf16.mxu1 %v9920_v57 }
 0x628   :  { %9923 = vmatpush3.bf16.msra.mxu1 %v9920_v57 }
 0x629   :  { %9925 = vmatprep.subr.bf16.mxu1 %v9924_v47 }
 0x62c   :  { %9927 = vmatpush3.bf16.msra.mxu1 %v9924_v47 }
 0x62d   :  { %9929 = vmatprep.subr.bf16.mxu1 %v9928_v61 }
 0x630   :  { %9931 = vmatpush3.bf16.msra.mxu1 %v9928_v61 }
 0x631   :  { %9933 = vmatprep.subr.bf16.mxu1 %v9932_v0 }
 0x634   :  { %9935 = vmatpush3.bf16.msra.mxu1 %v9932_v0 }
 0x635   :  { %9937 = vmatprep.subr.bf16.mxu1 %v9936_v31 }
 0x638   :  { %9939 = vmatpush3.bf16.msra.mxu1 %v9936_v31 }
 0x639   :  { %9941 = vmatprep.subr.bf16.mxu1 %v9940_v16 }
 0x63c   :  { %9943 = vmatpush3.bf16.msra.mxu1 %v9940_v16 }
 0x63d   :  { %9945 = vmatprep.subr.bf16.mxu1 %v9944_v13 }
 0x640   :  { %9947 = vmatpush3.bf16.msra.mxu1 %v9944_v13 }
 0x6f6   :  { %v9685_v33 = vpop.f32.mrb[76].mxu1 }
 0x6f7   :  { %v8236_v3 = vadd.f32 %v9685_v33, %v9480_v2  ;;  %v8230_v41 = vpop.f32.mrb[77].mxu1 }
 0x6f8   :  { %v8231_v22 = vadd.f32 %v9480_v2, %v8230_v41 }
 0x6f9   :  { %v8240_v4 = vmax.f32 %v8236_v3, 0.0 }
 0x6fa   :  { %v8239_v54 = vmax.f32 %v8231_v22, 0.0 }
 0x6fc   :  { %9718 = vmatprep.mubr.f32.mxu0 %v8239_v54 }
 0x6fd   :  { %9719 = vmatmul.mubr.f32.vlgmr.msra.gmra.mrb[80].mxu0 %v8240_v4 }
 0x7d0   :  { %v9720_v29 = vpop.f32.mrb[80].mxu0 }
 0x7d1   :  { %v8336_v30 = vadd.f32 %v9720_v29, %v9481_v32  ;;  %v8330_v12 = vpop.f32.mrb[81].mxu0 }
 0x7d2   :  { %v8331_v5 = vadd.f32 %v9481_v32, %v8330_v12 }
 0x7d3   :  { %v8340_v63 = vmax.f32 %v8336_v30, 0.0 }
 0x7d4   :  { %v8339_v6 = vmax.f32 %v8331_v5, 0.0 }
 0x7d6   :  { %9753 = vmatprep.mubr.f32.mxu1 %v8339_v6 }
 0x7d7   :  { %9754 = vmatmul.mubr.f32.vlgmr.msra.gmra.mrb[78].mxu1 %v8340_v63 }
 0x8aa   :  { %v9755_v59 = vpop.f32.mrb[78].mxu1 }
 0x8ab   :  { %v8436_v7 = vadd.f32 %v9755_v59, %v9482_v50  ;;  %v8430_v10 = vpop.f32.mrb[79].mxu1 }
 0x8ac   :  { %v8431_v37 = vadd.f32 %v9482_v50, %v8430_v10 }
 0x8ad   :  { %8440 = vst [vmem:[#allocation21 + $0x8] sm:$0xf] %v8436_v7 }
 0x8ae   :  { %8439 = vst [vmem:[#allocation21] sm:$0xff] %v8431_v37 }
 0x8af   :  { %11575 = shalt.err (!%p11572_p0)
}
 0x8b0   :  { %s11576_s26 = scalar_lea.hbm %s12439_s10, 256 }
 0x8b1   :  { %p11577_p1 = scmp.ne.s32.totalorder %s12439_s10, %s11576_s26  ;;  %p11580_p2 = scmp.lt.u32.totalorder %s11576_s26, %s12439_s10 }
 0x8b3   :  { %p11582_p3 = pnand %p11580_p2, %p11577_p1 }
 0x8b5   :  { %11585 = shalt.err (!%p11582_p3)
}
 0x8b6   :  { %8452 = dma.vmem_to_hbm [thread:$0]  %s8447_s4, 256, %s12439_s10, [#allocation6], %s11610_s0, %s11610_s0, %s11611_s16  }
 0x8b7   :  { %11598 = dma.done.wait [#allocation6], 256  }
 0x8b8   :  { %11599 = vsyncadd [#allocation6], 4294967040 }
 0x8b9   :  { %8456 = vsyncpa [#allocation5], 1 }
 0x8ba   :  { %8457 = vsyncpa [#allocation8], 1 }
 0x8bb   :  { %8458 = vsyncpa [#allocation11], 1 }
 0x8bc   :  { %8459 = vsyncpa [#allocation14], 1 }
 0x8bd   :  { %8460 = vsyncpa [#allocation17], 1 }
 0x8be   :  { %8461 = vsyncpa [#allocation20], 1 }
 0x8bf   :  { %8462 = vsyncpa [#allocation6], 1 }

</bundles_post_ra>
